<compile_context>
chip_gen: v6e
topology: v6e:2x2x1
jax: 0.10.0
libtpu: 0.0.40
codegen_flags: <defaults>
</compile_context>

<pallas_src>
import functools

import jax
import jax.numpy as jnp
from jax import lax
from jax.experimental import pallas as pl
from jax.experimental.pallas import tpu as pltpu

EPS = 1e-5
LANE = 128
SUBLANE = 8


def _round_up(x, m):
    return (x + m - 1) // m * m


def _pick_vmem_limit():
    """Per-chip VMEM scoped limit (~3/4 of physical), chosen at trace time."""
    cap = None
    try:
        cap = int(pltpu.get_tpu_info().vmem_capacity_bytes)
    except Exception:
        cap = None
    if not cap:
        cap = 64 * 1024 * 1024          # conservative (v7x physical VMEM)
    return max(32 * 1024 * 1024, min((cap * 3) // 4, 100 * 1024 * 1024))


_VMEM_LIMIT = _pick_vmem_limit()


# ---------------------------------------------------------------------------
# Fused kernel: one image per grid step, everything stays in VMEM/vregs.
# ---------------------------------------------------------------------------
def _bottleneck_kernel(x_ref, w1_ref, w2_ref, w3_ref,
                       sb1_ref, sb2_ref, sb3_ref,
                       o_ref, y1pad_ref, tmat_ref, *, img_w, hw, top):
    """Fused 1x1+BN+ReLU -> 3x3+BN+ReLU -> 1x1+BN+add+ReLU.

    x_ref   : (rows, cp)         f32   one image, NHWC flattened (rows = HW padded to 8)
    w1_ref  : (cp, wp)           bf16
    w2_ref  : (9*wp, wp)         bf16  rows ordered (kh, kw, cin)
    w3_ref  : (wp, cp)           bf16
    sb*_ref : (2, C)             f32   row 0 = BN scale, row 1 = BN shift
    o_ref   : (rows, cp)         f32
    y1pad_ref: (rows + 2*top, wp) f32  zero-padded y1 slab (row halos)
    tmat_ref: (rows, 9*wp)       bf16  staged 3x3 taps (im2col slab)
    """
    rows = x_ref.shape[0]
    wp = w1_ref.shape[1]
    total = y1pad_ref.shape[0]
    f32 = jnp.float32

    # ---- stage 1: 1x1 conv + BN + ReLU ------------------------------------
    sb1 = sb1_ref[...]
    y1 = jnp.dot(x_ref[...].astype(jnp.bfloat16), w1_ref[...],
                 preferred_element_type=f32)
    y1 = jnp.maximum(y1 * sb1[0:1, :] + sb1[1:2, :], 0.0)      # (rows, wp)

    # Zero-padded slab: [0, top) = top halo, [top, top+rows) = y1,
    # [top+hw, total) = bottom halo (+ any padded garbage rows re-zeroed).
    y1pad_ref[0:top, :] = jnp.zeros((top, wp), f32)
    y1pad_ref[top:top + rows, :] = y1
    y1pad_ref[top + hw:total, :] = jnp.zeros((total - top - hw, wp), f32)

    # Column-validity masks for the kw = -1 / +1 taps, computed in-kernel.
    # col = idx mod W via exact float arithmetic (idx < 2^23, safe).
    ridx = lax.broadcasted_iota(jnp.int32, (rows, wp), 0).astype(f32)
    q = jnp.floor((ridx + 0.5) * (1.0 / img_w))
    col = ridx - q * img_w
    lmask = (col >= 0.5).astype(f32)                   # col > 0     (kw = -1 ok)
    rmask = (col <= img_w - 1.5).astype(f32)           # col < W-1   (kw = +1 ok)

    # ---- stage 2: 3x3 conv (pad=1, stride=1) + BN + ReLU -------------------
    # Tap (kh, kw) = static slice of the padded slab at offset
    # (kh-1)*W + (kw-1); row halos are already zero, column wrap is masked.
    for kh in range(3):
        for kw in range(3):
            j = kh * 3 + kw
            off = (kh - 1) * img_w + (kw - 1)
            tap = y1pad_ref[top + off: top + off + rows, :]
            if kw == 0:
                tap = tap * lmask
            elif kw == 2:
                tap = tap * rmask
            tmat_ref[:, j * wp:(j + 1) * wp] = tap.astype(jnp.bfloat16)

    sb2 = sb2_ref[...]
    y2 = jnp.dot(tmat_ref[...], w2_ref[...], preferred_element_type=f32)
    y2 = jnp.maximum(y2 * sb2[0:1, :] + sb2[1:2, :], 0.0)      # (rows, wp)

    # ---- stage 3: 1x1 conv + BN + residual add + ReLU ----------------------
    sb3 = sb3_ref[...]
    y3 = jnp.dot(y2.astype(jnp.bfloat16), w3_ref[...],
                 preferred_element_type=f32)
    y3 = y3 * sb3[0:1, :] + sb3[1:2, :] + x_ref[...]           # re-read identity
    o_ref[...] = jnp.maximum(y3, 0.0).astype(o_ref.dtype)


# ---------------------------------------------------------------------------
# Wrappers
# ---------------------------------------------------------------------------
def _bn_fold(gamma, beta, mean, var, pad_to):
    scale = gamma / jnp.sqrt(var + EPS)
    shift = beta - mean * scale
    sb = jnp.stack([scale, shift], axis=0)                      # (2, C) f32
    return jnp.pad(sb, ((0, 0), (0, pad_to - sb.shape[1])))


@jax.jit
def bottleneck_forward_nhwc(x_nhwc, params):
    """Core fused bottleneck on NHWC activations (no layout transposes)."""
    x = x_nhwc.astype(jnp.float32)
    n, h, w, cin = x.shape
    width = params["w1"].shape[0]
    cout = params["w3"].shape[0]
    assert cin == cout, "downsample=None requires in_channel == out_channel*4"

    hw = h * w
    rows = _round_up(hw, SUBLANE)           # per-image row-block (8-aligned)
    cp = _round_up(cout, LANE)              # lane-dense in/out channel dim
    wp = _round_up(width, LANE)             # lane-dense bottleneck width
    top = _round_up(w + 1, SUBLANE)         # halo rows above/below the slab
    total = rows + 2 * top

    # Input: pad spatial rows to a multiple of 8, channels to 128 (zeros).
    x3 = jnp.pad(x.reshape(n, hw, cin),
                 ((0, 0), (0, rows - hw), (0, cp - cin)))
    x2d = x3.reshape(n * rows, cp)

    # Weights: OIHW -> matmul layouts, zero-pad to lane multiples, cast bf16.
    w1 = jnp.transpose(params["w1"][:, :, 0, 0], (1, 0))            # (cin, width)
    w1 = jnp.pad(w1, ((0, cp - cin), (0, wp - width))).astype(jnp.bfloat16)
    w2 = jnp.transpose(params["w2"], (2, 3, 1, 0))                  # (3,3,in,out)
    w2 = jnp.pad(w2, ((0, 0), (0, 0), (0, wp - width), (0, wp - width)))
    w2 = w2.reshape(9 * wp, wp).astype(jnp.bfloat16)
    w3 = jnp.transpose(params["w3"][:, :, 0, 0], (1, 0))            # (width, cout)
    w3 = jnp.pad(w3, ((0, wp - width), (0, cp - cout))).astype(jnp.bfloat16)

    sb1 = _bn_fold(*params["bn1"], pad_to=wp)
    sb2 = _bn_fold(*params["bn2"], pad_to=wp)
    sb3 = _bn_fold(*params["bn3"], pad_to=cp)

    kernel = functools.partial(_bottleneck_kernel, img_w=w, hw=hw, top=top)

    flops = 2 * n * rows * (cp * wp + 9 * wp * wp + wp * cp)
    bytes_accessed = (2 * n * rows * cp) * 4 \
        + (w1.size + w2.size + w3.size) * 2 \
        + (sb1.size + sb2.size + sb3.size) * 4

    out2d = pl.pallas_call(
        kernel,
        out_shape=jax.ShapeDtypeStruct((n * rows, cp), jnp.float32),
        grid=(n,),
        in_specs=[
            pl.BlockSpec((rows, cp), lambda i: (i, 0)),        # x (one image)
            pl.BlockSpec((cp, wp), lambda i: (0, 0)),          # w1
            pl.BlockSpec((9 * wp, wp), lambda i: (0, 0)),      # w2 (kh,kw,cin)
            pl.BlockSpec((wp, cp), lambda i: (0, 0)),          # w3
            pl.BlockSpec((2, wp), lambda i: (0, 0)),           # bn1 scale/shift
            pl.BlockSpec((2, wp), lambda i: (0, 0)),           # bn2 scale/shift
            pl.BlockSpec((2, cp), lambda i: (0, 0)),           # bn3 scale/shift
        ],
        out_specs=pl.BlockSpec((rows, cp), lambda i: (i, 0)),
        scratch_shapes=[
            pltpu.VMEM((total, wp), jnp.float32),              # padded y1 slab
            pltpu.VMEM((rows, 9 * wp), jnp.bfloat16),          # staged 3x3 taps
        ],
        compiler_params=pltpu.CompilerParams(
            dimension_semantics=("parallel",),
            vmem_limit_bytes=_VMEM_LIMIT),
        cost_estimate=pl.CostEstimate(flops=flops, transcendentals=0,
                                      bytes_accessed=bytes_accessed),
    )(x2d, w1, w2, w3, sb1, sb2, sb3)

    out = out2d.reshape(n, rows, cp)[:, :hw, :cout]
    return out.reshape(n, h, w, cout)


@jax.jit
def bottleneck_forward(x_nchw, params):
    # PyTorch NCHW module boundary.  In a full ResNet stack keep activations
    # NHWC and call bottleneck_forward_nhwc directly; these transposes vanish.
    x = jnp.transpose(x_nchw, (0, 2, 3, 1))
    y = bottleneck_forward_nhwc(x, params)
    return jnp.transpose(y, (0, 3, 1, 2))


# ---------------------------------------------------------------------------
# Pure-JAX f32 reference (correctness check)
# ---------------------------------------------------------------------------
def bottleneck_reference(x_nchw, params):
    dn = ("NCHW", "OIHW", "NCHW")

    def bn(y, p):
        g, b, m, v = p
        g = g[None, :, None, None]
        b = b[None, :, None, None]
        m = m[None, :, None, None]
        v = v[None, :, None, None]
        return g * (y - m) / jnp.sqrt(v + EPS) + b

    x = x_nchw.astype(jnp.float32)
    y = lax.conv_general_dilated(x, params["w1"], (1, 1), "VALID",
                                 dimension_numbers=dn)
    y = jax.nn.relu(bn(y, params["bn1"]))
    y = lax.conv_general_dilated(y, params["w2"], (1, 1), ((1, 1), (1, 1)),
                                 dimension_numbers=dn)
    y = jax.nn.relu(bn(y, params["bn2"]))
    y = lax.conv_general_dilated(y, params["w3"], (1, 1), "VALID",
                                 dimension_numbers=dn)
    y = bn(y, params["bn3"]) + x
    return jax.nn.relu(y)


# ---------------------------------------------------------------------------
def make_params(key, in_channel, out_channel):
    expansion = 4
    width = out_channel                 # groups=1, width_per_group=64
    c_out = out_channel * expansion
    ks = jax.random.split(key, 6)

    def bn_params(k, c):
        k1, k2, k3, k4 = jax.random.split(k, 4)
        gamma = jax.random.uniform(k1, (c,), jnp.float32, 0.5, 1.5)
        beta = 0.1 * jax.random.normal(k2, (c,), jnp.float32)
        mean = 0.1 * jax.random.normal(k3, (c,), jnp.float32)
        var = jax.random.uniform(k4, (c,), jnp.float32, 0.5, 1.5)
        return (gamma, beta, mean, var)

    return {
        "w1": 0.1 * jax.random.normal(ks[0], (width, in_channel, 1, 1), jnp.float32),
        "w2": 0.1 * jax.random.normal(ks[1], (width, width, 3, 3), jnp.float32),
        "w3": 0.1 * jax.random.normal(ks[2], (c_out, width, 1, 1), jnp.float32),
        "bn1": bn_params(ks[3], width),
        "bn2": bn_params(ks[4], width),
        "bn3": bn_params(ks[5], c_out),
    }


if __name__ == "__main__":
    key = jax.random.PRNGKey(0)
    k_x, k_p = jax.random.split(key)

    out_channel = 4
    in_channel = out_channel * 4        # identity add requires Cin == Cout
    N, H, W = 2, 16, 16

    x = jax.random.normal(k_x, (N, in_channel, H, W), jnp.float32)
    params = make_params(k_p, in_channel, out_channel)

    out = jax.block_until_ready(bottleneck_forward(x, params))
    ref = bottleneck_reference(x, params)

    assert out.shape == ref.shape == (N, out_channel * 4, H, W)
    max_err = float(jnp.max(jnp.abs(out - ref)))
    # bf16 matmul inputs with f32 accumulation -> loose-ish tolerance vs f32 ref
    assert jnp.allclose(out, ref, atol=5e-2, rtol=5e-2), max_err

    print("KERNEL_OK")
</pallas_src>

<mosaic_0001>
module attributes {stable_mosaic.version = 11 : i64} {
  func.func @_bottleneck_kernel(%arg0: i32, %arg1: memref<256x128xf32, #tpu.memory_space<vmem>>, %arg2: memref<128x128xbf16, #tpu.memory_space<vmem>>, %arg3: memref<1152x128xbf16, #tpu.memory_space<vmem>>, %arg4: memref<128x128xbf16, #tpu.memory_space<vmem>>, %arg5: memref<2x128xf32, #tpu.memory_space<vmem>>, %arg6: memref<2x128xf32, #tpu.memory_space<vmem>>, %arg7: memref<2x128xf32, #tpu.memory_space<vmem>>, %arg8: memref<256x128xf32, #tpu.memory_space<vmem>>, %arg9: memref<304x128xf32, #tpu.memory_space<vmem>>, %arg10: memref<256x1152xbf16, #tpu.memory_space<vmem>>) attributes {dimension_semantics = [#tpu.dimension_semantics<parallel>], iteration_bounds = array<i64: 2>, scalar_prefetch = 0 : i64, scratch_operands = 2 : i64, tpu.core_type = #tpu.core_type<tc>, window_params = [{transform_indices = @transform_0, window_bounds = array<i64: 256, 128>}, {pipeline_mode = #tpu.pipeline_mode<synchronous>, transform_indices = @transform_1, window_bounds = array<i64: 128, 128>}, {pipeline_mode = #tpu.pipeline_mode<synchronous>, transform_indices = @transform_2, window_bounds = array<i64: 1152, 128>}, {pipeline_mode = #tpu.pipeline_mode<synchronous>, transform_indices = @transform_3, window_bounds = array<i64: 128, 128>}, {pipeline_mode = #tpu.pipeline_mode<synchronous>, transform_indices = @transform_4, window_bounds = array<i64: 2, 128>}, {pipeline_mode = #tpu.pipeline_mode<synchronous>, transform_indices = @transform_5, window_bounds = array<i64: 2, 128>}, {pipeline_mode = #tpu.pipeline_mode<synchronous>, transform_indices = @transform_6, window_bounds = array<i64: 2, 128>}, {transform_indices = @transform_7, window_bounds = array<i64: 256, 128>}]} {
    %c0 = arith.constant 0 : index
    %c0_0 = arith.constant 0 : index
    %0 = vector.load %arg5[%c0, %c0_0] : memref<2x128xf32, #tpu.memory_space<vmem>>, vector<2x128xf32>
    %c0_1 = arith.constant 0 : index
    %c0_2 = arith.constant 0 : index
    %1 = vector.load %arg1[%c0_1, %c0_2] : memref<256x128xf32, #tpu.memory_space<vmem>>, vector<256x128xf32>
    %2 = arith.truncf %1 : vector<256x128xf32> to vector<256x128xbf16>
    %c0_3 = arith.constant 0 : index
    %c0_4 = arith.constant 0 : index
    %3 = vector.load %arg2[%c0_3, %c0_4] : memref<128x128xbf16, #tpu.memory_space<vmem>>, vector<128x128xbf16>
    %cst = arith.constant dense<0.000000e+00> : vector<256x128xf32>
    %4 = tpu.matmul %2, %3, %cst {dimension_numbers = #tpu.dot_dimension_numbers<[1], [0], [0], [1], [0, 0, 1, 1], [], []>} : vector<256x128xbf16>, vector<128x128xbf16>, vector<256x128xf32> -> vector<256x128xf32>
    %5 = vector.extract_strided_slice %0 {offsets = [0, 0], sizes = [1, 128], strides = [1, 1]} : vector<2x128xf32> to vector<1x128xf32>
    %6 = vector.broadcast %5 : vector<1x128xf32> to vector<256x128xf32>
    %7 = arith.mulf %4, %6 : vector<256x128xf32>
    %8 = vector.extract_strided_slice %0 {offsets = [1, 0], sizes = [1, 128], strides = [1, 1]} : vector<2x128xf32> to vector<1x128xf32>
    %9 = vector.broadcast %8 : vector<1x128xf32> to vector<256x128xf32>
    %10 = arith.addf %7, %9 : vector<256x128xf32>
    %cst_5 = arith.constant 0.000000e+00 : f32
    %11 = vector.broadcast %cst_5 : f32 to vector<256x128xf32>
    %12 = arith.maximumf %10, %11 : vector<256x128xf32>
    %cst_6 = arith.constant 0.000000e+00 : f32
    %13 = vector.broadcast %cst_6 : f32 to vector<24x128xf32>
    %c0_7 = arith.constant 0 : index
    %c0_8 = arith.constant 0 : index
    %14 = vector.load %arg9[%c0_7, %c0_8] : memref<304x128xf32, #tpu.memory_space<vmem>>, vector<24x128xf32>
    tpu.vector_store %arg9[%c0_7, %c0_8], %13 {strides = array<i32>} : memref<304x128xf32, #tpu.memory_space<vmem>>, vector<24x128xf32>,
    %c24 = arith.constant 24 : index
    %c0_9 = arith.constant 0 : index
    %15 = vector.load %arg9[%c24, %c0_9] : memref<304x128xf32, #tpu.memory_space<vmem>>, vector<256x128xf32>
    tpu.vector_store %arg9[%c24, %c0_9], %12 {strides = array<i32>} : memref<304x128xf32, #tpu.memory_space<vmem>>, vector<256x128xf32>,
    %cst_10 = arith.constant 0.000000e+00 : f32
    %16 = vector.broadcast %cst_10 : f32 to vector<24x128xf32>
    %c280 = arith.constant 280 : index
    %c0_11 = arith.constant 0 : index
    %17 = vector.load %arg9[%c280, %c0_11] : memref<304x128xf32, #tpu.memory_space<vmem>>, vector<24x128xf32>
    tpu.vector_store %arg9[%c280, %c0_11], %16 {strides = array<i32>} : memref<304x128xf32, #tpu.memory_space<vmem>>, vector<24x128xf32>,
    %18 = tpu.iota {dimensions = array<i32: 0>} : vector<256x128xi32>
    %19 = arith.sitofp %18 : vector<256x128xi32> to vector<256x128xf32>
    %cst_12 = arith.constant 5.000000e-01 : f32
    %20 = vector.broadcast %cst_12 : f32 to vector<256x128xf32>
    %21 = arith.addf %19, %20 : vector<256x128xf32>
    %cst_13 = arith.constant 6.250000e-02 : f32
    %22 = vector.broadcast %cst_13 : f32 to vector<256x128xf32>
    %23 = arith.mulf %21, %22 : vector<256x128xf32>
    %24 = math.floor %23 : vector<256x128xf32>
    %cst_14 = arith.constant 1.600000e+01 : f32
    %25 = vector.broadcast %cst_14 : f32 to vector<256x128xf32>
    %26 = arith.mulf %24, %25 : vector<256x128xf32>
    %27 = arith.subf %19, %26 : vector<256x128xf32>
    %cst_15 = arith.constant 5.000000e-01 : f32
    %28 = vector.broadcast %cst_15 : f32 to vector<256x128xf32>
    %29 = arith.cmpf oge, %27, %28 : vector<256x128xf32>
    %30 = arith.extui %29 : vector<256x128xi1> to vector<256x128xi32>
    %31 = arith.sitofp %30 : vector<256x128xi32> to vector<256x128xf32>
    %cst_16 = arith.constant 1.450000e+01 : f32
    %32 = vector.broadcast %cst_16 : f32 to vector<256x128xf32>
    %33 = arith.cmpf ole, %27, %32 : vector<256x128xf32>
    %34 = arith.extui %33 : vector<256x128xi1> to vector<256x128xi32>
    %35 = arith.sitofp %34 : vector<256x128xi32> to vector<256x128xf32>
    %c7 = arith.constant 7 : index
    %c0_17 = arith.constant 0 : index
    %36 = vector.load %arg9[%c7, %c0_17] : memref<304x128xf32, #tpu.memory_space<vmem>>, vector<256x128xf32>
    %37 = arith.mulf %36, %31 : vector<256x128xf32>
    %38 = arith.truncf %37 : vector<256x128xf32> to vector<256x128xbf16>
    %c0_18 = arith.constant 0 : index
    %c0_19 = arith.constant 0 : index
    %39 = vector.load %arg10[%c0_18, %c0_19] : memref<256x1152xbf16, #tpu.memory_space<vmem>>, vector<256x128xbf16>
    tpu.vector_store %arg10[%c0_18, %c0_19], %38 {strides = array<i32>} : memref<256x1152xbf16, #tpu.memory_space<vmem>>, vector<256x128xbf16>,
    %c8 = arith.constant 8 : index
    %c0_20 = arith.constant 0 : index
    %40 = vector.load %arg9[%c8, %c0_20] : memref<304x128xf32, #tpu.memory_space<vmem>>, vector<256x128xf32>
    %41 = arith.truncf %40 : vector<256x128xf32> to vector<256x128xbf16>
    %c0_21 = arith.constant 0 : index
    %c128 = arith.constant 128 : index
    %42 = vector.load %arg10[%c0_21, %c128] : memref<256x1152xbf16, #tpu.memory_space<vmem>>, vector<256x128xbf16>
    tpu.vector_store %arg10[%c0_21, %c128], %41 {strides = array<i32>} : memref<256x1152xbf16, #tpu.memory_space<vmem>>, vector<256x128xbf16>,
    %c9 = arith.constant 9 : index
    %c0_22 = arith.constant 0 : index
    %43 = vector.load %arg9[%c9, %c0_22] : memref<304x128xf32, #tpu.memory_space<vmem>>, vector<256x128xf32>
    %44 = arith.mulf %43, %35 : vector<256x128xf32>
    %45 = arith.truncf %44 : vector<256x128xf32> to vector<256x128xbf16>
    %c0_23 = arith.constant 0 : index
    %c256 = arith.constant 256 : index
    %46 = vector.load %arg10[%c0_23, %c256] : memref<256x1152xbf16, #tpu.memory_space<vmem>>, vector<256x128xbf16>
    tpu.vector_store %arg10[%c0_23, %c256], %45 {strides = array<i32>} : memref<256x1152xbf16, #tpu.memory_space<vmem>>, vector<256x128xbf16>,
    %c23 = arith.constant 23 : index
    %c0_24 = arith.constant 0 : index
    %47 = vector.load %arg9[%c23, %c0_24] : memref<304x128xf32, #tpu.memory_space<vmem>>, vector<256x128xf32>
    %48 = arith.mulf %47, %31 : vector<256x128xf32>
    %49 = arith.truncf %48 : vector<256x128xf32> to vector<256x128xbf16>
    %c0_25 = arith.constant 0 : index
    %c384 = arith.constant 384 : index
    %50 = vector.load %arg10[%c0_25, %c384] : memref<256x1152xbf16, #tpu.memory_space<vmem>>, vector<256x128xbf16>
    tpu.vector_store %arg10[%c0_25, %c384], %49 {strides = array<i32>} : memref<256x1152xbf16, #tpu.memory_space<vmem>>, vector<256x128xbf16>,
    %c24_26 = arith.constant 24 : index
    %c0_27 = arith.constant 0 : index
    %51 = vector.load %arg9[%c24_26, %c0_27] : memref<304x128xf32, #tpu.memory_space<vmem>>, vector<256x128xf32>
    %52 = arith.truncf %51 : vector<256x128xf32> to vector<256x128xbf16>
    %c0_28 = arith.constant 0 : index
    %c512 = arith.constant 512 : index
    %53 = vector.load %arg10[%c0_28, %c512] : memref<256x1152xbf16, #tpu.memory_space<vmem>>, vector<256x128xbf16>
    tpu.vector_store %arg10[%c0_28, %c512], %52 {strides = array<i32>} : memref<256x1152xbf16, #tpu.memory_space<vmem>>, vector<256x128xbf16>,
    %c25 = arith.constant 25 : index
    %c0_29 = arith.constant 0 : index
    %54 = vector.load %arg9[%c25, %c0_29] : memref<304x128xf32, #tpu.memory_space<vmem>>, vector<256x128xf32>
    %55 = arith.mulf %54, %35 : vector<256x128xf32>
    %56 = arith.truncf %55 : vector<256x128xf32> to vector<256x128xbf16>
    %c0_30 = arith.constant 0 : index
    %c640 = arith.constant 640 : index
    %57 = vector.load %arg10[%c0_30, %c640] : memref<256x1152xbf16, #tpu.memory_space<vmem>>, vector<256x128xbf16>
    tpu.vector_store %arg10[%c0_30, %c640], %56 {strides = array<i32>} : memref<256x1152xbf16, #tpu.memory_space<vmem>>, vector<256x128xbf16>,
    %c39 = arith.constant 39 : index
    %c0_31 = arith.constant 0 : index
    %58 = vector.load %arg9[%c39, %c0_31] : memref<304x128xf32, #tpu.memory_space<vmem>>, vector<256x128xf32>
    %59 = arith.mulf %58, %31 : vector<256x128xf32>
    %60 = arith.truncf %59 : vector<256x128xf32> to vector<256x128xbf16>
    %c0_32 = arith.constant 0 : index
    %c768 = arith.constant 768 : index
    %61 = vector.load %arg10[%c0_32, %c768] : memref<256x1152xbf16, #tpu.memory_space<vmem>>, vector<256x128xbf16>
    tpu.vector_store %arg10[%c0_32, %c768], %60 {strides = array<i32>} : memref<256x1152xbf16, #tpu.memory_space<vmem>>, vector<256x128xbf16>,
    %c40 = arith.constant 40 : index
    %c0_33 = arith.constant 0 : index
    %62 = vector.load %arg9[%c40, %c0_33] : memref<304x128xf32, #tpu.memory_space<vmem>>, vector<256x128xf32>
    %63 = arith.truncf %62 : vector<256x128xf32> to vector<256x128xbf16>
    %c0_34 = arith.constant 0 : index
    %c896 = arith.constant 896 : index
    %64 = vector.load %arg10[%c0_34, %c896] : memref<256x1152xbf16, #tpu.memory_space<vmem>>, vector<256x128xbf16>
    tpu.vector_store %arg10[%c0_34, %c896], %63 {strides = array<i32>} : memref<256x1152xbf16, #tpu.memory_space<vmem>>, vector<256x128xbf16>,
    %c41 = arith.constant 41 : index
    %c0_35 = arith.constant 0 : index
    %65 = vector.load %arg9[%c41, %c0_35] : memref<304x128xf32, #tpu.memory_space<vmem>>, vector<256x128xf32>
    %66 = arith.mulf %65, %35 : vector<256x128xf32>
    %67 = arith.truncf %66 : vector<256x128xf32> to vector<256x128xbf16>
    %c0_36 = arith.constant 0 : index
    %c1024 = arith.constant 1024 : index
    %68 = vector.load %arg10[%c0_36, %c1024] : memref<256x1152xbf16, #tpu.memory_space<vmem>>, vector<256x128xbf16>
    tpu.vector_store %arg10[%c0_36, %c1024], %67 {strides = array<i32>} : memref<256x1152xbf16, #tpu.memory_space<vmem>>, vector<256x128xbf16>,
    %c0_37 = arith.constant 0 : index
    %c0_38 = arith.constant 0 : index
    %69 = vector.load %arg6[%c0_37, %c0_38] : memref<2x128xf32, #tpu.memory_space<vmem>>, vector<2x128xf32>
    %c0_39 = arith.constant 0 : index
    %c0_40 = arith.constant 0 : index
    %70 = vector.load %arg10[%c0_39, %c0_40] : memref<256x1152xbf16, #tpu.memory_space<vmem>>, vector<256x1152xbf16>
    %c0_41 = arith.constant 0 : index
    %c0_42 = arith.constant 0 : index
    %71 = vector.load %arg3[%c0_41, %c0_42] : memref<1152x128xbf16, #tpu.memory_space<vmem>>, vector<1152x128xbf16>
    %cst_43 = arith.constant dense<0.000000e+00> : vector<256x128xf32>
    %72 = tpu.matmul %70, %71, %cst_43 {dimension_numbers = #tpu.dot_dimension_numbers<[1], [0], [0], [1], [0, 0, 1, 1], [], []>} : vector<256x1152xbf16>, vector<1152x128xbf16>, vector<256x128xf32> -> vector<256x128xf32>
    %73 = vector.extract_strided_slice %69 {offsets = [0, 0], sizes = [1, 128], strides = [1, 1]} : vector<2x128xf32> to vector<1x128xf32>
    %74 = vector.broadcast %73 : vector<1x128xf32> to vector<256x128xf32>
    %75 = arith.mulf %72, %74 : vector<256x128xf32>
    %76 = vector.extract_strided_slice %69 {offsets = [1, 0], sizes = [1, 128], strides = [1, 1]} : vector<2x128xf32> to vector<1x128xf32>
    %77 = vector.broadcast %76 : vector<1x128xf32> to vector<256x128xf32>
    %78 = arith.addf %75, %77 : vector<256x128xf32>
    %cst_44 = arith.constant 0.000000e+00 : f32
    %79 = vector.broadcast %cst_44 : f32 to vector<256x128xf32>
    %80 = arith.maximumf %78, %79 : vector<256x128xf32>
    %c0_45 = arith.constant 0 : index
    %c0_46 = arith.constant 0 : index
    %81 = vector.load %arg7[%c0_45, %c0_46] : memref<2x128xf32, #tpu.memory_space<vmem>>, vector<2x128xf32>
    %82 = arith.truncf %80 : vector<256x128xf32> to vector<256x128xbf16>
    %c0_47 = arith.constant 0 : index
    %c0_48 = arith.constant 0 : index
    %83 = vector.load %arg4[%c0_47, %c0_48] : memref<128x128xbf16, #tpu.memory_space<vmem>>, vector<128x128xbf16>
    %cst_49 = arith.constant dense<0.000000e+00> : vector<256x128xf32>
    %84 = tpu.matmul %82, %83, %cst_49 {dimension_numbers = #tpu.dot_dimension_numbers<[1], [0], [0], [1], [0, 0, 1, 1], [], []>} : vector<256x128xbf16>, vector<128x128xbf16>, vector<256x128xf32> -> vector<256x128xf32>
    %85 = vector.extract_strided_slice %81 {offsets = [0, 0], sizes = [1, 128], strides = [1, 1]} : vector<2x128xf32> to vector<1x128xf32>
    %86 = vector.broadcast %85 : vector<1x128xf32> to vector<256x128xf32>
    %87 = arith.mulf %84, %86 : vector<256x128xf32>
    %88 = vector.extract_strided_slice %81 {offsets = [1, 0], sizes = [1, 128], strides = [1, 1]} : vector<2x128xf32> to vector<1x128xf32>
    %89 = vector.broadcast %88 : vector<1x128xf32> to vector<256x128xf32>
    %90 = arith.addf %87, %89 : vector<256x128xf32>
    %c0_50 = arith.constant 0 : index
    %c0_51 = arith.constant 0 : index
    %91 = vector.load %arg1[%c0_50, %c0_51] : memref<256x128xf32, #tpu.memory_space<vmem>>, vector<256x128xf32>
    %92 = arith.addf %90, %91 : vector<256x128xf32>
    %cst_52 = arith.constant 0.000000e+00 : f32
    %93 = vector.broadcast %cst_52 : f32 to vector<256x128xf32>
    %94 = arith.maximumf %92, %93 : vector<256x128xf32>
    %c0_53 = arith.constant 0 : index
    %c0_54 = arith.constant 0 : index
    %95 = vector.load %arg8[%c0_53, %c0_54] : memref<256x128xf32, #tpu.memory_space<vmem>>, vector<256x128xf32>
    tpu.vector_store %arg8[%c0_53, %c0_54], %94 {strides = array<i32>} : memref<256x128xf32, #tpu.memory_space<vmem>>, vector<256x128xf32>,
    return
  }
  func.func @transform_0(%arg0: i32) -> (i32, i32) {
    %c0_i32 = arith.constant 0 : i32
    %c0_i32_0 = arith.constant 0 : i32
    return %arg0, %c0_i32 : i32, i32
  }
  func.func @transform_1(%arg0: i32) -> (i32, i32) {
    %c0_i32 = arith.constant 0 : i32
    %c0_i32_0 = arith.constant 0 : i32
    %c0_i32_1 = arith.constant 0 : i32
    return %c0_i32, %c0_i32_0 : i32, i32
  }
  func.func @transform_2(%arg0: i32) -> (i32, i32) {
    %c0_i32 = arith.constant 0 : i32
    %c0_i32_0 = arith.constant 0 : i32
    %c0_i32_1 = arith.constant 0 : i32
    return %c0_i32, %c0_i32_0 : i32, i32
  }
  func.func @transform_3(%arg0: i32) -> (i32, i32) {
    %c0_i32 = arith.constant 0 : i32
    %c0_i32_0 = arith.constant 0 : i32
    %c0_i32_1 = arith.constant 0 : i32
    return %c0_i32, %c0_i32_0 : i32, i32
  }
  func.func @transform_4(%arg0: i32) -> (i32, i32) {
    %c0_i32 = arith.constant 0 : i32
    %c0_i32_0 = arith.constant 0 : i32
    %c0_i32_1 = arith.constant 0 : i32
    return %c0_i32, %c0_i32_0 : i32, i32
  }
  func.func @transform_5(%arg0: i32) -> (i32, i32) {
    %c0_i32 = arith.constant 0 : i32
    %c0_i32_0 = arith.constant 0 : i32
    %c0_i32_1 = arith.constant 0 : i32
    return %c0_i32, %c0_i32_0 : i32, i32
  }
  func.func @transform_6(%arg0: i32) -> (i32, i32) {
    %c0_i32 = arith.constant 0 : i32
    %c0_i32_0 = arith.constant 0 : i32
    %c0_i32_1 = arith.constant 0 : i32
    return %c0_i32, %c0_i32_0 : i32, i32
  }
  func.func @transform_7(%arg0: i32) -> (i32, i32) {
    %c0_i32 = arith.constant 0 : i32
    %c0_i32_0 = arith.constant 0 : i32
    return %arg0, %c0_i32 : i32, i32
  }
}

</mosaic_0001>

<bundles_post_ra>
// kernel: bottleneck_forward_nhwc.1
= control target key start
LH: loop header
LB: loop body
LE: loop exit
PB: predicated region body
PF: predicated region fallthrough
CT: control target
= control target key end

     0   :  { %12 = vsyncpa [#allocation5], 0  ;;  %s10086_s0 = inlined_call_operand.vmem [shape: f32[512,128], index: 0, kind: input, shape index: {}]   ;;  %s10087_s1 = inlined_call_operand.vmem [shape: bf16[128,128], index: 1, kind: input, shape index: {}]   ;;  %s10088_s2 = inlined_call_operand.vmem [shape: bf16[1152,128], index: 2, kind: input, shape index: {}]   ;;  %s10089_s3 = inlined_call_operand.vmem [shape: bf16[128,128], index: 3, kind: input, shape index: {}]   ;;  %s10090_s4 = inlined_call_operand.vmem [shape: f32[2,128], index: 4, kind: input, shape index: {}]   ;;  %s10091_s5 = inlined_call_operand.vmem [shape: f32[2,128], index: 5, kind: input, shape index: {}]   ;;  %s10092_s6 = inlined_call_operand.vmem [shape: f32[2,128], index: 6, kind: input, shape index: {}]   ;;  %s10093_s7 = inlined_call_operand.hbm [shape: f32[512,128], index: 7, kind: output, shape index: {}]  }
   0x1   :  { %14 = vsyncpa [#allocation5 + $0x1], 0  ;;  %s7946_s24 = smov 0   ;;  %s7948_s25 = smov 0  }
   0x2   :  { %s7950_s26 = smov 0   ;;  %s7952_s27 = smov 0  }
   0x3 LB: > { %s7967_s28 = sadd.s32 4294967295, %s7899_s27   ;;  %s5934_s29 = sadd.s32 4294967294, %s7899_s27   ;;  %s7899_s27 = sphi %s7952_s27, %s10356_s27   ;;  %s7895_s26 = sphi %s7950_s26, %s10355_s26   ;;  %s7891_s25 = sphi %s7948_s25, %s10354_s25   ;;  %s7887_s24 = sphi %s7946_s24, %s10353_s24  }
   0x4   : > { %s7971_s30 = sadd.s32 1, %s7899_s27   ;;  %s179_s8 = sadd.s32 1, %s7895_s26 }
   0x5   : > { %s176_s9 = ssub.s32 %s7899_s27, %s7971_s30  ;;  %p189_p0 = scmp.ne.s32.totalorder %s7895_s26, %s7891_s25 }
   0x6   : > { %p177_p1 = scmp.eq.s32.totalorder %s176_s9, 0  ;;  %p190_p2 = scmp.eq.s32.totalorder %s7967_s28, 1 }
   0x7   : > { %p195_p3 = scmp.ne.s32.totalorder %s7891_s25, %s7887_s24  ;;  %p196_p4 = scmp.eq.s32.totalorder %s5934_s29, 1 }
   0x8   : > { %s7982_s10 = scalar_select %p177_p1, %s7895_s26, %s179_s8  }
   0x9   : > { %p7984_p5 = por %p190_p2, %p189_p0  ;;  %p7988_p6 = por %p196_p4, %p195_p3 }
   0xa   : > { %p5937_p7 = scmp.ge.s32.totalorder %s7899_s27, 1  ;;  %p241_p8 = scmp.lt.s32.totalorder %s7899_s27, 3 }
   0xc   : > { %p242_p9 = pnand %p5937_p7, %p241_p8 }
   0xe   : > { %245 = sbr.rel (%p242_p9) target bundleno = 1075 (0x433), region = 48 }
  0x13   : > { %v7541_v0 = vld [vmem:[%s10087_s1 + $0x38] sm:$0xff]   ;;  %s5939_s15 = sshll.u32 %s7967_s28, 5  ;;  %v7542_v1 = vld [vmem:[%s10087_s1 + $0x30] sm:$0xff]   ;;  %v7543_v2 = vld [vmem:[%s10087_s1 + $0x28] sm:$0xff]   ;;  %v555_v62 = vlaneseq  ;;  %s270_s19 = sand.u32 1, %s7891_s25  }
  0x14   : > { %p274_p10 = scmp.lt.s32.totalorder %s5939_s15, 63  ;;  %7339 = vmatprep.subr.bf16.mxu0 %v7541_v0  ;;  %7483 = vmatprep.subr.bf16.mxu1 %v7541_v0  ;;  %v7544_v3 = vld [vmem:[%s10087_s1 + $0x20] sm:$0xff]   ;;  %v7545_v7 = vld [vmem:[%s10087_s1 + $0x18] sm:$0xff]   ;;  %v7546_v11 = vld [vmem:[%s10087_s1 + $0x10] sm:$0xff]   ;;  %s6818_s22 = sshll.u32 %s7967_s28, 12 }
  0x15   : > { %7340 = vmatpush3.bf16.msra.mxu0 %v7541_v0  ;;  %7491 = vmatpush3.bf16.msra.mxu1 %v7541_v0  ;;  %v7547_v12 = vld [vmem:[%s10087_s1 + $0x8] sm:$0xff]   ;;  %v7548_v13 = vld [vmem:[%s10087_s1] sm:$0xff]   ;;  %v7549_v22 = vld [vmem:[%s10088_s2 + $0x78] sm:$0xff]   ;;  %v8074_v63 = vshrl.u32 %v555_v62, 7  ;;  %s10038_s13 = scalar_lea.hbm %s10093_s7, %s6818_s22  ;;  %s7903_s14 = smov [#allocation4]  }
  0x16   : > { %s10358_s15 = smov (!%p274_p10, %s5939_s15), 63  ;;  %7341 = vmatprep.subr.bf16.mxu0 %v7542_v1  ;;  %7484 = vmatprep.subr.bf16.mxu1 %v7542_v1  ;;  %v7550_v24 = vld [vmem:[%s10088_s2 + $0x38] sm:$0xff]   ;;  %v7551_v27 = vld [vmem:[%s10088_s2 + $0x70] sm:$0xff]   ;;  %v7553_v38 = vld [vmem:[%s10088_s2 + $0x68] sm:$0xff]  }
  0x17   : > { %s5940_s20 = sshll.u32 %s10358_s15, 3  ;;  %v7552_v35 = vld [vmem:[%s10088_s2 + $0x30] sm:$0xff]   ;;  %v7554_v40 = vld [vmem:[%s10088_s2 + $0x28] sm:$0xff]   ;;  %v699_v0 = vadd.s32 8, %v8074_v63  ;;  %s7843_s15 = sshll.u32 %s7903_s14, 4  ;;  %s7844_s15 = int_to_ptr.vmem [resolvable:$false] %s7843_s15 }
  0x18   : > { %s8007_s23 = scalar_lea.vmem %s10086_s0, %s5940_s20  ;;  %v7581_v62 = vld [vmem:[%s10088_s2 + $0xc8] sm:$0xff]   ;;  %s5938_s20 = sshll.u32 %s270_s19, 8 }
  0x19   : > { %7342 = vmatpush3.bf16.msra.mxu0 %v7542_v1  ;;  %7492 = vmatpush3.bf16.msra.mxu1 %v7542_v1  ;;  %v282_v4 = vld [vmem:[%s8007_s23] sm:$0xff]  ;;  %v283_v5 = vld [vmem:[%s8007_s23 + $0x8] sm:$0xff]  ;;  %v284_v14 = vld [vmem:[%s8007_s23 + $0x10] sm:$0xff]  ;;  %v730_v1 = vcvt.s32.f32 %v8074_v63  ;;  %s9916_s21 = scalar_lea.vmem [#allocation4], %s5938_s20  ;;  %s7845_s16 = scalar_lea.vmem %s7844_s15, 8192 }
  0x1a   : > { %7343 = vmatprep.subr.bf16.mxu0 %v7543_v2  ;;  %7485 = vmatprep.subr.bf16.mxu1 %v7543_v2  ;;  %v314_v6 = vpack.c.bf16 %v283_v5, %v282_v4  ;;  %v298_v8 = vld [vmem:[%s8007_s23 + $0x80] sm:$0xff]  ;;  %v299_v9 = vld [vmem:[%s8007_s23 + $0x88] sm:$0xff]  ;;  %v285_v15 = vld [vmem:[%s8007_s23 + $0x18] sm:$0xff]  ;;  %v10110_v5 = vmov 0.0   ;;  %s5872_s29 = sshll.u32 %s9916_s21, 4  ;;  %s10040_s29 = int_to_ptr.vmem [resolvable:$true] %s5872_s29 }
  0x1b   : > { %v322_v10 = vpack.c.bf16 %v299_v9, %v298_v8  ;;  %v286_v16 = vld [vmem:[%s8007_s23 + $0x20] sm:$0xff]  ;;  %v287_v17 = vld [vmem:[%s8007_s23 + $0x28] sm:$0xff]  ;;  %v300_v18 = vld [vmem:[%s8007_s23 + $0x90] sm:$0xff]  ;;  %v315_v23 = vpack.c.bf16 %v285_v15, %v284_v14  ;;  %661 = vst [vmem:[#allocation2 + $0x10] sm:$0xff] %v10110_v5  ;;  %s7839_s28 = scalar_lea.vmem %s10040_s29, 4096  ;;  %p7846_p0 = scmp.lt.s32.totalorder %s10040_s29, %s7844_s15 }
  0x1c   : > { %7355 = vmatprep.mubr.bf16.mxu0 %v314_v6  ;;  %v301_v19 = vld [vmem:[%s8007_s23 + $0x98] sm:$0xff]  ;;  %v302_v20 = vld [vmem:[%s8007_s23 + $0xa0] sm:$0xff]  ;;  %v303_v21 = vld [vmem:[%s8007_s23 + $0xa8] sm:$0xff]  ;;  %v316_v25 = vpack.c.bf16 %v287_v17, %v286_v16  ;;  %659 = vst [vmem:[#allocation2] sm:$0xff] %v10110_v5  ;;  %p7840_p11 = scmp.ne.s32.totalorder %s10040_s29, %s7839_s28  ;;  %p7847_p1 = scmp.lt.s32.totalorder %s7845_s16, %s7839_s28 }
  0x1d   : > { %7344 = vmatpush3.bf16.msra.mxu0 %v7543_v2  ;;  %7493 = vmatpush3.bf16.msra.mxu1 %v7543_v2  ;;  %v323_v26 = vpack.c.bf16 %v301_v19, %v300_v18  ;;  %v324_v28 = vpack.c.bf16 %v303_v21, %v302_v20  ;;  %v288_v29 = vld [vmem:[%s8007_s23 + $0x30] sm:$0xff]  ;;  %v289_v30 = vld [vmem:[%s8007_s23 + $0x38] sm:$0xff]  ;;  %v290_v31 = vld [vmem:[%s8007_s23 + $0x40] sm:$0xff]  ;;  %v731_v2 = vcvt.s32.f32 %v699_v0  ;;  %660 = vst [vmem:[#allocation2 + $0x8] sm:$0xff] %v10110_v5  ;;  %v8185_v0 = vadd.s32 48, %v8074_v63 }
  0x1e   : > { %7345 = vmatprep.subr.bf16.mxu0 %v7544_v3  ;;  %7486 = vmatprep.subr.bf16.mxu1 %v7544_v3  ;;  %v291_v32 = vld [vmem:[%s8007_s23 + $0x48] sm:$0xff]  ;;  %v304_v33 = vld [vmem:[%s8007_s23 + $0xb0] sm:$0xff]  ;;  %v305_v34 = vld [vmem:[%s8007_s23 + $0xb8] sm:$0xff]  ;;  %v317_v39 = vpack.c.bf16 %v289_v30, %v288_v29  ;;  %694 = vst [vmem:[#allocation2 + $0x118] sm:$0xff] %v10110_v5  ;;  %p7841_p12 = pnand %p7840_p11, %p7984_p5  ;;  %p7848_p2 = por %p7847_p1, %p7846_p0 }
  0x1f   : > { %7371 = vmatprep.mubr.bf16.mxu1 %v322_v10  ;;  %v306_v36 = vld [vmem:[%s8007_s23 + $0xc0] sm:$0xff]  ;;  %v307_v37 = vld [vmem:[%s8007_s23 + $0xc8] sm:$0xff]  ;;  %v318_v41 = vpack.c.bf16 %v291_v32, %v290_v31  ;;  %v325_v42 = vpack.c.bf16 %v305_v34, %v304_v33  ;;  %v292_v44 = vld [vmem:[%s8007_s23 + $0x50] sm:$0xff]  ;;  %v763_v4 = vadd.f32 0.5, %v731_v2  ;;  %695 = vst [vmem:[#allocation2 + $0x120] sm:$0xff] %v10110_v5 }
  0x20   : > { %v326_v43 = vpack.c.bf16 %v307_v37, %v306_v36  ;;  %v293_v45 = vld [vmem:[%s8007_s23 + $0x58] sm:$0xff]  ;;  %v294_v46 = vld [vmem:[%s8007_s23 + $0x60] sm:$0xff]  ;;  %v295_v47 = vld [vmem:[%s8007_s23 + $0x68] sm:$0xff]  ;;  %696 = vst [vmem:[#allocation2 + $0x128] sm:$0xff] %v10110_v5  ;;  %p7842_p13 = pneg %p7841_p12 }
  0x21   : > { %7346 = vmatpush3.bf16.msra.mxu0 %v7544_v3  ;;  %7494 = vmatpush3.bf16.msra.mxu1 %v7544_v3  ;;  %v308_v48 = vld [vmem:[%s8007_s23 + $0xd0] sm:$0xff]  ;;  %v309_v49 = vld [vmem:[%s8007_s23 + $0xd8] sm:$0xff]  ;;  %v310_v50 = vld [vmem:[%s8007_s23 + $0xe0] sm:$0xff]  ;;  %v319_v52 = vpack.c.bf16 %v293_v45, %v292_v44  ;;  %v320_v53 = vpack.c.bf16 %v295_v47, %v294_v46  ;;  %v762_v3 = vadd.f32 0.5, %v730_v1  ;;  %v795_v9 = vmul.f32 0.0625, %v763_v4 }
  0x22   : > { %7347 = vmatprep.subr.bf16.mxu0 %v7545_v7  ;;  %7487 = vmatprep.subr.bf16.mxu1 %v7545_v7  ;;  %v311_v51 = vld [vmem:[%s8007_s23 + $0xe8] sm:$0xff]  ;;  %v327_v54 = vpack.c.bf16 %v309_v49, %v308_v48  ;;  %v296_v56 = vld [vmem:[%s8007_s23 + $0x70] sm:$0xff]  ;;  %v297_v57 = vld [vmem:[%s8007_s23 + $0x78] sm:$0xff]  ;;  %v8162_v46 = vadd.s32 24, %v8074_v63  ;;  %v8165_v47 = vadd.s32 40, %v8074_v63  ;;  %p7849_p3 = pnand %p7848_p2, %p7842_p13 }
  0x23   : > { %v328_v55 = vpack.c.bf16 %v311_v51, %v310_v50  ;;  %v312_v58 = vld [vmem:[%s8007_s23 + $0xf0] sm:$0xff]  ;;  %v313_v59 = vld [vmem:[%s8007_s23 + $0xf8] sm:$0xff]  ;;  %v321_v60 = vpack.c.bf16 %v297_v57, %v296_v56  ;;  %v7555_v6 = vld [vmem:[%s10088_s2 + $0x60] sm:$0xff]   ;;  %v794_v8 = vmul.f32 0.0625, %v762_v3 }
  0x24   : > { %v329_v61 = vpack.c.bf16 %v313_v59, %v312_v58  ;;  %v7557_v10 = vld [vmem:[%s10088_s2 + $0xf8] sm:$0xff]   ;;  %v7561_v16 = vld [vmem:[%s10088_s2 + $0xf0] sm:$0xff]   ;;  %v7568_v29 = vld [vmem:[%s10088_s2 + $0x8] sm:$0xff]  }
  0x25   : > { %7348 = vmatpush3.bf16.msra.mxu0 %v7545_v7  ;;  %7495 = vmatpush3.bf16.msra.mxu1 %v7545_v7  ;;  %v7556_v7 = vld [vmem:[%s10088_s2 + $0x20] sm:$0xff]   ;;  %v7559_v14 = vld [vmem:[%s10088_s2 + $0x58] sm:$0xff]   ;;  %v7562_v17 = vld [vmem:[%s10088_s2 + $0xb0] sm:$0xff]  }
  0x26   : > { %7349 = vmatprep.subr.bf16.mxu0 %v7546_v11  ;;  %7488 = vmatprep.subr.bf16.mxu1 %v7546_v11  ;;  %v7560_v15 = vld [vmem:[%s10088_s2 + $0x18] sm:$0xff]   ;;  %v7563_v20 = vld [vmem:[%s10088_s2 + $0x50] sm:$0xff]   ;;  %v7569_v30 = vld [vmem:[%s10088_s2 + $0xe0] sm:$0xff]  }
  0x27   : > { %v7564_v21 = vld [vmem:[%s10088_s2 + $0x10] sm:$0xff]   ;;  %v7570_v31 = vld [vmem:[%s10088_s2 + $0xa0] sm:$0xff]  }
  0x28   : > { %v1114_v32 = vld [vmem:[#allocation2 + $0x7] sm:$0xff]  ;;  %v1115_v33 = vld [vmem:[#allocation2 + $0xf] sm:$0xff] }
  0x29   : > { %7350 = vmatpush3.bf16.msra.mxu0 %v7546_v11  ;;  %7496 = vmatpush3.bf16.msra.mxu1 %v7546_v11  ;;  %v7558_v11 = vld [vmem:[%s10088_s2 + $0xb8] sm:$0xff]   ;;  %v1530_v49 = vld [vmem:[#allocation2 + $0x9] sm:$0xff] }
  0x2a   : > { %7351 = vmatprep.subr.bf16.mxu0 %v7547_v12  ;;  %7489 = vmatprep.subr.bf16.mxu1 %v7547_v12  ;;  %v7579_v57 = vld [vmem:[%s10088_s2 + $0x90] sm:$0xff]  }
  0x2d   : > { %7352 = vmatpush3.bf16.msra.mxu0 %v7547_v12  ;;  %7497 = vmatpush3.bf16.msra.mxu1 %v7547_v12  ;;  %v826_v12 = vfloor.f32 %v794_v8  ;;  %v736_v8 = vcvt.s32.f32 %v8185_v0 }
  0x2e   : > { %7353 = vmatprep.subr.bf16.mxu0 %v7548_v13  ;;  %7490 = vmatprep.subr.bf16.mxu1 %v7548_v13 }
  0x2f   : > { %v858_v18 = vmul.f32 16.0, %v826_v12 }
  0x31   : > { %7354 = vmatpush3.bf16.msra.mxu0 %v7548_v13  ;;  %7498 = vmatpush3.bf16.msra.mxu1 %v7548_v13  ;;  %v827_v13 = vfloor.f32 %v795_v9  ;;  %v8195_v9 = vadd.s32 56, %v8074_v63 }
  0x32   : > { %6843 = vmatprep.subr.bf16.mxu1 %v7549_v22  ;;  %6955 = vmatprep.subr.bf16.mxu0 %v7557_v10  ;;  %v7565_v22 = vld [vmem:[%s10088_s2 + $0xe8] sm:$0xff]   ;;  %v7585_v10 = vld [vmem:[%s10088_s2 + $0x80] sm:$0xff]  }
  0x33   : > { %v859_v19 = vmul.f32 16.0, %v827_v13 }
  0x34   : > { %7356 = vmatmul.mubr.bf16.vlgmr.msra.gmra.mxu0 %v315_v23  ;;  %7372 = vmatmul.mubr.bf16.vlgmr.msra.gmra.mxu1 %v323_v26  ;;  %v7566_v23 = vld [vmem:[%s10088_s2 + $0xa8] sm:$0xff]  }
  0x35   : > { %7359 = vmatprep.mubr.bf16.mxu0 %v316_v25  ;;  %7375 = vmatprep.mubr.bf16.mxu1 %v324_v28  ;;  %v8120_v25 = vsub.f32 %v731_v2, %v859_v19  ;;  %v7567_v26 = vld [vmem:[%s10088_s2 + $0x48] sm:$0xff]  }
  0x36   : > { %6844 = vmatpush3.bf16.msra.mxu1 %v7550_v24  ;;  %6956 = vmatpush3.bf16.msra.mxu0 %v7558_v11  ;;  %v890_v24 = vsub.f32 %v730_v1, %v858_v18  ;;  %v7583_v1 = vld [vmem:[%s10088_s2 + $0x88] sm:$0xff]   ;;  %v8201_v11 = vadd.s32 72, %v8074_v63  ;;  %v737_v18 = vcvt.s32.f32 %v8195_v9 }
  0x37   : > { %6845 = vmatprep.subr.bf16.mxu1 %v7551_v27  ;;  %6957 = vmatprep.subr.bf16.mxu0 %v7561_v16  ;;  %vm923_vm1 = vcmp.ge.f32.partialorder %v8120_v25, 0.5  ;;  %v768_v16 = vadd.f32 0.5, %v736_v8  ;;  %vm1019_vm4 = vcmp.le.f32.partialorder %v8120_v25, 14.5 }
  0x38   : > { %vm922_vm0 = vcmp.ge.f32.partialorder %v890_v24, 0.5  ;;  %v8130_v28 = vsel %vm923_vm1, 1.0, %v10110_v5  ;;  %vm1018_vm2 = vcmp.le.f32.partialorder %v890_v24, 14.5  ;;  %v739_v19 = vcvt.s32.f32 %v8201_v11 }
  0x39   : > { %v8127_v27 = vsel %vm922_vm0, 1.0, %v10110_v5  ;;  %v8159_v44 = vsel %vm1018_vm2, 1.0, %v10110_v5 }
  0x3a   : > { %6846 = vmatpush3.bf16.msra.mxu1 %v7552_v35  ;;  %6958 = vmatpush3.bf16.msra.mxu0 %v7562_v17  ;;  %v1146_v34 = vmul.f32 %v8127_v27, %v1114_v32  ;;  %v1147_v35 = vmul.f32 %v8130_v28, %v1115_v33  ;;  %v1562_v50 = vmul.f32 %v8159_v44, %v1530_v49  ;;  %v8206_v17 = vadd.s32 64, %v8074_v63 }
  0x3b   : > { %6847 = vmatprep.subr.bf16.mxu1 %v7553_v38  ;;  %6959 = vmatprep.subr.bf16.mxu0 %v7565_v22  ;;  %v7902_v38 = vmov 0.0|0.0   ;;  %v8220_v32 = vsub.s32 0, %v8074_v63  ;;  %v771_v33 = vadd.f32 0.5, %v739_v19 }
  0x3c   : > { %7360 = vmatmul.mubr.bf16.gmra.mxu0 %v317_v39  ;;  %7376 = vmatmul.mubr.bf16.gmra.mxu1 %v325_v42  ;;  %v6530_v36 = vpack.c.bf16 %v1146_v34, %v1146_v34  ;;  %v6531_v37 = vpack.c.bf16 %v1147_v35, %v1147_v35  ;;  %1498 = vst [vmem:[#allocation3 + $0x4] sm:$0xf] %v7902_v38  ;;  %1499 = vst [vmem:[#allocation3 + $0x28] sm:$0xf] %v7902_v38  ;;  %v7571_v39 = vld [vmem:[%s10088_s2 + $0x40] sm:$0xff]   ;;  %v7577_v42 = vld [vmem:[%s10088_s2 + $0x98] sm:$0xff]  }
  0x3d   : > { %7363 = vmatprep.mubr.bf16.mxu0 %v318_v41  ;;  %7379 = vmatprep.mubr.bf16.mxu1 %v326_v43  ;;  %v7573_v41 = vld [vmem:[%s10088_s2 + $0xd8] sm:$0xff]   ;;  %v8156_v43 = vadd.s32 16, %v8074_v63  ;;  %v6594_v56 = vpack.c.bf16 %v1562_v50, %v1562_v50  ;;  %10153 = vst [vmem:[#allocation7_spill] sm:$0xff] %v8220_v32  ;;  %v8226_v35 = vadd.s32 96, %v8074_v63  ;;  %v803_v50 = vmul.f32 0.0625, %v771_v33 }
  0x3e   : > { %6848 = vmatpush3.bf16.msra.mxu1 %v7554_v40  ;;  %6960 = vmatpush3.bf16.msra.mxu0 %v7566_v23  ;;  %1306 = vst [vmem:[#allocation3] sm:$0xf] %v6530_v36  ;;  %1307 = vst [vmem:[#allocation3 + $0x24] sm:$0xf] %v6531_v37  ;;  %v7572_v40 = vld [vmem:[%s10088_s2] sm:$0xff]   ;;  %v8232_v37 = vsub.s32 1, %v8074_v63 }
  0x3f   : > { %6849 = vmatprep.subr.bf16.mxu1 %v7555_v6  ;;  %6961 = vmatprep.subr.bf16.mxu0 %v7569_v30  ;;  %v732_v51 = vcvt.s32.f32 %v8156_v43  ;;  %1722 = vst [vmem:[#allocation3 + $0x8] sm:$0xf] %v6594_v56  ;;  %v769_v30 = vadd.f32 0.5, %v737_v18  ;;  %v281_v36 = vld [vmem:[%s10090_s4] sm:$0x3]  ;;  %v7580_v43 = vld [vmem:[%s10088_s2 + $0x178] sm:$0xff]  }
  0x40   : > { %10154 = vst [vmem:[#allocation8_spill] sm:$0xff] %v8232_v37  ;;  %v8248_v49 = vrot.slane %v281_v36, %v8220_v32 }
  0x41   : > { %v764_v58 = vadd.f32 0.5, %v732_v51 }
  0x42   : > { %6850 = vmatpush3.bf16.msra.mxu1 %v7556_v7  ;;  %6962 = vmatpush3.bf16.msra.mxu0 %v7570_v31  ;;  %v7584_v7 = vld [vmem:[%s10088_s2 + $0xc0] sm:$0xff]   ;;  %v8217_v31 = vadd.s32 88, %v8074_v63 }
  0x43   : > { %6851 = vmatprep.subr.bf16.mxu1 %v7559_v14  ;;  %6963 = vmatprep.subr.bf16.mxu0 %v7573_v41  ;;  %v7576_v48 = vld [vmem:[#allocation3 + $0x4] ss:$36 sps:$4 sm:$0xff]   ;;  %v796_v2 = vmul.f32 0.0625, %v764_v58 }
  0x44   : > { %7364 = vmatmul.mubr.bf16.gmra.mxu0 %v319_v52  ;;  %7380 = vmatmul.mubr.bf16.gmra.mxu1 %v327_v54  ;;  %v8170_v52 = vadd.s32 32, %v8074_v63  ;;  %v735_v54 = vcvt.s32.f32 %v8165_v47  ;;  %v801_v47 = vmul.f32 0.0625, %v769_v30 }
  0x45   : > { %7367 = vmatprep.mubr.bf16.mxu0 %v320_v53  ;;  %7383 = vmatprep.mubr.bf16.mxu1 %v328_v55  ;;  %v7574_v45 = vld [vmem:[#allocation3] ss:$36 sps:$4 sm:$0xff]   ;;  %v733_v53 = vcvt.s32.f32 %v8162_v46  ;;  %v828_v12 = vfloor.f32 %v796_v2 }
  0x46   : > { %6852 = vmatpush3.bf16.msra.mxu1 %v7560_v15  ;;  %6964 = vmatpush3.bf16.msra.mxu0 %v7577_v42  ;;  %v7578_v55 = vld [vmem:[%s10088_s2 + $0xd0] sm:$0xff]   ;;  %v734_v59 = vcvt.s32.f32 %v8170_v52  ;;  %v742_v52 = vcvt.s32.f32 %v8226_v35  ;;  %v7610_v35 = vld [vmem:[%s10088_s2 + $0x168] sm:$0xff]  }
  0x47   : > { %6853 = vmatprep.subr.bf16.mxu1 %v7563_v20  ;;  %6965 = vmatprep.subr.bf16.mxu0 %v7578_v55  ;;  %v8211_v20 = vadd.s32 80, %v8074_v63 }
  0x48   : > { %v766_v3 = vadd.f32 0.5, %v734_v59  ;;  %v774_v2 = vadd.f32 0.5, %v742_v52 }
  0x49   : > { %v740_v34 = vcvt.s32.f32 %v8211_v20 }
  0x4a   : > { %6854 = vmatpush3.bf16.msra.mxu1 %v7564_v21  ;;  %6966 = vmatpush3.bf16.msra.mxu0 %v7579_v57  ;;  %v798_v13 = vmul.f32 0.0625, %v766_v3  ;;  %v860_v21 = vmul.f32 16.0, %v828_v12  ;;  %v8268_v3 = vadd.s32 112, %v8074_v63 }
  0x4b   : > { %6855 = vmatprep.subr.bf16.mxu1 %v7567_v26  ;;  %6967 = vmatprep.subr.bf16.mxu0 %v7581_v62  ;;  %v800_v26 = vmul.f32 0.0625, %v768_v16  ;;  %v835_v62 = vfloor.f32 %v803_v50 }
  0x4c   : > { %7368 = vmatmul.mubr.bf16.gmra.mxu0 %v321_v60  ;;  %7384 = vmatmul.mubr.bf16.gmra.mxu1 %v329_v61  ;;  %v765_v60 = vadd.f32 0.5, %v733_v53  ;;  %v767_v61 = vadd.f32 0.5, %v735_v54  ;;  %v830_v22 = vfloor.f32 %v798_v13  ;;  %v892_v38 = vsub.f32 %v732_v51, %v860_v21 }
  0x4d   : > { %4539 = vmatprep.mubr.bf16.mxu1 %v7576_v48  ;;  %v741_v48 = vcvt.s32.f32 %v8217_v31  ;;  %v772_v51 = vadd.f32 0.5, %v740_v34  ;;  %v867_v21 = vmul.f32 16.0, %v835_v62 }
  0x4e   : > { %6856 = vmatpush3.bf16.msra.mxu1 %v7568_v29  ;;  %6968 = vmatpush3.bf16.msra.mxu0 %v7583_v1  ;;  %v797_v4 = vmul.f32 0.0625, %v765_v60  ;;  %v799_v6 = vmul.f32 0.0625, %v767_v61  ;;  %v738_v29 = vcvt.s32.f32 %v8206_v17  ;;  %vm924_vm3 = vcmp.ge.f32.partialorder %v892_v38, 0.5 }
  0x4f   : > { %6857 = vmatprep.subr.bf16.mxu1 %v7571_v39  ;;  %6969 = vmatprep.subr.bf16.mxu0 %v7584_v7  ;;  %v8235_v39 = vadd.s32 104, %v8074_v63  ;;  %vm1020_vm7 = vcmp.le.f32.partialorder %v892_v38, 14.5  ;;  %v833_v60 = vfloor.f32 %v801_v47  ;;  %v773_v61 = vadd.f32 0.5, %v741_v48 }
  0x50   : > { %v829_v14 = vfloor.f32 %v797_v4  ;;  %v831_v15 = vfloor.f32 %v799_v6  ;;  %v770_v46 = vadd.f32 0.5, %v738_v29  ;;  %v804_v1 = vmul.f32 0.0625, %v772_v51 }
  0x51   : > { %v743_v55 = vcvt.s32.f32 %v8235_v39  ;;  %v8277_v4 = vsel %vm1019_vm4, 1.0, %v10110_v5  ;;  %v8282_v7 = vadd.s32 120, %v8074_v63  ;;  %v8296_v25 = vsel %vm1020_vm7, 1.0, %v10110_v5 }
  0x52   : > { %6858 = vmatpush3.bf16.msra.mxu1 %v7572_v40  ;;  %6970 = vmatpush3.bf16.msra.mxu0 %v7585_v10  ;;  %v861_v23 = vmul.f32 16.0, %v829_v14  ;;  %v863_v24 = vmul.f32 16.0, %v831_v15  ;;  %v862_v40 = vmul.f32 16.0, %v830_v22  ;;  %v802_v58 = vmul.f32 0.0625, %v770_v46 }
  0x53   : > { %7067 = vmatprep.subr.bf16.mxu1 %v7580_v43  ;;  %v775_v6 = vadd.f32 0.5, %v743_v55  ;;  %v865_v15 = vmul.f32 16.0, %v833_v60  ;;  %v805_v16 = vmul.f32 0.0625, %v773_v61  ;;  %v836_v22 = vfloor.f32 %v804_v1 }
  0x54   : > { %v8237_v41 = vsub.f32 %v733_v53, %v861_v23  ;;  %v8239_v42 = vsub.f32 %v735_v54, %v863_v24  ;;  %v7582_v53 = vld [vmem:[%s10088_s2 + $0x138] sm:$0xff]   ;;  %v8257_v54 = vrot.slane %v281_v36, %v8232_v37  ;;  %v894_v56 = vsub.f32 %v734_v59, %v862_v40 }
  0x55   : > { %4540 = vmatmul.mubr.bf16.vlgmr.msra.gmra.mxu1 %v7574_v45  ;;  %v832_v45 = vfloor.f32 %v800_v26  ;;  %v8272_v59 = vsel %vm924_vm3, 1.0, %v10110_v5  ;;  %v834_v14 = vfloor.f32 %v802_v58  ;;  %v806_v23 = vmul.f32 0.0625, %v774_v2  ;;  %v7596_v26 = vld [vmem:[%s10088_s2 + $0x170] sm:$0xff]  }
  0x56   : > { %vm925_vm5 = vcmp.ge.f32.partialorder %v8237_v41, 0.5  ;;  %vm927_vm6 = vcmp.ge.f32.partialorder %v8239_v42, 0.5  ;;  %7068 = vmatpush3.bf16.msra.mxu1 %v7582_v53  ;;  %vm1022_vm8 = vcmp.le.f32.partialorder %v894_v56, 14.5  ;;  %v744_v24 = vcvt.s32.f32 %v8268_v3 }
  0x57   : > { %v864_v57 = vmul.f32 16.0, %v832_v45  ;;  %v8287_v10 = vsel %vm925_vm5, 1.0, %v10110_v5  ;;  %v8292_v12 = vsel %vm927_vm6, 1.0, %v10110_v5  ;;  %v8305_v30 = vsel %vm1022_vm8, 1.0, %v10110_v5  ;;  %7069 = vmatprep.subr.bf16.mxu1 %v7596_v26 }
  0x58   : > { %vm926_vm9 = vcmp.ge.f32.partialorder %v894_v56, 0.5  ;;  %v807_v33 = vmul.f32 0.0625, %v775_v6  ;;  %v745_v0 = vcvt.s32.f32 %v8282_v7  ;;  %vm1021_vm10 = vcmp.le.f32.partialorder %v8237_v41, 14.5 }
  0x59   : > { %v896_v13 = vsub.f32 %v736_v8, %v864_v57  ;;  %v7599_v8 = vld [vmem:[%s10088_s2 + $0x130] sm:$0xff]   ;;  %vm1023_vm11 = vcmp.le.f32.partialorder %v8239_v42, 14.5  ;;  %v8314_v36 = vadd.s32 128, %v8074_v63  ;;  %v8317_v38 = vadd.s32 136, %v8074_v63 }
  0x5a   : > { %v866_v40 = vmul.f32 16.0, %v834_v14  ;;  %v897_v43 = vsub.f32 %v737_v18, %v865_v15  ;;  %v837_v45 = vfloor.f32 %v805_v16  ;;  %7070 = vmatpush3.bf16.msra.mxu1 %v7599_v8  ;;  %v899_v46 = vsub.f32 %v739_v19, %v867_v21 }
  0x5b   : > { %vm928_vm12 = vcmp.ge.f32.partialorder %v896_v13, 0.5  ;;  %v868_v41 = vmul.f32 16.0, %v836_v22  ;;  %v838_v47 = vfloor.f32 %v806_v23  ;;  %v776_v50 = vadd.f32 0.5, %v744_v24  ;;  %7071 = vmatprep.subr.bf16.mxu1 %v7610_v35 }
  0x5c   : > { %v8327_v51 = vsel %vm926_vm9, 1.0, %v10110_v5  ;;  %v8330_v53 = vsel %vm1021_vm10, 1.0, %v10110_v5  ;;  %v839_v57 = vfloor.f32 %v807_v33  ;;  %v777_v9 = vadd.f32 0.5, %v745_v0 }
  0x5d   : > { %v8337_v11 = vsel %vm1023_vm11, 1.0, %v10110_v5  ;;  %vm1024_vm13 = vcmp.le.f32.partialorder %v896_v13, 14.5  ;;  %v746_v18 = vcvt.s32.f32 %v8314_v36  ;;  %v747_v19 = vcvt.s32.f32 %v8317_v38 }
  0x5e   : > { %v8343_v56 = vsel %vm928_vm12, 1.0, %v10110_v5  ;;  %v898_v58 = vsub.f32 %v738_v29, %v866_v40  ;;  %vm929_vm14 = vcmp.ge.f32.partialorder %v897_v43, 0.5  ;;  %v869_v60 = vmul.f32 16.0, %v837_v45  ;;  %v7613_v40 = vld [vmem:[%s10088_s2 + $0x128] sm:$0xff]  }
  0x5f   : > { %vm931_vm15 = vcmp.ge.f32.partialorder %v899_v46, 0.5  ;;  %v900_v42 = vsub.f32 %v740_v34, %v868_v41  ;;  %v870_v61 = vmul.f32 16.0, %v838_v47  ;;  %v808_v62 = vmul.f32 0.0625, %v776_v50  ;;  %7072 = vmatpush3.bf16.msra.mxu1 %v7613_v40 }
  0x60   : > { %v8350_v1 = vsel %vm1024_vm13, 1.0, %v10110_v5  ;;  %v871_v2 = vmul.f32 16.0, %v839_v57  ;;  %v809_v6 = vmul.f32 0.0625, %v777_v9  ;;  %v8353_v13 = vadd.s32 144, %v8074_v63 }
  0x61   : > { %v8356_v14 = vsel %vm929_vm14, 1.0, %v10110_v5  ;;  %vm1026_vm0 = vcmp.le.f32.partialorder %v898_v58, 14.5  ;;  %v778_v17 = vadd.f32 0.5, %v746_v18  ;;  %v779_v20 = vadd.f32 0.5, %v747_v19 }
  0x62   : > { %v8363_v29 = vsel %vm931_vm15, 1.0, %v10110_v5  ;;  %vm930_vm1 = vcmp.ge.f32.partialorder %v898_v58, 0.5  ;;  %vm1025_vm2 = vcmp.le.f32.partialorder %v897_v43, 14.5  ;;  %v901_v34 = vsub.f32 %v741_v48, %v869_v60 }
  0x63   : > { %vm932_vm3 = vcmp.ge.f32.partialorder %v900_v42, 0.5  ;;  %vm1027_vm4 = vcmp.le.f32.partialorder %v899_v46, 14.5  ;;  %v902_v15 = vsub.f32 %v742_v52, %v870_v61  ;;  %v840_v16 = vfloor.f32 %v808_v62 }
  0x64   : > { %v8370_v21 = vsel %vm1026_vm0, 1.0, %v10110_v5  ;;  %v903_v22 = vsub.f32 %v743_v55, %v871_v2  ;;  %v841_v23 = vfloor.f32 %v809_v6  ;;  %v10098_v26 = vcvt.s32.f32 %v8353_v13 }
  0x65   : > { %v8376_v33 = vsel %vm930_vm1, 1.0, %v10110_v5  ;;  %v810_v31 = vmul.f32 0.0625, %v778_v17  ;;  %v811_v48 = vmul.f32 0.0625, %v779_v20  ;;  %v8379_v8 = vadd.s32 152, %v8074_v63 }
  0x66   : > { %v8385_v52 = vsel %vm1025_vm2, 1.0, %v10110_v5  ;;  %v8388_v39 = vsel %vm932_vm3, 1.0, %v10110_v5  ;;  %v8391_v55 = vsel %vm1027_vm4, 1.0, %v10110_v5  ;;  %vm933_vm5 = vcmp.ge.f32.partialorder %v901_v34, 0.5 }
  0x67   : > { %vm1028_vm6 = vcmp.le.f32.partialorder %v900_v42, 14.5  ;;  %vm934_vm7 = vcmp.ge.f32.partialorder %v902_v15, 0.5  ;;  %v872_v43 = vmul.f32 16.0, %v840_v16  ;;  %v8397_v45 = vadd.s32 160, %v8074_v63 }
  0x68   : > { %vm935_vm8 = vcmp.ge.f32.partialorder %v903_v22, 0.5  ;;  %v873_v46 = vmul.f32 16.0, %v841_v23  ;;  %v780_v41 = vadd.f32 0.5, %v10098_v26  ;;  %v8402_v47 = vadd.s32 168, %v8074_v63 }
  0x69   : > { %v8405_v50 = vsel %vm933_vm5, 1.0, %v10110_v5  ;;  %v842_v57 = vfloor.f32 %v810_v31  ;;  %v843_v9 = vfloor.f32 %v811_v48  ;;  %v10095_v58 = vcvt.s32.f32 %v8379_v8 }
  0x6a   : > { %10155 = vst [vmem:[#allocation9_spill] sm:$0xff] %v8405_v50  ;;  %vm1030_vm9 = vcmp.le.f32.partialorder %v902_v15, 14.5  ;;  %v8409_v60 = vsel %vm1028_vm6, 1.0, %v10110_v5  ;;  %v8412_v42 = vsel %vm934_vm7, 1.0, %v10110_v5  ;;  %v8415_v61 = vadd.s32 176, %v8074_v63 }
  0x6b   : > { %10156 = vst [vmem:[#allocation10_spill] sm:$0xff] %v8409_v60  ;;  %10157 = vst [vmem:[#allocation11_spill] sm:$0xff] %v8412_v42  ;;  %v8418_v62 = vsel %vm935_vm8, 1.0, %v10110_v5  ;;  %vm1029_vm10 = vcmp.le.f32.partialorder %v901_v34, 14.5  ;;  %v904_v2 = vsub.f32 %v744_v24, %v872_v43  ;;  %v10094_v6 = vcvt.s32.f32 %v8397_v45 }
  0x6c   : > { %10158 = vst [vmem:[#allocation12_spill] sm:$0xff] %v8418_v62  ;;  %vm1031_vm11 = vcmp.le.f32.partialorder %v903_v22, 14.5  ;;  %v905_v17 = vsub.f32 %v745_v0, %v873_v46  ;;  %v812_v20 = vmul.f32 0.0625, %v780_v41  ;;  %v10096_v15 = vcvt.s32.f32 %v8402_v47 }
  0x6d   : > { %v8427_v16 = vsel %vm1030_vm9, 1.0, %v10110_v5  ;;  %v874_v23 = vmul.f32 16.0, %v842_v57  ;;  %v875_v31 = vmul.f32 16.0, %v843_v9  ;;  %v781_v34 = vadd.f32 0.5, %v10095_v58 }
  0x6e   : > { %10159 = vst [vmem:[#allocation13_spill] sm:$0xff] %v8427_v16  ;;  %v8432_v3 = vsel %vm1029_vm10, 1.0, %v10110_v5  ;;  %v10097_v24 = vcvt.s32.f32 %v8415_v61  ;;  %v8436_v22 = vadd.s32 184, %v8074_v63  ;;  %v8439_v7 = vadd.s32 200, %v8074_v63 }
  0x6f   : > { %10160 = vst [vmem:[#allocation14_spill] sm:$0xff] %v8432_v3  ;;  %vm936_vm12 = vcmp.ge.f32.partialorder %v904_v2, 0.5  ;;  %v8442_v0 = vsel %vm1031_vm11, 1.0, %v10110_v5  ;;  %v782_v48 = vadd.f32 0.5, %v10094_v6  ;;  %v8447_v35 = vadd.s32 192, %v8074_v63 }
  0x70   : > { %10161 = vst [vmem:[#allocation15_spill] sm:$0xff] %v8442_v0  ;;  %vm937_vm13 = vcmp.ge.f32.partialorder %v905_v17, 0.5  ;;  %vm1032_vm14 = vcmp.le.f32.partialorder %v904_v2, 14.5  ;;  %v844_v40 = vfloor.f32 %v812_v20  ;;  %v783_v43 = vadd.f32 0.5, %v10096_v15  ;;  %v7624_v20 = vld [vmem:[%s10088_s2 + $0x160] sm:$0xff]  }
  0x71   : > { %v906_v46 = vsub.f32 %v746_v18, %v874_v23  ;;  %v907_v41 = vsub.f32 %v747_v19, %v875_v31  ;;  %vm1033_vm15 = vcmp.le.f32.partialorder %v905_v17, 14.5  ;;  %v813_v57 = vmul.f32 0.0625, %v781_v34  ;;  %7073 = vmatprep.subr.bf16.mxu1 %v7624_v20 }
  0x72   : > { %v784_v9 = vadd.f32 0.5, %v10097_v24  ;;  %v10101_v6 = vcvt.s32.f32 %v8436_v22  ;;  %v8463_v15 = vadd.s32 208, %v8074_v63  ;;  %v8467_v36 = vsel %vm936_vm12, 1.0, %v10110_v5 }
  0x73   : > { %10162 = vst [vmem:[#allocation16_spill] sm:$0xff] %v8467_v36  ;;  %v8470_v38 = vsel %vm937_vm13, 1.0, %v10110_v5  ;;  %v814_v18 = vmul.f32 0.0625, %v782_v48  ;;  %v8475_v23 = vsel %vm1032_vm14, 1.0, %v10110_v5  ;;  %v876_v31 = vmul.f32 16.0, %v844_v40  ;;  %v7627_v40 = vld [vmem:[%s10088_s2 + $0x120] sm:$0xff]  }
  0x74   : > { %10163 = vst [vmem:[#allocation17_spill] sm:$0xff] %v8470_v38  ;;  %10164 = vst [vmem:[#allocation18_spill] sm:$0xff] %v8475_v23  ;;  %v815_v34 = vmul.f32 0.0625, %v783_v43  ;;  %vm939_vm0 = vcmp.ge.f32.partialorder %v907_v41, 0.5  ;;  %vm1034_vm1 = vcmp.le.f32.partialorder %v906_v46, 14.5  ;;  %v8480_v26 = vsel %vm1033_vm15, 1.0, %v10110_v5  ;;  %7074 = vmatpush3.bf16.msra.mxu1 %v7627_v40 }
  0x75   : > { %10165 = vst [vmem:[#allocation19_spill] sm:$0xff] %v8480_v26  ;;  %v845_v58 = vfloor.f32 %v813_v57  ;;  %vm938_vm2 = vcmp.ge.f32.partialorder %v906_v46, 0.5  ;;  %v816_v48 = vmul.f32 0.0625, %v784_v9  ;;  %v785_v19 = vadd.f32 0.5, %v10101_v6 }
  0x76   : > { %v10166_v2 = vcvt.s32.f32 %v8439_v7  ;;  %v846_v43 = vfloor.f32 %v814_v18  ;;  %v10167_v20 = vcvt.s32.f32 %v8447_v35  ;;  %v8492_v17 = vadd.s32 216, %v8074_v63 }
  0x77   : > { %v8495_v57 = vadd.s32 224, %v8074_v63  ;;  %v8498_v9 = vsel %vm939_vm0, 1.0, %v10110_v5  ;;  %v10168_v6 = vcvt.s32.f32 %v8353_v13  ;;  %v847_v32 = vfloor.f32 %v815_v34 }
  0x78   : > { %v787_v37 = vadd.f32 0.5, %v10166_v2  ;;  %v786_v24 = vadd.f32 0.5, %v10167_v20  ;;  %v10169_v26 = vcvt.s32.f32 %v8463_v15  ;;  %v8506_v18 = vsel %vm1034_vm1, 1.0, %v10110_v5 }
  0x79   : > { %v908_v2 = vsub.f32 %v10168_v6, %v876_v31  ;;  %v8509_v20 = vsel %vm938_vm2, 1.0, %v10110_v5  ;;  %vm1035_vm3 = vcmp.le.f32.partialorder %v907_v41, 14.5  ;;  %v877_v38 = vmul.f32 16.0, %v845_v58 }
  0x7a   : > { %v788_v23 = vadd.f32 0.5, %v10169_v26  ;;  %10170 = vst [vmem:[#allocation20_spill] sm:$0xff] %v8509_v20  ;;  %v848_v0 = vfloor.f32 %v816_v48  ;;  %v817_v36 = vmul.f32 0.0625, %v785_v19  ;;  %v819_v3 = vmul.f32 0.0625, %v787_v37 }
  0x7b   : > { %v8512_v13 = vadd.s32 232, %v8074_v63  ;;  %v878_v6 = vmul.f32 16.0, %v846_v43  ;;  %v818_v31 = vmul.f32 0.0625, %v786_v24  ;;  %v10115_v26 = vcvt.s32.f32 %v8492_v17 }
  0x7c   : > { %v10117_v34 = vcvt.s32.f32 %v8495_v57  ;;  %vm940_vm4 = vcmp.ge.f32.partialorder %v908_v2, 0.5  ;;  %v879_v46 = vmul.f32 16.0, %v847_v32  ;;  %v820_v40 = vmul.f32 0.0625, %v788_v23 }
  0x7d   : > { %v10116_v5 = vcvt.s32.f32 %v8512_v13  ;;  %v10171_v20 = vcvt.s32.f32 %v8379_v8  ;;  %vm1036_vm5 = vcmp.le.f32.partialorder %v908_v2, 14.5  ;;  %v789_v37 = vadd.f32 0.5, %v10115_v26  ;;  %v7638_v26 = vld [vmem:[%s10088_s2 + $0x1f8] sm:$0xff]  }
  0x7e   : > { %v790_v19 = vadd.f32 0.5, %v10117_v34  ;;  %v880_v24 = vmul.f32 16.0, %v848_v0  ;;  %v849_v48 = vfloor.f32 %v817_v36  ;;  %v851_v43 = vfloor.f32 %v819_v3  ;;  %v7640_v3 = vld [vmem:[%s10088_s2 + $0x158] sm:$0xff]   ;;  %7179 = vmatprep.subr.bf16.mxu0 %v7638_v26 }
  0x7f   : > { %v909_v58 = vsub.f32 %v10171_v20, %v877_v38  ;;  %v791_v42 = vadd.f32 0.5, %v10116_v5  ;;  %v10172_v32 = vmov 0.0   ;;  %v10174_v8 = vcvt.s32.f32 %v8397_v45  ;;  %7075 = vmatprep.subr.bf16.mxu1 %v7640_v3 }
  0x80   : > { %v8527_v23 = vsel %vm1035_vm3, 1.0, %v10172_v32  ;;  %v850_v20 = vfloor.f32 %v818_v31  ;;  %v821_v60 = vmul.f32 0.0625, %v789_v37  ;;  %v10175_v0 = vcvt.s32.f32 %v8402_v47 }
  0x81   : > { %10173 = vst [vmem:[#allocation21_spill] sm:$0xff] %v8527_v23  ;;  %v910_v38 = vsub.f32 %v10174_v8, %v878_v6  ;;  %v852_v5 = vfloor.f32 %v820_v40  ;;  %v822_v41 = vmul.f32 0.0625, %v790_v19  ;;  %v823_v34 = vmul.f32 0.0625, %v791_v42 }
  0x82   : > { %v911_v36 = vsub.f32 %v10175_v0, %v879_v46  ;;  %v8541_v45 = vsel %vm940_vm4, 1.0, %v10172_v32  ;;  %vm941_vm6 = vcmp.ge.f32.partialorder %v909_v58, 0.5  ;;  %v8545_v6 = vsel %vm1036_vm5, 1.0, %v10172_v32 }
  0x83   : > { %10176 = vst [vmem:[#allocation22_spill] sm:$0xff] %v8541_v45  ;;  %10177 = vst [vmem:[#allocation23_spill] sm:$0xff] %v8545_v6  ;;  %v8548_v31 = vadd.s32 240, %v8074_v63  ;;  %vm1038_vm7 = vcmp.le.f32.partialorder %v910_v38, 14.5  ;;  %v10178_v47 = vcvt.s32.f32 %v8415_v61  ;;  %v881_v40 = vmul.f32 16.0, %v849_v48 }
  0x84   : > { %v883_v42 = vmul.f32 16.0, %v851_v43  ;;  %vm942_vm8 = vcmp.ge.f32.partialorder %v910_v38, 0.5  ;;  %vm1037_vm9 = vcmp.le.f32.partialorder %v909_v58, 14.5  ;;  %v882_v37 = vmul.f32 16.0, %v850_v20 }
  0x85   : > { %v912_v46 = vsub.f32 %v10178_v47, %v880_v24  ;;  %v853_v19 = vfloor.f32 %v821_v60  ;;  %vm943_vm10 = vcmp.ge.f32.partialorder %v911_v36, 0.5  ;;  %v884_v8 = vmul.f32 16.0, %v852_v5  ;;  %v7643_v5 = vld [vmem:[%s10088_s2 + $0x118] sm:$0xff]  }
  0x86   : > { %v854_v2 = vfloor.f32 %v822_v41  ;;  %v855_v0 = vfloor.f32 %v823_v34  ;;  %v8554_v26 = vsel %vm941_vm6, 1.0, %v10172_v32  ;;  %v8557_v3 = vsel %vm1038_vm7, 1.0, %v10172_v32  ;;  %7076 = vmatpush3.bf16.msra.mxu1 %v7643_v5 }
  0x87   : > { %10179 = vst [vmem:[#allocation24_spill] sm:$0xff] %v8554_v26  ;;  %10180 = vst [vmem:[#allocation25_spill] sm:$0xff] %v8557_v3  ;;  %vm1039_vm11 = vcmp.le.f32.partialorder %v911_v36, 14.5  ;;  %v10119_v61 = vcvt.s32.f32 %v8548_v31  ;;  %vm944_vm12 = vcmp.ge.f32.partialorder %v912_v46, 0.5  ;;  %v10181_v24 = vcvt.s32.f32 %v8436_v22 }
  0x88   : > { %v10182_v60 = vcvt.s32.f32 %v8439_v7  ;;  %vm1040_vm13 = vcmp.le.f32.partialorder %v912_v46, 14.5  ;;  %v8568_v34 = vsel %vm943_vm10, 1.0, %v10172_v32  ;;  %v8572_v20 = vsel %vm942_vm8, 1.0, %v10172_v32 }
  0x89   : > { %v913_v48 = vsub.f32 %v10181_v24, %v881_v40  ;;  %10183 = vst [vmem:[#allocation26_spill] sm:$0xff] %v8568_v34  ;;  %v10184_v41 = vcvt.s32.f32 %v8447_v35  ;;  %v885_v22 = vmul.f32 16.0, %v853_v19  ;;  %v8578_v7 = vsel %vm1037_vm9, 1.0, %v10172_v32 }
  0x8a   : > { %v915_v43 = vsub.f32 %v10182_v60, %v883_v42  ;;  %10185 = vst [vmem:[#allocation27_spill] sm:$0xff] %v8578_v7  ;;  %v10186_v46 = vcvt.s32.f32 %v8463_v15  ;;  %v886_v42 = vmul.f32 16.0, %v854_v2  ;;  %v887_v24 = vmul.f32 16.0, %v855_v0 }
  0x8b   : > { %v914_v47 = vsub.f32 %v10184_v41, %v882_v37  ;;  %v8583_v60 = vsel %vm944_vm12, 1.0, %v10172_v32  ;;  %v8587_v38 = vsel %vm1039_vm11, 1.0, %v10172_v32  ;;  %v8590_v35 = vsel %vm1040_vm13, 1.0, %v10172_v32 }
  0x8c   : > { %v916_v40 = vsub.f32 %v10186_v46, %v884_v8  ;;  %10187 = vst [vmem:[#allocation28_spill] sm:$0xff] %v8583_v60  ;;  %10188 = vst [vmem:[#allocation29_spill] sm:$0xff] %v8587_v38  ;;  %v792_v58 = vadd.f32 0.5, %v10119_v61  ;;  %vm945_vm14 = vcmp.ge.f32.partialorder %v913_v48, 0.5  ;;  %vm947_vm15 = vcmp.ge.f32.partialorder %v915_v43, 0.5 }
  0x8d   : > { %10189 = vst [vmem:[#allocation30_spill] sm:$0xff] %v8590_v35  ;;  %vm1042_vm0 = vcmp.le.f32.partialorder %v914_v47, 14.5  ;;  %v8595_v15 = vadd.s32 248, %v8074_v63  ;;  %vm946_vm1 = vcmp.ge.f32.partialorder %v914_v47, 0.5  ;;  %vm1041_vm2 = vcmp.le.f32.partialorder %v913_v48, 14.5 }
  0x8e   : > { %vm1043_vm3 = vcmp.le.f32.partialorder %v915_v43, 14.5  ;;  %v10190_v37 = vcvt.s32.f32 %v8492_v17  ;;  %vm948_vm4 = vcmp.ge.f32.partialorder %v916_v40, 0.5  ;;  %v10191_v19 = vcvt.s32.f32 %v8495_v57 }
  0x8f   : > { %v10192_v2 = vcvt.s32.f32 %v8512_v13  ;;  %v10118_v5 = vcvt.s32.f32 %v8595_v15  ;;  %v8605_v41 = vsel %vm945_vm14, 1.0, %v10172_v32  ;;  %v8608_v63 = vsel %vm947_vm15, 1.0, %v10172_v32 }
  0x90   : > { %v917_v36 = vsub.f32 %v10190_v37, %v885_v22  ;;  %v918_v8 = vsub.f32 %v10191_v19, %v886_v42  ;;  %10193 = vst [vmem:[#allocation31_spill] sm:$0xff] %v8605_v41  ;;  %10194 = vst [vmem:[#allocation32_spill] sm:$0xff] %v8608_v63  ;;  %vm1044_vm5 = vcmp.le.f32.partialorder %v916_v40, 14.5  ;;  %v824_v48 = vmul.f32 0.0625, %v792_v58 }
  0x91   : > { %v919_v0 = vsub.f32 %v10192_v2, %v887_v24  ;;  %v8611_v17 = vsel %vm1042_vm0, 1.0, %v10172_v32  ;;  %v8614_v43 = vsel %vm946_vm1, 1.0, %v10172_v32  ;;  %v8617_v57 = vsel %vm1041_vm2, 1.0, %v10172_v32 }
  0x92   : > { %10195 = vst [vmem:[#allocation33_spill] sm:$0xff] %v8611_v17  ;;  %10196 = vst [vmem:[#allocation34_spill] sm:$0xff] %v8614_v43  ;;  %v793_v13 = vadd.f32 0.5, %v10118_v5  ;;  %v8622_v47 = vsel %vm948_vm4, 1.0, %v10172_v32  ;;  %v8625_v22 = vsel %vm1043_vm3, 1.0, %v10172_v32  ;;  %vm949_vm6 = vcmp.ge.f32.partialorder %v917_v36, 0.5 }
  0x93   : > { %10197 = vst [vmem:[#allocation35_spill] sm:$0xff] %v8617_v57  ;;  %10198 = vst [vmem:[#allocation36_spill] sm:$0xff] %v8622_v47  ;;  %vm1046_vm7 = vcmp.le.f32.partialorder %v918_v8, 14.5  ;;  %vm951_vm8 = vcmp.ge.f32.partialorder %v919_v0, 0.5  ;;  %v8628_v40 = vsel %vm1044_vm5, 1.0, %v10172_v32  ;;  %vm950_vm9 = vcmp.ge.f32.partialorder %v918_v8, 0.5 }
  0x94   : > { %10199 = vst [vmem:[#allocation37_spill] sm:$0xff] %v8625_v22  ;;  %10200 = vst [vmem:[#allocation38_spill] sm:$0xff] %v8628_v40  ;;  %v825_v42 = vmul.f32 0.0625, %v793_v13  ;;  %vm1045_vm10 = vcmp.le.f32.partialorder %v917_v36, 14.5  ;;  %v856_v37 = vfloor.f32 %v824_v48  ;;  %vm1047_vm11 = vcmp.le.f32.partialorder %v919_v0, 14.5  ;;  %v7656_v13 = vld [vmem:[%s10088_s2 + $0x150] sm:$0xff]  }
  0x95   : > { %v8633_v5 = vsel %vm949_vm6, 1.0, %v10172_v32  ;;  %v8636_v61 = vsel %vm1046_vm7, 1.0, %v10172_v32  ;;  %v8645_v47 = vsel %vm951_vm8, 1.0, %v10172_v32  ;;  %v8655_v57 = vsel %vm1045_vm10, 1.0, %v10172_v32  ;;  %7077 = vmatprep.subr.bf16.mxu1 %v7656_v13 }
  0x96   : > { %10201 = vst [vmem:[#allocation39_spill] sm:$0xff] %v8633_v5  ;;  %10202 = vst [vmem:[#allocation40_spill] sm:$0xff] %v8636_v61  ;;  %v857_v22 = vfloor.f32 %v825_v42  ;;  %v8663_v43 = vmul.f32 16.0, %v856_v37 }
  0x97   : > { %10203 = vst [vmem:[#allocation41_spill] sm:$0xff] %v8645_v47  ;;  %10205 = vst [vmem:[#allocation43_spill] sm:$0xff] %v8655_v57 }
  0x98   : > { %v8667_v57 = vmul.f32 16.0, %v857_v22 }
  0xf4   : > { %v7357_v46 = vpop.f32.mrf.mxu0  ;;  %v7373_v58 = vpop.f32.mrf.mxu1 }
  0xf5   : > { %v561_v24 = vmul.f32 %v7357_v46, %v8248_v49  ;;  %v577_v2 = vmul.f32 %v7373_v58, %v8248_v49  ;;  %v8649_v58 = vsel %vm950_vm9, 1.0, %v10172_v32 }
  0xf6   : > { %v428_v19 = vpop.f32.mrf.mxu0  ;;  %v492_v48 = vpop.f32.mrf.mxu1  ;;  %10204 = vst [vmem:[#allocation42_spill] sm:$0xff] %v8649_v58 }
  0xf7   : > { %v597_v46 = vadd.f32 %v8257_v54, %v561_v24  ;;  %v559_v40 = vmul.f32 %v8248_v49, %v428_v19  ;;  %v613_v42 = vadd.f32 %v8257_v54, %v577_v2  ;;  %v575_v61 = vmul.f32 %v8248_v49, %v492_v48 }
  0xf8   : > { %v7358_v5 = vpop.f32.mrf.mxu0  ;;  %v8659_v24 = vsel %vm1047_vm11, 1.0, %v10172_v32  ;;  %v7374_v58 = vpop.f32.mrf.mxu1  ;;  %v7659_v32 = vld [vmem:[%s10088_s2 + $0x110] sm:$0xff]  }
  0xf9   : > { %10206 = vst [vmem:[#allocation44_spill] sm:$0xff] %v8659_v24  ;;  %v629_v19 = vmax.f32 %v597_v46, 0.0  ;;  %v595_v47 = vadd.f32 %v8257_v54, %v559_v40  ;;  %v562_v8 = vmul.f32 %v7358_v5, %v8248_v49  ;;  %v645_v35 = vmax.f32 %v613_v42, 0.0  ;;  %7078 = vmatpush3.bf16.msra.mxu1 %v7659_v32 }
  0xfa   : > { %v431_v2 = vpop.f32.mrf.mxu0  ;;  %v611_v48 = vadd.f32 %v8257_v54, %v575_v61  ;;  %v578_v36 = vmul.f32 %v7374_v58, %v8248_v49  ;;  %v495_v13 = vpop.f32.mrf.mxu1 }
  0xfb   : > { %664 = vst [vmem:[#allocation2 + $0x28] sm:$0xff] %v629_v19  ;;  %v6566_v0 = vpack.c.bf16 %v629_v19, %v629_v19  ;;  %v627_v40 = vmax.f32 %v595_v47, 0.0  ;;  %v598_v5 = vadd.f32 %v8257_v54, %v562_v8  ;;  %v560_v37 = vmul.f32 %v8248_v49, %v431_v2  ;;  %680 = vst [vmem:[#allocation2 + $0xa8] sm:$0xff] %v645_v35 }
  0xfc   : > { %v7361_v46 = vpop.f32.mrf.mxu0  ;;  %v6582_v42 = vpack.c.bf16 %v645_v35, %v645_v35  ;;  %v643_v61 = vmax.f32 %v611_v48, 0.0  ;;  %v614_v58 = vadd.f32 %v8257_v54, %v578_v36  ;;  %v576_v22 = vmul.f32 %v8248_v49, %v495_v13  ;;  %v7377_v24 = vpop.f32.mrf.mxu1 }
  0xfd   : > { %1502 = vst [vmem:[#allocation3 + $0x94] sm:$0xf] %v6566_v0  ;;  %2140 = vst [vmem:[#allocation3 + $0x58] sm:$0xf] %v6566_v0  ;;  %v6564_v19 = vpack.c.bf16 %v627_v40, %v627_v40  ;;  %v630_v47 = vmax.f32 %v598_v5, 0.0  ;;  %v596_v8 = vadd.f32 %v8257_v54, %v560_v37  ;;  %v565_v2 = vmul.f32 %v7361_v46, %v8248_v49 }
  0xfe   : > { %2778 = vst [vmem:[#allocation3 + $0x1c] sm:$0xf] %v6566_v0  ;;  %662 = vst [vmem:[#allocation2 + $0x18] sm:$0xff] %v627_v40  ;;  %v444_v41 = vpop.f32.mrf.mxu0  ;;  %v6580_v35 = vpack.c.bf16 %v643_v61, %v643_v61  ;;  %v646_v48 = vmax.f32 %v614_v58, 0.0  ;;  %v612_v36 = vadd.f32 %v8257_v54, %v576_v22  ;;  %v581_v32 = vmul.f32 %v7377_v24, %v8248_v49  ;;  %v508_v13 = vpop.f32.mrf.mxu1 }
  0xff   : > { %1518 = vst [vmem:[#allocation3 + $0x2d4] sm:$0xf] %v6582_v42  ;;  %2156 = vst [vmem:[#allocation3 + $0x298] sm:$0xf] %v6582_v42  ;;  %v6567_v0 = vpack.c.bf16 %v630_v47, %v630_v47  ;;  %v628_v40 = vmax.f32 %v596_v8, 0.0  ;;  %v601_v5 = vadd.f32 %v8257_v54, %v565_v2  ;;  %v563_v37 = vmul.f32 %v8248_v49, %v444_v41 }
 0x100   : > { %2794 = vst [vmem:[#allocation3 + $0x25c] sm:$0xf] %v6582_v42  ;;  %678 = vst [vmem:[#allocation2 + $0x98] sm:$0xff] %v643_v61  ;;  %v7362_v46 = vpop.f32.mrf.mxu0  ;;  %v6583_v42 = vpack.c.bf16 %v646_v48, %v646_v48  ;;  %v644_v61 = vmax.f32 %v612_v36, 0.0  ;;  %v617_v58 = vadd.f32 %v8257_v54, %v581_v32  ;;  %v579_v24 = vmul.f32 %v8248_v49, %v508_v13  ;;  %v7378_v8 = vpop.f32.mrf.mxu1 }
 0x101   : > { %1500 = vst [vmem:[#allocation3 + $0x4c] sm:$0xf] %v6564_v19  ;;  %2138 = vst [vmem:[#allocation3 + $0x10] sm:$0xf] %v6564_v19  ;;  %v6565_v22 = vpack.c.bf16 %v628_v40, %v628_v40  ;;  %v633_v19 = vmax.f32 %v601_v5, 0.0  ;;  %v599_v41 = vadd.f32 %v8257_v54, %v563_v37  ;;  %v582_v32 = vmul.f32 %v7378_v8, %v8248_v49 }
 0x102   : > { %665 = vst [vmem:[#allocation2 + $0x30] sm:$0xff] %v630_v47  ;;  %1516 = vst [vmem:[#allocation3 + $0x28c] sm:$0xf] %v6580_v35  ;;  %v566_v47 = vmul.f32 %v7362_v46, %v8248_v49  ;;  %v447_v2 = vpop.f32.mrf.mxu0  ;;  %v615_v36 = vadd.f32 %v8257_v54, %v579_v24  ;;  %v511_v37 = vpop.f32.mrf.mxu1  ;;  %v10207_v13 = vcvt.s32.f32 %v8548_v31  ;;  %v10209_v31 = vcvt.s32.f32 %v8595_v15 }
 0x103   : > { %2154 = vst [vmem:[#allocation3 + $0x250] sm:$0xf] %v6580_v35  ;;  %2792 = vst [vmem:[#allocation3 + $0x214] sm:$0xf] %v6580_v35  ;;  %v6581_v35 = vpack.c.bf16 %v644_v61, %v644_v61  ;;  %v564_v24 = vmul.f32 %v8248_v49, %v447_v2 }
 0x104   : > { %681 = vst [vmem:[#allocation2 + $0xb0] sm:$0xff] %v646_v48  ;;  %1503 = vst [vmem:[#allocation3 + $0xb8] sm:$0xf] %v6567_v0  ;;  %v649_v48 = vmax.f32 %v617_v58, 0.0  ;;  %v602_v5 = vadd.f32 %v8257_v54, %v566_v47  ;;  %v8692_v46 = vsub.f32 %v10207_v13, %v8663_v43  ;;  %v8701_v43 = vsub.f32 %v10209_v31, %v8667_v57 }
 0x105   : > { %2141 = vst [vmem:[#allocation3 + $0x7c] sm:$0xf] %v6567_v0  ;;  %2779 = vst [vmem:[#allocation3 + $0x40] sm:$0xf] %v6567_v0  ;;  %v6570_v0 = vpack.c.bf16 %v633_v19, %v633_v19  ;;  %v1531_v58 = vld [vmem:[#allocation2 + $0x11] sm:$0xff]  ;;  %v8711_v57 = vadd.f32 %v8257_v54, %v582_v32 }
 0x106   : > { %663 = vst [vmem:[#allocation2 + $0x20] sm:$0xff] %v628_v40  ;;  %1519 = vst [vmem:[#allocation3 + $0x2f8] sm:$0xf] %v6583_v42  ;;  %v631_v40 = vmax.f32 %v599_v41, 0.0  ;;  %v647_v41 = vmax.f32 %v615_v36, 0.0  ;;  %v1563_v8 = vmul.f32 %v8277_v4, %v1531_v58  ;;  %v8706_v36 = vmax.f32 %v602_v5, 0.0 }
 0x107   : > { %2157 = vst [vmem:[#allocation3 + $0x2bc] sm:$0xf] %v6583_v42  ;;  %2795 = vst [vmem:[#allocation3 + $0x280] sm:$0xf] %v6583_v42  ;;  %v7672_v42 = vld [vmem:[%s10088_s2 + $0x148] sm:$0xff]  }
 0x108   : > { %679 = vst [vmem:[#allocation2 + $0xa0] sm:$0xff] %v644_v61  ;;  %1501 = vst [vmem:[#allocation3 + $0x70] sm:$0xf] %v6565_v22  ;;  %v1116_v61 = vld [vmem:[#allocation2 + $0x17] sm:$0xff]  ;;  %v6568_v2 = vpack.c.bf16 %v631_v40, %v631_v40  ;;  %7079 = vmatprep.subr.bf16.mxu1 %v7672_v42  ;;  %v6584_v15 = vpack.c.bf16 %v647_v41, %v647_v41 }
 0x109   : > { %2139 = vst [vmem:[#allocation3 + $0x34] sm:$0xf] %v6565_v22  ;;  %668 = vst [vmem:[#allocation2 + $0x48] sm:$0xff] %v633_v19  ;;  %v7365_v22 = vpop.f32.mrf.mxu0  ;;  %v6586_v19 = vpack.c.bf16 %v649_v48, %v649_v48  ;;  %v1148_v47 = vmul.f32 %v8272_v59, %v1116_v61  ;;  %v1786_v13 = vmul.f32 %v8127_v27, %v1116_v61 }
 0x10a   : > { %10208 = vst [vmem:[#allocation45_spill] sm:$0xff] %v8692_v46  ;;  %1517 = vst [vmem:[#allocation3 + $0x2b0] sm:$0xf] %v6581_v35  ;;  %v8714_v61 = vmul.f32 %v8248_v49, %v511_v37  ;;  %v569_v63 = vmul.f32 %v7365_v22, %v8248_v49 }
 0x10b   : > { %2155 = vst [vmem:[#allocation3 + $0x274] sm:$0xf] %v6581_v35  ;;  %2793 = vst [vmem:[#allocation3 + $0x238] sm:$0xf] %v6581_v35  ;;  %v1119_v35 = vld [vmem:[#allocation2 + $0x2f] sm:$0xff]  ;;  %v8708_v17 = vpop.f32.mrf.mxu0  ;;  %v6626_v42 = vpack.c.bf16 %v1786_v13, %v1786_v13 }
 0x10c   : > { %684 = vst [vmem:[#allocation2 + $0xc8] sm:$0xff] %v649_v48  ;;  %10210 = vst [vmem:[#allocation46_spill] sm:$0xff] %v8701_v43  ;;  %v1534_v48 = vld [vmem:[#allocation2 + $0x29] sm:$0xff]  ;;  %v1151_v58 = vmul.f32 %v8292_v12, %v1119_v35  ;;  %v2427_v32 = vmul.f32 %v8130_v28, %v1119_v35 }
 0x10d   : > { %1506 = vst [vmem:[#allocation3 + $0x124] sm:$0xf] %v6570_v0  ;;  %2144 = vst [vmem:[#allocation3 + $0xe8] sm:$0xf] %v6570_v0  ;;  %v1566_v5 = vmul.f32 %v8305_v30, %v1534_v48  ;;  %v1117_v31 = vld [vmem:[#allocation2 + $0x1f] sm:$0xff]  ;;  %v8721_v43 = vld [vmem:[#allocation2 + $0x27] sm:$0xff]  ;;  %v2842_v13 = vmul.f32 %v8159_v44, %v1534_v48 }
 0x10e   : > { %2782 = vst [vmem:[#allocation3 + $0xac] sm:$0xf] %v6570_v0  ;;  %666 = vst [vmem:[#allocation2 + $0x38] sm:$0xff] %v631_v40  ;;  %v6532_v0 = vpack.c.bf16 %v1148_v47, %v1148_v47  ;;  %v6595_v40 = vpack.c.bf16 %v1563_v8, %v1563_v8  ;;  %v8723_v37 = vld [vmem:[#allocation2 + $0x19] sm:$0xff]  ;;  %v8726_v47 = vpop.f32.mrf.mxu0  ;;  %v6535_v8 = vpack.c.bf16 %v1151_v58, %v1151_v58 }
 0x10f   : > { %1522 = vst [vmem:[#allocation3 + $0x364] sm:$0xf] %v6586_v19  ;;  %2160 = vst [vmem:[#allocation3 + $0x328] sm:$0xf] %v6586_v19  ;;  %v6723_v38 = vpack.c.bf16 %v2427_v32, %v2427_v32  ;;  %v8745_v22 = vmul.f32 %v8296_v25, %v8723_v37  ;;  %v8755_v58 = vmul.f32 %v8272_v59, %v8721_v43 }
 0x110   : > { %2798 = vst [vmem:[#allocation3 + $0x2ec] sm:$0xf] %v6586_v19  ;;  %682 = vst [vmem:[#allocation2 + $0xb8] sm:$0xff] %v647_v41  ;;  %v1789_v19 = vmul.f32 %v8287_v10, %v1119_v35  ;;  %v2204_v41 = vmul.f32 %v8296_v25, %v1534_v48  ;;  %v600_v35 = vadd.f32 %v8257_v54, %v564_v24  ;;  %v8731_v60 = vpop.f32.mrf.mxu0 }
 0x111   : > { %10211 = vst [vmem:[#allocation47_spill] sm:$0xff] %v8711_v57  ;;  %10212 = vst [vmem:[#allocation48_spill] sm:$0xff] %v8714_v61  ;;  %v6598_v61 = vpack.c.bf16 %v1566_v5, %v1566_v5  ;;  %v8741_v24 = vmul.f32 %v8327_v51, %v8721_v43 }
 0x112   : > { %1504 = vst [vmem:[#allocation3 + $0xdc] sm:$0xf] %v6568_v2  ;;  %2142 = vst [vmem:[#allocation3 + $0xa0] sm:$0xf] %v6568_v2  ;;  %v6629_v57 = vpack.c.bf16 %v1789_v19, %v1789_v19  ;;  %v6692_v46 = vpack.c.bf16 %v2204_v41, %v2204_v41  ;;  %v7369_v32 = vpop.f32.mrf.mxu0 }
 0x113   : > { %2780 = vst [vmem:[#allocation3 + $0x64] sm:$0xf] %v6568_v2  ;;  %669 = vst [vmem:[#allocation2 + $0x50] sm:$0xff] %v8706_v36  ;;  %v1533_v2 = vld [vmem:[#allocation2 + $0x21] sm:$0xff] }
 0x114   : > { %1520 = vst [vmem:[#allocation3 + $0x31c] sm:$0xf] %v6584_v15  ;;  %2158 = vst [vmem:[#allocation3 + $0x2e0] sm:$0xf] %v6584_v15  ;;  %v8748_v48 = vmul.f32 %v8330_v53, %v1533_v2  ;;  %v8758_v5 = vmul.f32 %v8277_v4, %v1533_v2  ;;  %v476_v2 = vpop.f32.mrf.mxu0 }
 0x115   : > { %2796 = vst [vmem:[#allocation3 + $0x2a4] sm:$0xf] %v6584_v15  ;;  %1308 = vst [vmem:[#allocation3 + $0x48] sm:$0xf] %v6532_v0  ;;  %v7675_v15 = vld [vmem:[%s10088_s2 + $0x108] sm:$0xff]   ;;  %v6786_v0 = vpack.c.bf16 %v2842_v13, %v2842_v13  ;;  %v1120_v19 = vld [vmem:[#allocation2 + $0x37] sm:$0xff] }
 0x116   : > { %1723 = vst [vmem:[#allocation3 + $0x2c] sm:$0xf] %v6595_v40  ;;  %1946 = vst [vmem:[#allocation3 + $0xc] sm:$0xf] %v6626_v42  ;;  %v8737_v40 = vmul.f32 %v8287_v10, %v1117_v31  ;;  %v8751_v42 = vmul.f32 %v8130_v28, %v1117_v31  ;;  %v1535_v41 = vld [vmem:[#allocation2 + $0x31] sm:$0xff]  ;;  %7080 = vmatpush3.bf16.msra.mxu1 %v7675_v15  ;;  %v632_v13 = vmax.f32 %v600_v35, 0.0 }
 0x117   : > { %1311 = vst [vmem:[#allocation3 + $0xb4] sm:$0xf] %v6535_v8  ;;  %1726 = vst [vmem:[#allocation3 + $0x98] sm:$0xf] %v6598_v61  ;;  %v2205_v28 = vmul.f32 %v8330_v53, %v1535_v41  ;;  %v2428_v61 = vmul.f32 %v8272_v59, %v1120_v19  ;;  %v2843_v31 = vmul.f32 %v8277_v4, %v1535_v41  ;;  %v7370_v4 = vpop.f32.mrf.mxu0 }
 0x118   : > { %1949 = vst [vmem:[#allocation3 + $0x78] sm:$0xf] %v6629_v57  ;;  %2364 = vst [vmem:[#allocation3 + $0x5c] sm:$0xf] %v6692_v46  ;;  %v1567_v46 = vmul.f32 %v8337_v11, %v1535_v41  ;;  %v1790_v57 = vmul.f32 %v8327_v51, %v1120_v19  ;;  %v6571_v8 = vpack.c.bf16 %v8706_v36, %v8706_v36 }
 0x119   : > { %2587 = vst [vmem:[#allocation3 + $0x3c] sm:$0xf] %v6723_v38  ;;  %10213 = vst [vmem:[#allocation49_spill] sm:$0xff] %v8758_v5  ;;  %v1152_v38 = vmul.f32 %v8343_v56, %v1120_v19  ;;  %v6693_v23 = vpack.c.bf16 %v2205_v28, %v2205_v28  ;;  %v6724_v50 = vpack.c.bf16 %v2428_v61, %v2428_v61  ;;  %v479_v61 = vpop.f32.mrf.mxu0 }
 0x11a   : > { %3002 = vst [vmem:[#allocation3 + $0x20] sm:$0xf] %v6786_v0  ;;  %v6599_v15 = vpack.c.bf16 %v1567_v46, %v1567_v46  ;;  %v6630_v0 = vpack.c.bf16 %v1790_v57, %v1790_v57  ;;  %v1123_v45 = vld [vmem:[#allocation2 + $0x4f] sm:$0xff]  ;;  %v6787_v16 = vpack.c.bf16 %v2843_v31, %v2843_v31  ;;  %1507 = vst [vmem:[#allocation3 + $0x148] sm:$0xf] %v6571_v8 }
 0x11b   : > { %v6536_v5 = vpack.c.bf16 %v1152_v38, %v1152_v38  ;;  %v1538_v7 = vld [vmem:[#allocation2 + $0x49] sm:$0xff]  ;;  %v1155_v62 = vmul.f32 %v8363_v29, %v1123_v45  ;;  %2145 = vst [vmem:[#allocation3 + $0x10c] sm:$0xf] %v6571_v8  ;;  %2783 = vst [vmem:[#allocation3 + $0xd0] sm:$0xf] %v6571_v8  ;;  %v1793_v36 = vmul.f32 %v8356_v14, %v1123_v45 }
 0x11c   : > { %v1570_v59 = vmul.f32 %v8370_v21, %v1538_v7  ;;  %667 = vst [vmem:[#allocation2 + $0x40] sm:$0xff] %v632_v13  ;;  %1727 = vst [vmem:[#allocation3 + $0xbc] sm:$0xf] %v6599_v15  ;;  %v2208_v35 = vmul.f32 %v8350_v1, %v1538_v7  ;;  %v2431_v19 = vmul.f32 %v8292_v12, %v1123_v45  ;;  %v7688_v15 = vld [vmem:[%s10088_s2 + $0x140] sm:$0xff]  }
 0x11d   : > { %1312 = vst [vmem:[#allocation3 + $0xd8] sm:$0xf] %v6536_v5  ;;  %1950 = vst [vmem:[#allocation3 + $0x9c] sm:$0xf] %v6630_v0  ;;  %v2846_v41 = vmul.f32 %v8305_v30, %v1538_v7  ;;  %v6539_v38 = vpack.c.bf16 %v1155_v62, %v1155_v62  ;;  %v6569_v57 = vpack.c.bf16 %v632_v13, %v632_v13  ;;  %7081 = vmatprep.subr.bf16.mxu1 %v7688_v15 }
 0x11e   : > { %2365 = vst [vmem:[#allocation3 + $0x80] sm:$0xf] %v6693_v23  ;;  %2588 = vst [vmem:[#allocation3 + $0x60] sm:$0xf] %v6724_v50  ;;  %v6602_v46 = vpack.c.bf16 %v1570_v59, %v1570_v59  ;;  %v605_v28 = vadd.f32 %v8257_v54, %v569_v63  ;;  %v6633_v5 = vpack.c.bf16 %v1793_v36, %v1793_v36 }
 0x11f   : > { %3003 = vst [vmem:[#allocation3 + $0x44] sm:$0xf] %v6787_v16  ;;  %v6696_v31 = vpack.c.bf16 %v2208_v35, %v2208_v35  ;;  %v6727_v8 = vpack.c.bf16 %v2431_v19, %v2431_v19  ;;  %v6790_v23 = vpack.c.bf16 %v2846_v41, %v2846_v41  ;;  %1315 = vst [vmem:[#allocation3 + $0x144] sm:$0xf] %v6539_v38 }
 0x120   : > { %1730 = vst [vmem:[#allocation3 + $0x128] sm:$0xf] %v6602_v46  ;;  %1505 = vst [vmem:[#allocation3 + $0x100] sm:$0xf] %v6569_v57  ;;  %v637_v50 = vmax.f32 %v605_v28, 0.0  ;;  %v567_v62 = vmul.f32 %v8248_v49, %v8708_v17  ;;  %v570_v16 = vmul.f32 %v8726_v47, %v8248_v49  ;;  %v568_v45 = vmul.f32 %v8248_v49, %v8731_v60 }
 0x121   : > { %2143 = vst [vmem:[#allocation3 + $0xc4] sm:$0xf] %v6569_v57  ;;  %2781 = vst [vmem:[#allocation3 + $0x88] sm:$0xf] %v6569_v57  ;;  %v573_v7 = vmul.f32 %v7369_v32, %v8248_v49  ;;  %v571_v63 = vmul.f32 %v8248_v49, %v476_v2  ;;  %v574_v13 = vmul.f32 %v7370_v4, %v8248_v49 }
 0x122   : > { %1953 = vst [vmem:[#allocation3 + $0x108] sm:$0xf] %v6633_v5  ;;  %2368 = vst [vmem:[#allocation3 + $0xec] sm:$0xf] %v6696_v31  ;;  %v572_v0 = vmul.f32 %v8248_v49, %v479_v61  ;;  %v8790_v17 = vmul.f32 %v8159_v44, %v8723_v37  ;;  %v8794_v60 = vmul.f32 %v8127_v27, %v8721_v43 }
 0x123   : > { %2591 = vst [vmem:[#allocation3 + $0xcc] sm:$0xf] %v6727_v8  ;;  %3006 = vst [vmem:[#allocation3 + $0xb0] sm:$0xf] %v6790_v23  ;;  %v6574_v47 = vpack.c.bf16 %v637_v50, %v637_v50  ;;  %v603_v59 = vadd.f32 %v8257_v54, %v567_v62  ;;  %v1121_v32 = vld [vmem:[#allocation2 + $0x3f] sm:$0xff]  ;;  %v8797_v36 = vld [vmem:[#allocation2 + $0x47] sm:$0xff]  ;;  %v606_v4 = vadd.f32 %v8257_v54, %v570_v16 }
 0x124   : > { %10214 = vst [vmem:[#allocation50_spill] sm:$0xff] %v8790_v17  ;;  %10215 = vst [vmem:[#allocation51_spill] sm:$0xff] %v8794_v60  ;;  %v1536_v2 = vld [vmem:[#allocation2 + $0x39] sm:$0xff]  ;;  %v604_v35 = vadd.f32 %v8257_v54, %v568_v45  ;;  %v609_v19 = vadd.f32 %v8257_v54, %v573_v7  ;;  %v607_v44 = vadd.f32 %v8257_v54, %v571_v63  ;;  %v1537_v43 = vld [vmem:[#allocation2 + $0x41] sm:$0xff] }
 0x125   : > { %672 = vst [vmem:[#allocation2 + $0x68] sm:$0xff] %v637_v50  ;;  %v8804_v37 = vmul.f32 %v8356_v14, %v1121_v32  ;;  %v8808_v27 = vmul.f32 %v8376_v33, %v8797_v36  ;;  %1510 = vst [vmem:[#allocation3 + $0x1b4] sm:$0xf] %v6574_v47  ;;  %v610_v41 = vadd.f32 %v8257_v54, %v574_v13  ;;  %v635_v15 = vmax.f32 %v603_v59, 0.0 }
 0x126   : > { %2148 = vst [vmem:[#allocation3 + $0x178] sm:$0xf] %v6574_v47  ;;  %2786 = vst [vmem:[#allocation3 + $0x13c] sm:$0xf] %v6574_v47  ;;  %v608_v38 = vadd.f32 %v8257_v54, %v572_v0  ;;  %v8813_v46 = vmul.f32 %v8350_v1, %v1536_v2  ;;  %v8816_v57 = vmul.f32 %v8292_v12, %v1121_v32  ;;  %v7691_v12 = vld [vmem:[%s10088_s2 + $0x100] sm:$0xff]   ;;  %v636_v50 = vmax.f32 %v604_v35, 0.0 }
 0x127   : > { %v8819_v28 = vmul.f32 %v8305_v30, %v1536_v2  ;;  %v8822_v61 = vmul.f32 %v8337_v11, %v1537_v43  ;;  %v8825_v5 = vmul.f32 %v8385_v52, %v1537_v43  ;;  %v8828_v31 = vmul.f32 %v8287_v10, %v1121_v32  ;;  %7082 = vmatpush3.bf16.msra.mxu1 %v7691_v12 }
 0x128   : > { %v2844_v8 = vmul.f32 %v8296_v25, %v1536_v2  ;;  %v2845_v23 = vmul.f32 %v8330_v53, %v1537_v43  ;;  %v638_v30 = vmax.f32 %v606_v4, 0.0  ;;  %v641_v62 = vmax.f32 %v609_v19, 0.0  ;;  %670 = vst [vmem:[#allocation2 + $0x58] sm:$0xff] %v635_v15  ;;  %671 = vst [vmem:[#allocation2 + $0x60] sm:$0xff] %v636_v50  ;;  %v1135_v2 = vld [vmem:[#allocation2 + $0xaf] sm:$0xff] }
 0x129   : > { %10216 = vst [vmem:[#allocation52_spill] sm:$0xff] %v8819_v28  ;;  %10217 = vst [vmem:[#allocation53_spill] sm:$0xff] %v8822_v61  ;;  %v639_v7 = vmax.f32 %v607_v44, 0.0  ;;  %v642_v63 = vmax.f32 %v610_v41, 0.0  ;;  %v6572_v10 = vpack.c.bf16 %v635_v15, %v635_v15  ;;  %v6573_v25 = vpack.c.bf16 %v636_v50, %v636_v50  ;;  %v1550_v4 = vld [vmem:[#allocation2 + $0xa9] sm:$0xff] }
 0x12a   : > { %10218 = vst [vmem:[#allocation54_spill] sm:$0xff] %v8828_v31  ;;  %v6788_v16 = vpack.c.bf16 %v2844_v8, %v2844_v8  ;;  %v6789_v45 = vpack.c.bf16 %v2845_v23, %v2845_v23  ;;  %673 = vst [vmem:[#allocation2 + $0x70] sm:$0xff] %v638_v30  ;;  %v6575_v13 = vpack.c.bf16 %v638_v30, %v638_v30  ;;  %v640_v59 = vmax.f32 %v608_v38, 0.0  ;;  %v8855_v23 = vld [vmem:[#allocation2 + $0x9f] sm:$0xff] }
 0x12b   : > { %676 = vst [vmem:[#allocation2 + $0x88] sm:$0xff] %v641_v62  ;;  %v6578_v53 = vpack.c.bf16 %v641_v62, %v641_v62  ;;  %674 = vst [vmem:[#allocation2 + $0x78] sm:$0xff] %v639_v7  ;;  %v6576_v0 = vpack.c.bf16 %v639_v7, %v639_v7  ;;  %v6579_v47 = vpack.c.bf16 %v642_v63, %v642_v63 }
 0x12c   : > { %3004 = vst [vmem:[#allocation3 + $0x68] sm:$0xf] %v6788_v16  ;;  %3005 = vst [vmem:[#allocation3 + $0x8c] sm:$0xf] %v6789_v45  ;;  %v6533_v32 = vpack.c.bf16 %v8737_v40, %v8737_v40  ;;  %v6627_v35 = vpack.c.bf16 %v8751_v42, %v8751_v42  ;;  %v6534_v40 = vpack.c.bf16 %v8741_v24, %v8741_v24 }
 0x12d   : > { %677 = vst [vmem:[#allocation2 + $0x90] sm:$0xff] %v642_v63  ;;  %1508 = vst [vmem:[#allocation3 + $0x16c] sm:$0xf] %v6572_v10  ;;  %v6596_v19 = vpack.c.bf16 %v8745_v22, %v8745_v22  ;;  %v6597_v44 = vpack.c.bf16 %v8748_v48, %v8748_v48  ;;  %v6577_v43 = vpack.c.bf16 %v640_v59, %v640_v59 }
 0x12e   : > { %2146 = vst [vmem:[#allocation3 + $0x130] sm:$0xf] %v6572_v10  ;;  %2784 = vst [vmem:[#allocation3 + $0xf4] sm:$0xf] %v6572_v10  ;;  %v6628_v42 = vpack.c.bf16 %v8755_v58, %v8755_v58  ;;  %v6537_v24 = vpack.c.bf16 %v8804_v37, %v8804_v37  ;;  %v6631_v22 = vpack.c.bf16 %v8816_v57, %v8816_v57  ;;  %v8857_v58 = vld [vmem:[#allocation2 + $0xa7] sm:$0xff] }
 0x12f   : > { %1511 = vst [vmem:[#allocation3 + $0x1d8] sm:$0xf] %v6575_v13  ;;  %2149 = vst [vmem:[#allocation3 + $0x19c] sm:$0xf] %v6575_v13  ;;  %v1167_v48 = vmul.f32 %v8568_v34, %v1135_v2  ;;  %v1582_v41 = vmul.f32 %v8557_v3, %v1550_v4  ;;  %v1805_v38 = vmul.f32 %v8554_v26, %v1135_v2  ;;  %v1124_v45 = vld [vmem:[#allocation2 + $0x57] sm:$0xff] }
 0x130   : > { %2787 = vst [vmem:[#allocation3 + $0x160] sm:$0xf] %v6575_v13  ;;  %1509 = vst [vmem:[#allocation3 + $0x190] sm:$0xf] %v6573_v25  ;;  %v2220_v8 = vmul.f32 %v8545_v6, %v1550_v4  ;;  %v8861_v37 = vmul.f32 %v8343_v56, %v8797_v36  ;;  %v8865_v57 = vmul.f32 %v8327_v51, %v8797_v36  ;;  %v1539_v7 = vld [vmem:[#allocation2 + $0x51] sm:$0xff] }
 0x131   : > { %2147 = vst [vmem:[#allocation3 + $0x154] sm:$0xf] %v6573_v25  ;;  %2785 = vst [vmem:[#allocation3 + $0x118] sm:$0xf] %v6573_v25  ;;  %v2443_v12 = vmul.f32 %v8498_v9, %v1135_v2  ;;  %v2858_v15 = vmul.f32 %v8506_v18, %v1550_v4  ;;  %v6551_v30 = vpack.c.bf16 %v1167_v48, %v1167_v48  ;;  %v1127_v63 = vld [vmem:[#allocation2 + $0x6f] sm:$0xff]  ;;  %v10221_v4 = vld [vmem:[#allocation12_spill] sm:$0xff] }
 0x132   : > { %1514 = vst [vmem:[#allocation3 + $0x244] sm:$0xf] %v6578_v53  ;;  %2152 = vst [vmem:[#allocation3 + $0x208] sm:$0xf] %v6578_v53  ;;  %v6614_v50 = vpack.c.bf16 %v1582_v41, %v1582_v41  ;;  %v6645_v62 = vpack.c.bf16 %v1805_v38, %v1805_v38  ;;  %v6708_v16 = vpack.c.bf16 %v2220_v8, %v2220_v8  ;;  %v8887_v48 = vld [vmem:[#allocation2 + $0x67] sm:$0xff]  ;;  %v8889_v41 = vld [vmem:[#allocation2 + $0x99] sm:$0xff] }
 0x133   : > { %2790 = vst [vmem:[#allocation3 + $0x1cc] sm:$0xf] %v6578_v53  ;;  %1512 = vst [vmem:[#allocation3 + $0x1fc] sm:$0xf] %v6576_v0  ;;  %v6739_v10 = vpack.c.bf16 %v2443_v12, %v2443_v12  ;;  %v6802_v51 = vpack.c.bf16 %v2858_v15, %v2858_v15  ;;  %v8871_v36 = vmul.f32 %v8554_v26, %v8855_v23  ;;  %v1540_v12 = vld [vmem:[#allocation2 + $0x59] sm:$0xff]  ;;  %v1541_v15 = vld [vmem:[#allocation2 + $0x61] sm:$0xff] }
 0x134   : > { %2150 = vst [vmem:[#allocation3 + $0x1c0] sm:$0xf] %v6576_v0  ;;  %2788 = vst [vmem:[#allocation3 + $0x184] sm:$0xf] %v6576_v0  ;;  %v8875_v13 = vmul.f32 %v8572_v20, %v8857_v58  ;;  %v1156_v25 = vmul.f32 %v8388_v39, %v1124_v45  ;;  %v1571_v53 = vmul.f32 %v8391_v55, %v1539_v7  ;;  %v1546_v61 = vld [vmem:[#allocation2 + $0x89] sm:$0xff] }
 0x135   : > { %1515 = vst [vmem:[#allocation3 + $0x268] sm:$0xf] %v6579_v47  ;;  %2153 = vst [vmem:[#allocation3 + $0x22c] sm:$0xf] %v6579_v47  ;;  %v1794_v0 = vmul.f32 %v8376_v33, %v1124_v45  ;;  %v2847_v2 = vmul.f32 %v8337_v11, %v1539_v7  ;;  %v8925_v31 = vmul.f32 %v8388_v39, %v8887_v48 }
 0x136   : > { %2791 = vst [vmem:[#allocation3 + $0x1f0] sm:$0xf] %v6579_v47  ;;  %675 = vst [vmem:[#allocation2 + $0x80] sm:$0xff] %v640_v59  ;;  %v2209_v47 = vmul.f32 %v8385_v52, %v1539_v7  ;;  %v1542_v59 = vld [vmem:[#allocation2 + $0x69] sm:$0xff]  ;;  %v2435_v7 = vmul.f32 %v8363_v29, %v1127_v63 }
 0x137   : > { %1309 = vst [vmem:[#allocation3 + $0x6c] sm:$0xf] %v6533_v32  ;;  %1947 = vst [vmem:[#allocation3 + $0x30] sm:$0xf] %v6627_v35  ;;  %v2432_v32 = vmul.f32 %v8343_v56, %v1124_v45  ;;  %v1159_v35 = vmul.f32 %v10221_v4, %v1127_v63  ;;  %v6791_v56 = vpack.c.bf16 %v2847_v2, %v2847_v2 }
 0x138   : > { %1310 = vst [vmem:[#allocation3 + $0x90] sm:$0xf] %v6534_v40  ;;  %1724 = vst [vmem:[#allocation3 + $0x50] sm:$0xf] %v6596_v19  ;;  %v10222_v40 = vld [vmem:[#allocation13_spill] sm:$0xff] }
 0x139   : > { %1725 = vst [vmem:[#allocation3 + $0x74] sm:$0xf] %v6597_v44  ;;  %10219 = vst [vmem:[#allocation55_spill] sm:$0xff] %v8865_v57  ;;  %v1574_v19 = vmul.f32 %v10222_v40, %v1542_v59  ;;  %v6540_v44 = vpack.c.bf16 %v1156_v25, %v1156_v25  ;;  %v6728_v38 = vpack.c.bf16 %v2432_v32, %v2432_v32  ;;  %v7586_v25 = vld [vmem:[#allocation3 + $0x4c] ss:$36 sps:$4 sm:$0xff]  }
 0x13a   : > { %1513 = vst [vmem:[#allocation3 + $0x220] sm:$0xf] %v6577_v43  ;;  %2151 = vst [vmem:[#allocation3 + $0x1e4] sm:$0xf] %v6577_v43  ;;  %v6543_v8 = vpack.c.bf16 %v1159_v35, %v1159_v35  ;;  %v7588_v32 = vld [vmem:[#allocation3 + $0x8] ss:$36 sps:$4 sm:$0xff]   ;;  %4547 = vmatprep.mubr.bf16.mxu1 %v7586_v25 }
 0x13b   : > { %2789 = vst [vmem:[#allocation3 + $0x1a8] sm:$0xf] %v6577_v43  ;;  %1948 = vst [vmem:[#allocation3 + $0x54] sm:$0xf] %v6628_v42  ;;  %v6603_v43 = vpack.c.bf16 %v1571_v53, %v1571_v53  ;;  %v6634_v42 = vpack.c.bf16 %v1794_v0, %v1794_v0  ;;  %v6606_v11 = vpack.c.bf16 %v1574_v19, %v1574_v19  ;;  %v10225_v0 = vld [vmem:[#allocation11_spill] sm:$0xff]  ;;  %v7639_v25 = vld [vmem:[%s10088_s2 + $0x1b8] sm:$0xff]  }
 0x13c   : > { %1313 = vst [vmem:[#allocation3 + $0xfc] sm:$0xf] %v6537_v24  ;;  %1951 = vst [vmem:[#allocation3 + $0xc0] sm:$0xf] %v6631_v22  ;;  %v6697_v24 = vpack.c.bf16 %v2209_v47, %v2209_v47  ;;  %v8885_v22 = vld [vmem:[#allocation2 + $0x5f] sm:$0xff]  ;;  %v8903_v47 = vmul.f32 %v10225_v0, %v8887_v48 }
 0x13d   : > { %10220 = vst [vmem:[#allocation56_spill] sm:$0xff] %v8875_v13  ;;  %1327 = vst [vmem:[#allocation3 + $0x2f4] sm:$0xf] %v6551_v30  ;;  %v8891_v30 = vld [vmem:[#allocation2 + $0xa1] sm:$0xff]  ;;  %v8921_v57 = vmul.f32 %v8363_v29, %v8885_v22  ;;  %v2849_v29 = vmul.f32 %v8385_v52, %v1541_v15 }
 0x13e   : > { %1742 = vst [vmem:[#allocation3 + $0x2d8] sm:$0xf] %v6614_v50  ;;  %1965 = vst [vmem:[#allocation3 + $0x2b8] sm:$0xf] %v6645_v62  ;;  %v10223_v50 = vld [vmem:[#allocation9_spill] sm:$0xff] }
 0x13f   : > { %2380 = vst [vmem:[#allocation3 + $0x29c] sm:$0xf] %v6708_v16  ;;  %2603 = vst [vmem:[#allocation3 + $0x27c] sm:$0xf] %v6739_v10  ;;  %v1797_v62 = vmul.f32 %v10223_v50, %v1127_v63  ;;  %v10224_v16 = vld [vmem:[#allocation10_spill] sm:$0xff]  ;;  %v2850_v10 = vmul.f32 %v8370_v21, %v1542_v59  ;;  %v8899_v53 = vmul.f32 %v10223_v50, %v8885_v22 }
 0x140   : > { %3018 = vst [vmem:[#allocation3 + $0x260] sm:$0xf] %v6802_v51  ;;  %1316 = vst [vmem:[#allocation3 + $0x168] sm:$0xf] %v6540_v44  ;;  %v2212_v45 = vmul.f32 %v10224_v16, %v1542_v59  ;;  %v1128_v51 = vld [vmem:[#allocation2 + $0x77] sm:$0xff]  ;;  %v8907_v63 = vmul.f32 %v8545_v6, %v8889_v41  ;;  %v8949_v13 = vld [vmem:[#allocation2 + $0x87] sm:$0xff] }
 0x141   : > { %1731 = vst [vmem:[#allocation3 + $0x14c] sm:$0xf] %v6603_v43  ;;  %1954 = vst [vmem:[#allocation3 + $0x12c] sm:$0xf] %v6634_v42  ;;  %v7590_v2 = vld [vmem:[#allocation3 + $0xc] ss:$36 sps:$4 sm:$0xff]   ;;  %v6637_v19 = vpack.c.bf16 %v1797_v62, %v1797_v62  ;;  %v6731_v43 = vpack.c.bf16 %v2435_v7, %v2435_v7  ;;  %v6794_v42 = vpack.c.bf16 %v2850_v10, %v2850_v10 }
 0x142   : > { %2369 = vst [vmem:[#allocation3 + $0x110] sm:$0xf] %v6697_v24  ;;  %2592 = vst [vmem:[#allocation3 + $0xf0] sm:$0xf] %v6728_v38  ;;  %v10227_v59 = vld [vmem:[#allocation27_spill] sm:$0xff]  ;;  %v6700_v44 = vpack.c.bf16 %v2212_v45, %v2212_v45  ;;  %4700 = vmatprep.mubr.bf16.mxu0 %v7590_v2  ;;  %v8928_v62 = vmul.f32 %v8370_v21, %v1540_v12  ;;  %v8931_v45 = vmul.f32 %v8391_v55, %v1541_v15 }
 0x143   : > { %3007 = vst [vmem:[#allocation3 + $0xd4] sm:$0xf] %v6791_v56  ;;  %1319 = vst [vmem:[#allocation3 + $0x1d4] sm:$0xf] %v6543_v8  ;;  %v8911_v35 = vmul.f32 %v10227_v59, %v8891_v30  ;;  %v1543_v24 = vld [vmem:[#allocation2 + $0x71] sm:$0xff]  ;;  %v8914_v56 = vmul.f32 %v10224_v16, %v1540_v12  ;;  %v10229_v8 = vld [vmem:[#allocation14_spill] sm:$0xff]  ;;  %v2848_v7 = vmul.f32 %v8350_v1, %v1540_v12  ;;  %4701 = vmatmul.mubr.bf16.vlgmr.msra.gmra.mxu0 %v7588_v32 }
 0x144   : > { %1734 = vst [vmem:[#allocation3 + $0x1b8] sm:$0xf] %v6606_v11  ;;  %10226 = vst [vmem:[#allocation12_spill] sm:$0xff] %v8907_v63  ;;  %v7591_v38 = vld [vmem:[#allocation3 + $0x48] ss:$36 sps:$4 sm:$0xff]   ;;  %v8917_v11 = vmul.f32 %v10229_v8, %v1541_v15  ;;  %v7654_v2 = vld [vmem:[%s10088_s2 + $0x1f0] sm:$0xff]   ;;  %v2213_v1 = vmul.f32 %v10229_v8, %v1543_v24  ;;  %7180 = vmatpush3.bf16.msra.mxu0 %v7639_v25  ;;  %v8962_v25 = vmul.f32 %v8356_v14, %v8885_v22 }
 0x145   : > { %10228 = vst [vmem:[#allocation13_spill] sm:$0xff] %v8911_v35  ;;  %1957 = vst [vmem:[#allocation3 + $0x198] sm:$0xf] %v6637_v19  ;;  %4548 = vmatmul.mubr.bf16.gmra.mxu1 %v7591_v38  ;;  %v7592_v10 = vld [vmem:[#allocation3 + $0x94] ss:$36 sps:$4 sm:$0xff]   ;;  %v10232_v19 = vld [vmem:[#allocation16_spill] sm:$0xff]  ;;  %v6792_v15 = vpack.c.bf16 %v2848_v7, %v2848_v7  ;;  %v6793_v38 = vpack.c.bf16 %v2849_v29, %v2849_v29  ;;  %7181 = vmatprep.subr.bf16.mxu0 %v7654_v2 }
 0x146   : > { %2372 = vst [vmem:[#allocation3 + $0x17c] sm:$0xf] %v6700_v44  ;;  %2595 = vst [vmem:[#allocation3 + $0x15c] sm:$0xf] %v6731_v43  ;;  %v1160_v21 = vmul.f32 %v10232_v19, %v1128_v51  ;;  %v10233_v44 = vld [vmem:[#allocation15_spill] sm:$0xff]  ;;  %4555 = vmatprep.mubr.bf16.mxu1 %v7592_v10  ;;  %v6701_v35 = vpack.c.bf16 %v2213_v1, %v2213_v1  ;;  %v8947_v63 = vld [vmem:[#allocation2 + $0x7f] sm:$0xff] }
 0x147   : > { %3010 = vst [vmem:[#allocation3 + $0x140] sm:$0xf] %v6794_v42  ;;  %10230 = vst [vmem:[#allocation9_spill] sm:$0xff] %v8928_v62  ;;  %v1575_v43 = vmul.f32 %v10233_v44, %v1543_v24  ;;  %v1798_v42 = vmul.f32 %v10225_v0, %v1128_v51  ;;  %v1131_v12 = vld [vmem:[#allocation2 + $0x8f] sm:$0xff]  ;;  %v7594_v52 = vld [vmem:[#allocation3 + $0x54] ss:$36 sps:$4 sm:$0xff]   ;;  %v2851_v62 = vmul.f32 %v8391_v55, %v1543_v24 }
 0x148   : > { %10231 = vst [vmem:[#allocation10_spill] sm:$0xff] %v8931_v45  ;;  %v2436_v45 = vmul.f32 %v8388_v39, %v1128_v51  ;;  %v6544_v28 = vpack.c.bf16 %v1160_v21, %v1160_v21  ;;  %4708 = vmatprep.mubr.bf16.mxu0 %v7594_v52  ;;  %3008 = vst [vmem:[#allocation3 + $0xf8] sm:$0xf] %v6792_v15  ;;  %v1163_v29 = vmul.f32 %v8498_v9, %v1131_v12  ;;  %v7707_v55 = vld [vmem:[%s10088_s2 + $0x238] sm:$0xff]   ;;  %v10234_v51 = vld [vmem:[#allocation17_spill] sm:$0xff] }
 0x149   : > { %v6607_v60 = vpack.c.bf16 %v1575_v43, %v1575_v43  ;;  %v6638_v17 = vpack.c.bf16 %v1798_v42, %v1798_v42  ;;  %3009 = vst [vmem:[#allocation3 + $0x11c] sm:$0xf] %v6793_v38  ;;  %v6795_v7 = vpack.c.bf16 %v2851_v62, %v2851_v62  ;;  %v1578_v39 = vmul.f32 %v8506_v18, %v1546_v61  ;;  %v10235_v10 = vld [vmem:[#allocation18_spill] sm:$0xff]  ;;  %v1544_v43 = vld [vmem:[#allocation2 + $0x79] sm:$0xff] }
 0x14a   : > { %v6732_v32 = vpack.c.bf16 %v2436_v45, %v2436_v45  ;;  %1320 = vst [vmem:[#allocation3 + $0x1f8] sm:$0xf] %v6544_v28  ;;  %2373 = vst [vmem:[#allocation3 + $0x1a0] sm:$0xf] %v6701_v35  ;;  %v1801_v24 = vmul.f32 %v10234_v51, %v1131_v12  ;;  %v2216_v21 = vmul.f32 %v10235_v10, %v1546_v61  ;;  %v1545_v42 = vld [vmem:[#allocation2 + $0x81] sm:$0xff]  ;;  %v1132_v1 = vld [vmem:[#allocation2 + $0x97] sm:$0xff]  ;;  %7387 = vmatprep.subr.bf16.mxu1 %v7707_v55 }
 0x14b   : > { %1735 = vst [vmem:[#allocation3 + $0x1dc] sm:$0xf] %v6607_v60  ;;  %1958 = vst [vmem:[#allocation3 + $0x1bc] sm:$0xf] %v6638_v17  ;;  %v2439_v45 = vmul.f32 %v10221_v4, %v1131_v12  ;;  %v2854_v62 = vmul.f32 %v10222_v40, %v1546_v61  ;;  %v8966_v17 = vmul.f32 %v8376_v33, %v8887_v48  ;;  %v1547_v35 = vld [vmem:[#allocation2 + $0x91] sm:$0xff]  ;;  %v7670_v33 = vld [vmem:[%s10088_s2 + $0x1e8] sm:$0xff]  }
 0x14c   : > { %10236 = vst [vmem:[#allocation11_spill] sm:$0xff] %v8962_v25  ;;  %2596 = vst [vmem:[#allocation3 + $0x180] sm:$0xf] %v6732_v32  ;;  %v6547_v60 = vpack.c.bf16 %v1163_v29, %v1163_v29  ;;  %v6610_v28 = vpack.c.bf16 %v1578_v39, %v1578_v39  ;;  %v7597_v12 = vld [vmem:[#allocation3 + $0x90] ss:$36 sps:$4 sm:$0xff]   ;;  %v7655_v61 = vld [vmem:[%s10088_s2 + $0x1b0] sm:$0xff]   ;;  %v6641_v2 = vpack.c.bf16 %v1801_v24, %v1801_v24  ;;  %v8988_v24 = vpop.f32.mrf.mxu1 }
 0x14d   : > { %10237 = vst [vmem:[#allocation27_spill] sm:$0xff] %v8966_v17  ;;  %3011 = vst [vmem:[#allocation3 + $0x164] sm:$0xf] %v6795_v7  ;;  %v7598_v52 = vld [vmem:[#allocation3 + $0x50] ss:$36 sps:$4 sm:$0xff]   ;;  %v6704_v15 = vpack.c.bf16 %v2216_v21, %v2216_v21  ;;  %v6735_v14 = vpack.c.bf16 %v2439_v45, %v2439_v45  ;;  %v6798_v22 = vpack.c.bf16 %v2854_v62, %v2854_v62  ;;  %v10238_v32 = vld [vmem:[#allocation20_spill] sm:$0xff]  ;;  %4556 = vmatmul.mubr.bf16.gmra.mxu1 %v7597_v12 }
 0x14e   : > { %v7600_v38 = vld [vmem:[#allocation3 + $0xdc] ss:$36 sps:$4 sm:$0xff]   ;;  %1323 = vst [vmem:[#allocation3 + $0x264] sm:$0xf] %v6547_v60  ;;  %1738 = vst [vmem:[#allocation3 + $0x248] sm:$0xf] %v6610_v28  ;;  %v8976_v48 = vmul.f32 %v10234_v51, %v8947_v63  ;;  %v8980_v7 = vmul.f32 %v10238_v32, %v8949_v13  ;;  %v8983_v29 = vmul.f32 %v10235_v10, %v1544_v43  ;;  %4709 = vmatmul.mubr.bf16.gmra.mxu0 %v7598_v52 }
 0x14f   : > { %v7602_v25 = vld [vmem:[#allocation3 + $0x9c] ss:$36 sps:$4 sm:$0xff]   ;;  %1961 = vst [vmem:[#allocation3 + $0x228] sm:$0xf] %v6641_v2  ;;  %2376 = vst [vmem:[#allocation3 + $0x20c] sm:$0xf] %v6704_v15  ;;  %v8992_v21 = vmul.f32 %v10221_v4, %v8947_v63  ;;  %v8996_v45 = vmul.f32 %v10232_v19, %v8949_v13  ;;  %v8999_v62 = vmul.f32 %v10222_v40, %v1544_v43  ;;  %4563 = vmatprep.mubr.bf16.mxu1 %v7600_v38 }
 0x150   : > { %v10239_v39 = vld [vmem:[#allocation19_spill] sm:$0xff]  ;;  %2599 = vst [vmem:[#allocation3 + $0x1ec] sm:$0xf] %v6735_v14  ;;  %3014 = vst [vmem:[#allocation3 + $0x1d0] sm:$0xf] %v6798_v22  ;;  %v9002_v60 = vmul.f32 %v10233_v44, %v1545_v42  ;;  %v2852_v28 = vmul.f32 %v10224_v16, %v1544_v43  ;;  %v2853_v12 = vmul.f32 %v10229_v8, %v1545_v42  ;;  %v10242_v2 = vld [vmem:[#allocation22_spill] sm:$0xff]  ;;  %4716 = vmatprep.mubr.bf16.mxu0 %v7602_v25  ;;  %v9012_v8 = vpop.f32.mrf.mxu1 }
 0x151   : > { %v8986_v55 = vmul.f32 %v10239_v39, %v1545_v42  ;;  %10240 = vst [vmem:[#allocation14_spill] sm:$0xff] %v8999_v62  ;;  %v1164_v15 = vmul.f32 %v10242_v2, %v1132_v1  ;;  %v10243_v14 = vld [vmem:[#allocation21_spill] sm:$0xff]  ;;  %v1802_v22 = vmul.f32 %v10238_v32, %v1132_v1  ;;  %v2217_v17 = vmul.f32 %v10239_v39, %v1547_v35  ;;  %v1136_v43 = vld [vmem:[#allocation2 + $0xb7] sm:$0xff]  ;;  %v7671_v42 = vld [vmem:[%s10088_s2 + $0x1a8] sm:$0xff]  }
 0x152   : > { %10241 = vst [vmem:[#allocation16_spill] sm:$0xff] %v9002_v60  ;;  %v1579_v4 = vmul.f32 %v10243_v14, %v1547_v35  ;;  %v2440_v40 = vmul.f32 %v10232_v19, %v1132_v1  ;;  %v2855_v62 = vmul.f32 %v10233_v44, %v1547_v35  ;;  %v6796_v60 = vpack.c.bf16 %v2852_v28, %v2852_v28  ;;  %v1551_v19 = vld [vmem:[#allocation2 + $0xb1] sm:$0xff]  ;;  %v7686_v44 = vld [vmem:[%s10088_s2 + $0x1e0] sm:$0xff]  }
 0x153   : > { %v6797_v52 = vpack.c.bf16 %v2853_v12, %v2853_v12  ;;  %v6548_v6 = vpack.c.bf16 %v1164_v15, %v1164_v15  ;;  %7182 = vmatpush3.bf16.msra.mxu0 %v7655_v61  ;;  %v6642_v38 = vpack.c.bf16 %v1802_v22, %v1802_v22  ;;  %v6705_v26 = vpack.c.bf16 %v2217_v17, %v2217_v17  ;;  %v7604_v61 = vld [vmem:[#allocation3 + $0xd8] ss:$36 sps:$4 sm:$0xff]   ;;  %v7687_v28 = vld [vmem:[%s10088_s2 + $0x1a0] sm:$0xff]  }
 0x154   : > { %v6611_v16 = vpack.c.bf16 %v1579_v4, %v1579_v4  ;;  %v6736_v3 = vpack.c.bf16 %v2440_v40, %v2440_v40  ;;  %v6799_v34 = vpack.c.bf16 %v2855_v62, %v2855_v62  ;;  %7183 = vmatprep.subr.bf16.mxu0 %v7670_v33  ;;  %v9022_v1 = vmul.f32 %v10223_v50, %v8947_v63  ;;  %v9036_v33 = vpop.f32.mrf.mxu1  ;;  %v10246_v40 = vld [vmem:[#allocation45_spill] sm:$0xff] }
 0x155   : > { %v9026_v25 = vmul.f32 %v10225_v0, %v8949_v13  ;;  %3012 = vst [vmem:[#allocation3 + $0x188] sm:$0xf] %v6796_v60  ;;  %3013 = vst [vmem:[#allocation3 + $0x1ac] sm:$0xf] %v6797_v52  ;;  %v9030_v17 = vmul.f32 %v8498_v9, %v8855_v23  ;;  %v9034_v35 = vmul.f32 %v10242_v2, %v8857_v58  ;;  %v7605_v0 = vld [vmem:[#allocation3 + $0x98] ss:$36 sps:$4 sm:$0xff]   ;;  %4564 = vmatmul.mubr.bf16.gmra.mxu1 %v7604_v61 }
 0x156   : > { %1324 = vst [vmem:[#allocation3 + $0x288] sm:$0xf] %v6548_v6  ;;  %1739 = vst [vmem:[#allocation3 + $0x26c] sm:$0xf] %v6611_v16  ;;  %v9040_v13 = vmul.f32 %v8506_v18, %v8889_v41  ;;  %v9044_v6 = vmul.f32 %v10243_v14, %v8891_v30  ;;  %v2856_v9 = vmul.f32 %v10235_v10, %v8889_v41  ;;  %4717 = vmatmul.mubr.bf16.gmra.mxu0 %v7605_v0  ;;  %v10244_v41 = vld [vmem:[#allocation28_spill] sm:$0xff] }
 0x157   : > { %1962 = vst [vmem:[#allocation3 + $0x24c] sm:$0xf] %v6642_v38  ;;  %2377 = vst [vmem:[#allocation3 + $0x230] sm:$0xf] %v6705_v26  ;;  %v2857_v50 = vmul.f32 %v10239_v39, %v8891_v30  ;;  %v6538_v26 = vpack.c.bf16 %v8808_v27, %v8808_v27  ;;  %v6601_v18 = vpack.c.bf16 %v8825_v5, %v8825_v5  ;;  %v10245_v30 = vld [vmem:[#allocation29_spill] sm:$0xff]  ;;  %7184 = vmatpush3.bf16.msra.mxu0 %v7671_v42 }
 0x158   : > { %2600 = vst [vmem:[#allocation3 + $0x210] sm:$0xf] %v6736_v3  ;;  %3015 = vst [vmem:[#allocation3 + $0x1f4] sm:$0xf] %v6799_v34  ;;  %v6600_v3 = vpack.c.bf16 %v8813_v46, %v8813_v46  ;;  %v6632_v34 = vpack.c.bf16 %v8861_v37, %v8861_v37  ;;  %v6800_v63 = vpack.c.bf16 %v2856_v9, %v2856_v9  ;;  %v527_v37 = vpop.f32.mrf.mxu1  ;;  %vm952_vm12 = vcmp.ge.f32.partialorder %v10246_v40, 0.5 }
 0x159   : > { %v6801_v62 = vpack.c.bf16 %v2857_v50, %v2857_v50  ;;  %v1168_v10 = vmul.f32 %v10244_v41, %v1136_v43  ;;  %v1583_v39 = vmul.f32 %v10245_v30, %v1551_v19  ;;  %1314 = vst [vmem:[#allocation3 + $0x120] sm:$0xf] %v6538_v26  ;;  %1729 = vst [vmem:[#allocation3 + $0x104] sm:$0xf] %v6601_v18  ;;  %7185 = vmatprep.subr.bf16.mxu0 %v7686_v44 }
 0x15a   : > { %1728 = vst [vmem:[#allocation3 + $0xe0] sm:$0xf] %v6600_v3  ;;  %1952 = vst [vmem:[#allocation3 + $0xe4] sm:$0xf] %v6632_v34  ;;  %v1806_v27 = vmul.f32 %v8572_v20, %v1136_v43  ;;  %v2221_v46 = vmul.f32 %v10227_v59, %v1551_v19  ;;  %v2444_v5 = vmul.f32 %v10242_v2, %v1136_v43  ;;  %v7698_v2 = vld [vmem:[%s10088_s2 + $0x1d8] sm:$0xff]   ;;  %v9075_v42 = vpop.f32.mrf.mxu1  ;;  %vm1048_vm13 = vcmp.le.f32.partialorder %v10246_v40, 14.5 }
 0x15b   : > { %v2859_v60 = vmul.f32 %v10243_v14, %v1551_v19  ;;  %3016 = vst [vmem:[#allocation3 + $0x218] sm:$0xf] %v6800_v63  ;;  %3017 = vst [vmem:[#allocation3 + $0x23c] sm:$0xf] %v6801_v62  ;;  %v6552_v12 = vpack.c.bf16 %v1168_v10, %v1168_v10  ;;  %v6615_v15 = vpack.c.bf16 %v1583_v39, %v1583_v39  ;;  %7186 = vmatpush3.bf16.msra.mxu0 %v7687_v28  ;;  %v7606_v62 = vld [vmem:[#allocation3 + $0x124] ss:$36 sps:$4 sm:$0xff]  }
 0x15c   : > { %v6541_v4 = vpack.c.bf16 %v8899_v53, %v8899_v53  ;;  %v6635_v22 = vpack.c.bf16 %v8921_v57, %v8921_v57  ;;  %v6646_v14 = vpack.c.bf16 %v1806_v27, %v1806_v27  ;;  %v6709_v52 = vpack.c.bf16 %v2221_v46, %v2221_v46  ;;  %v10247_v53 = vld [vmem:[#allocation47_spill] sm:$0xff]  ;;  %v10248_v57 = vld [vmem:[#allocation48_spill] sm:$0xff]  ;;  %7187 = vmatprep.subr.bf16.mxu0 %v7698_v2 }
 0x15d   : > { %v6740_v16 = vpack.c.bf16 %v2444_v5, %v2444_v5  ;;  %v6803_v43 = vpack.c.bf16 %v2859_v60, %v2859_v60  ;;  %1328 = vst [vmem:[#allocation3 + $0x318] sm:$0xf] %v6552_v12  ;;  %1743 = vst [vmem:[#allocation3 + $0x2fc] sm:$0xf] %v6615_v15  ;;  %v650_v38 = vmax.f32 %v10247_v53, 0.0  ;;  %v616_v19 = vadd.f32 %v8257_v54, %v10248_v57  ;;  %v7712_v57 = vld [vmem:[%s10088_s2 + $0x188] sm:$0xff]  }
 0x15e   : > { %1317 = vst [vmem:[#allocation3 + $0x18c] sm:$0xf] %v6541_v4  ;;  %1955 = vst [vmem:[#allocation3 + $0x150] sm:$0xf] %v6635_v22  ;;  %v6542_v44 = vpack.c.bf16 %v8903_v47, %v8903_v47  ;;  %v6604_v61 = vpack.c.bf16 %v8914_v56, %v8914_v56  ;;  %v6605_v9 = vpack.c.bf16 %v8917_v11, %v8917_v11  ;;  %v7704_v47 = vld [vmem:[%s10088_s2 + $0x198] sm:$0xff]   ;;  %4571 = vmatprep.mubr.bf16.mxu1 %v7606_v62 }
 0x15f   : > { %1966 = vst [vmem:[#allocation3 + $0x2dc] sm:$0xf] %v6646_v14  ;;  %2381 = vst [vmem:[#allocation3 + $0x2c0] sm:$0xf] %v6709_v52  ;;  %v6636_v50 = vpack.c.bf16 %v8925_v31, %v8925_v31  ;;  %v585_v0 = vmul.f32 %v8988_v24, %v8248_v49  ;;  %v583_v26 = vmul.f32 %v8248_v49, %v9012_v8  ;;  %v648_v3 = vmax.f32 %v616_v19, 0.0  ;;  %v7705_v24 = vld [vmem:[%s10088_s2 + $0x1d0] sm:$0xff]  }
 0x160   : > { %2604 = vst [vmem:[#allocation3 + $0x2a0] sm:$0xf] %v6740_v16  ;;  %3019 = vst [vmem:[#allocation3 + $0x284] sm:$0xf] %v6803_v43  ;;  %v6587_v56 = vpack.c.bf16 %v650_v38, %v650_v38  ;;  %v6545_v11 = vpack.c.bf16 %v8976_v48, %v8976_v48  ;;  %v6639_v31 = vpack.c.bf16 %v8992_v21, %v8992_v21  ;;  %v540_v48 = vpop.f32.mrf.mxu1  ;;  %v9110_v21 = vld [vmem:[%s10088_s2 + $0x190] sm:$0xff]   ;;  %7188 = vmatpush3.bf16.msra.mxu0 %v7704_v47 }
 0x161   : > { %685 = vst [vmem:[#allocation2 + $0xd0] sm:$0xff] %v650_v38  ;;  %1318 = vst [vmem:[#allocation3 + $0x1b0] sm:$0xf] %v6542_v44  ;;  %v621_v8 = vadd.f32 %v8257_v54, %v585_v0  ;;  %v619_v18 = vadd.f32 %v8257_v54, %v583_v26  ;;  %v586_v34 = vmul.f32 %v9036_v33, %v8248_v49  ;;  %v7608_v46 = vld [vmem:[#allocation3 + $0xe4] ss:$36 sps:$4 sm:$0xff]   ;;  %7189 = vmatprep.subr.bf16.mxu0 %v7705_v24 }
 0x162   : > { %1732 = vst [vmem:[#allocation3 + $0x170] sm:$0xf] %v6604_v61  ;;  %1733 = vst [vmem:[#allocation3 + $0x194] sm:$0xf] %v6605_v9  ;;  %v584_v63 = vmul.f32 %v8248_v49, %v527_v37  ;;  %v6585_v10 = vpack.c.bf16 %v648_v3, %v648_v3  ;;  %v6546_v39 = vpack.c.bf16 %v8980_v7, %v8980_v7  ;;  %v7611_v5 = vld [vmem:[#allocation3 + $0x120] ss:$36 sps:$4 sm:$0xff]   ;;  %4724 = vmatprep.mubr.bf16.mxu0 %v7608_v46 }
 0x163   : > { %1956 = vst [vmem:[#allocation3 + $0x174] sm:$0xf] %v6636_v50  ;;  %1523 = vst [vmem:[#allocation3 + $0x388] sm:$0xf] %v6587_v56  ;;  %v6608_v33 = vpack.c.bf16 %v8983_v29, %v8983_v29  ;;  %v6609_v27 = vpack.c.bf16 %v8986_v55, %v8986_v55  ;;  %v653_v60 = vmax.f32 %v621_v8, 0.0  ;;  %v622_v37 = vadd.f32 %v8257_v54, %v586_v34  ;;  %v9145_v61 = vld [vmem:[#allocation2 + $0x10] sm:$0xff] }
 0x164   : > { %2161 = vst [vmem:[#allocation3 + $0x34c] sm:$0xf] %v6587_v56  ;;  %2799 = vst [vmem:[#allocation3 + $0x310] sm:$0xf] %v6587_v56  ;;  %v620_v28 = vadd.f32 %v8257_v54, %v584_v63  ;;  %v6640_v12 = vpack.c.bf16 %v8996_v45, %v8996_v45  ;;  %v7612_v15 = vld [vmem:[#allocation3 + $0xe0] ss:$36 sps:$4 sm:$0xff]   ;;  %v589_v29 = vmul.f32 %v9075_v42, %v8248_v49  ;;  %4572 = vmatmul.mubr.bf16.gmra.mxu1 %v7611_v5  ;;  %v7386_v5 = vpop.f32.mrf.mxu1 }
 0x165   : > { %683 = vst [vmem:[#allocation2 + $0xc0] sm:$0xff] %v648_v3  ;;  %1321 = vst [vmem:[#allocation3 + $0x21c] sm:$0xf] %v6545_v11  ;;  %v651_v7 = vmax.f32 %v619_v18, 0.0  ;;  %v587_v55 = vmul.f32 %v8248_v49, %v540_v48  ;;  %v6549_v4 = vpack.c.bf16 %v8871_v36, %v8871_v36  ;;  %v7709_v45 = vld [vmem:[%s10088_s2 + $0x1c8] sm:$0xff]   ;;  %v6590_v2 = vpack.c.bf16 %v653_v60, %v653_v60  ;;  %v10250_v50 = vld [vmem:[#allocation33_spill] sm:$0xff] }
 0x166   : > { %1959 = vst [vmem:[#allocation3 + $0x1e0] sm:$0xf] %v6639_v31  ;;  %1521 = vst [vmem:[#allocation3 + $0x340] sm:$0xf] %v6585_v10  ;;  %v7614_v22 = vld [vmem:[#allocation3 + $0x16c] ss:$36 sps:$4 sm:$0xff]   ;;  %v6643_v16 = vpack.c.bf16 %v9030_v17, %v9030_v17  ;;  %v9134_v43 = vmul.f32 %v10234_v51, %v8855_v23  ;;  %4725 = vmatmul.mubr.bf16.gmra.mxu0 %v7612_v15  ;;  %v625_v53 = vadd.f32 %v8257_v54, %v589_v29 }
 0x167   : > { %2159 = vst [vmem:[#allocation3 + $0x304] sm:$0xf] %v6585_v10  ;;  %2797 = vst [vmem:[#allocation3 + $0x2c8] sm:$0xf] %v6585_v10  ;;  %v654_v14 = vmax.f32 %v622_v37, 0.0  ;;  %v652_v52 = vmax.f32 %v620_v28, 0.0  ;;  %v6588_v42 = vpack.c.bf16 %v651_v7, %v651_v7  ;;  %v623_v38 = vadd.f32 %v8257_v54, %v587_v55  ;;  %4579 = vmatprep.mubr.bf16.mxu1 %v7614_v22 }
 0x168   : > { %1322 = vst [vmem:[#allocation3 + $0x240] sm:$0xf] %v6546_v39  ;;  %1736 = vst [vmem:[#allocation3 + $0x200] sm:$0xf] %v6608_v33  ;;  %v7616_v36 = vld [vmem:[#allocation3 + $0x12c] ss:$36 sps:$4 sm:$0xff]   ;;  %v9143_v17 = vmul.f32 %v10238_v32, %v8857_v58  ;;  %7190 = vmatpush3.bf16.msra.mxu0 %v9110_v21  ;;  %v9174_v15 = vmul.f32 %v7386_v5, %v8248_v49 }
 0x169   : > { %1737 = vst [vmem:[#allocation3 + $0x224] sm:$0xf] %v6609_v27  ;;  %688 = vst [vmem:[#allocation2 + $0xe8] sm:$0xff] %v653_v60  ;;  %v1139_v23 = vld [vmem:[#allocation2 + $0xcf] sm:$0xff]  ;;  %v6591_v19 = vpack.c.bf16 %v654_v14, %v654_v14  ;;  %v6589_v44 = vpack.c.bf16 %v652_v52, %v652_v52  ;;  %v9150_v9 = vsel %vm952_vm12, 1.0, %v9145_v61  ;;  %4732 = vmatprep.mubr.bf16.mxu0 %v7616_v36  ;;  %v10249_v58 = vld [vmem:[#allocation32_spill] sm:$0xff]  ;;  %7191 = vmatprep.subr.bf16.mxu0 %v7709_v45 }
 0x16a   : > { %1960 = vst [vmem:[#allocation3 + $0x204] sm:$0xf] %v6640_v12  ;;  %686 = vst [vmem:[#allocation2 + $0xd8] sm:$0xff] %v651_v7  ;;  %v1554_v51 = vld [vmem:[#allocation2 + $0xc9] sm:$0xff]  ;;  %v1171_v32 = vmul.f32 %v10249_v58, %v1139_v23  ;;  %v7716_v11 = vld [vmem:[%s10088_s2 + $0x1c0] sm:$0xff]   ;;  %v9164_v48 = vmax.f32 %v625_v53, 0.0 }
 0x16b   : > { %1325 = vst [vmem:[#allocation3 + $0x2ac] sm:$0xf] %v6549_v4  ;;  %1526 = vst [vmem:[#allocation3 + $0x3f4] sm:$0xf] %v6590_v2  ;;  %v1586_v0 = vmul.f32 %v10250_v50, %v1554_v51  ;;  %v10251_v26 = vld [vmem:[#allocation31_spill] sm:$0xff]  ;;  %v10252_v56 = vld [vmem:[#allocation30_spill] sm:$0xff] }
 0x16c   : > { %2164 = vst [vmem:[#allocation3 + $0x3b8] sm:$0xf] %v6590_v2  ;;  %2802 = vst [vmem:[#allocation3 + $0x37c] sm:$0xf] %v6590_v2  ;;  %v1809_v47 = vmul.f32 %v10251_v26, %v1139_v23  ;;  %v2224_v3 = vmul.f32 %v10252_v56, %v1554_v51  ;;  %v10253_v31 = vld [vmem:[#allocation26_spill] sm:$0xff]  ;;  %v10254_v8 = vld [vmem:[#allocation25_spill] sm:$0xff]  ;;  %v6555_v62 = vpack.c.bf16 %v1171_v32, %v1171_v32  ;;  %7192 = vmatpush3.bf16.msra.mxu0 %v7712_v57 }
 0x16d   : > { %689 = vst [vmem:[#allocation2 + $0xf0] sm:$0xff] %v654_v14  ;;  %687 = vst [vmem:[#allocation2 + $0xe0] sm:$0xff] %v652_v52  ;;  %v2447_v24 = vmul.f32 %v10253_v31, %v1139_v23  ;;  %v2862_v18 = vmul.f32 %v10254_v8, %v1554_v51  ;;  %v1137_v34 = vld [vmem:[#allocation2 + $0xbf] sm:$0xff]  ;;  %v9162_v63 = vld [vmem:[#allocation2 + $0xc7] sm:$0xff]  ;;  %v9166_v21 = vmax.f32 %v623_v38, 0.0  ;;  %v6618_v10 = vpack.c.bf16 %v1586_v0, %v1586_v0 }
 0x16e   : > { %1963 = vst [vmem:[#allocation3 + $0x270] sm:$0xf] %v6643_v16  ;;  %1524 = vst [vmem:[#allocation3 + $0x3ac] sm:$0xf] %v6588_v42  ;;  %v6649_v39 = vpack.c.bf16 %v1809_v47, %v1809_v47  ;;  %v6712_v33 = vpack.c.bf16 %v2224_v3, %v2224_v3  ;;  %v1552_v27 = vld [vmem:[#allocation2 + $0xb9] sm:$0xff]  ;;  %v1553_v46 = vld [vmem:[#allocation2 + $0xc1] sm:$0xff]  ;;  %v9169_v28 = vmul.f32 %v10251_v26, %v1137_v34  ;;  %7193 = vmatprep.subr.bf16.mxu0 %v7716_v11 }
 0x16f   : > { %2162 = vst [vmem:[#allocation3 + $0x370] sm:$0xf] %v6588_v42  ;;  %2800 = vst [vmem:[#allocation3 + $0x334] sm:$0xf] %v6588_v42  ;;  %v6743_v60 = vpack.c.bf16 %v2447_v24, %v2447_v24  ;;  %v6806_v37 = vpack.c.bf16 %v2862_v18, %v2862_v18  ;;  %v7618_v12 = vld [vmem:[#allocation3 + $0x168] ss:$36 sps:$4 sm:$0xff]   ;;  %v9185_v4 = vmul.f32 %v10252_v56, %v1552_v27 }
 0x170   : > { %1527 = vst [vmem:[#allocation3 + $0x418] sm:$0xf] %v6591_v19  ;;  %2165 = vst [vmem:[#allocation3 + $0x3dc] sm:$0xf] %v6591_v19  ;;  %v7717_v7 = vld [vmem:[%s10088_s2 + $0x180] sm:$0xff]   ;;  %v10255_v29 = vld [vmem:[#allocation34_spill] sm:$0xff]  ;;  %v9191_v2 = vmul.f32 %v10253_v31, %v1137_v34  ;;  %v9195_v16 = vmul.f32 %v10244_v41, %v9162_v63  ;;  %v9198_v36 = vmul.f32 %v10254_v8, %v1552_v27  ;;  %4580 = vmatmul.mubr.bf16.gmra.mxu1 %v7618_v12 }
 0x171   : > { %2803 = vst [vmem:[#allocation3 + $0x3a0] sm:$0xf] %v6591_v19  ;;  %1525 = vst [vmem:[#allocation3 + $0x3d0] sm:$0xf] %v6589_v44  ;;  %v9182_v55 = vmul.f32 %v10255_v29, %v9162_v63  ;;  %v10256_v45 = vld [vmem:[#allocation35_spill] sm:$0xff]  ;;  %v9201_v42 = vmul.f32 %v10245_v30, %v1553_v46  ;;  %v10257_v53 = vld [vmem:[#allocation24_spill] sm:$0xff]  ;;  %v2861_v32 = vmul.f32 %v10227_v59, %v1553_v46  ;;  %7194 = vmatpush3.bf16.msra.mxu0 %v7717_v7 }
 0x172   : > { %2163 = vst [vmem:[#allocation3 + $0x394] sm:$0xf] %v6589_v44  ;;  %2801 = vst [vmem:[#allocation3 + $0x358] sm:$0xf] %v6589_v44  ;;  %v9188_v22 = vmul.f32 %v10256_v45, %v1553_v46  ;;  %v7619_v14 = vld [vmem:[#allocation3 + $0x128] ss:$36 sps:$4 sm:$0xff]   ;;  %v9204_v38 = vmul.f32 %v10257_v53, %v1137_v34 }
 0x173   : > { %692 = vst [vmem:[#allocation2 + $0x108] sm:$0xff] %v9164_v48  ;;  %690 = vst [vmem:[#allocation2 + $0xf8] sm:$0xff] %v9166_v21  ;;  %v7620_v52 = vld [vmem:[#allocation3 + $0x1b4] ss:$36 sps:$4 sm:$0xff]   ;;  %v1140_v23 = vld [vmem:[#allocation2 + $0xd7] sm:$0xff]  ;;  %4733 = vmatmul.mubr.bf16.gmra.mxu0 %v7619_v14 }
 0x174   : > { %1331 = vst [vmem:[#allocation3 + $0x384] sm:$0xf] %v6555_v62  ;;  %1746 = vst [vmem:[#allocation3 + $0x368] sm:$0xf] %v6618_v10  ;;  %v7622_v57 = vld [vmem:[#allocation3 + $0x174] ss:$36 sps:$4 sm:$0xff]   ;;  %4587 = vmatprep.mubr.bf16.mxu1 %v7620_v52  ;;  %v1810_v24 = vmul.f32 %v10255_v29, %v1140_v23  ;;  %v2448_v18 = vmul.f32 %v10244_v41, %v1140_v23  ;;  %v6805_v10 = vpack.c.bf16 %v2861_v32, %v2861_v32 }
 0x175   : > { %1969 = vst [vmem:[#allocation3 + $0x348] sm:$0xf] %v6649_v39  ;;  %2384 = vst [vmem:[#allocation3 + $0x32c] sm:$0xf] %v6712_v33  ;;  %v1555_v51 = vld [vmem:[#allocation2 + $0xd1] sm:$0xff]  ;;  %v10261_v3 = vld [vmem:[#allocation46_spill] sm:$0xff]  ;;  %4740 = vmatprep.mubr.bf16.mxu0 %v7622_v57 }
 0x176   : > { %2607 = vst [vmem:[#allocation3 + $0x30c] sm:$0xf] %v6743_v60  ;;  %3022 = vst [vmem:[#allocation3 + $0x2f0] sm:$0xf] %v6806_v37  ;;  %v10259_v19 = vld [vmem:[#allocation23_spill] sm:$0xff]  ;;  %v10260_v0 = vld [vmem:[#allocation36_spill] sm:$0xff]  ;;  %v2225_v8 = vmul.f32 %v10256_v45, %v1555_v51  ;;  %v2863_v59 = vmul.f32 %v10245_v30, %v1555_v51  ;;  %v6650_v46 = vpack.c.bf16 %v1810_v24, %v1810_v24 }
 0x177   : > { %10258 = vst [vmem:[#allocation15_spill] sm:$0xff] %v9204_v38  ;;  %v2860_v44 = vmul.f32 %v10259_v19, %v1552_v27  ;;  %v1172_v47 = vmul.f32 %v10260_v0, %v1140_v23  ;;  %vm1049_vm14 = vcmp.le.f32.partialorder %v10261_v3, 14.5  ;;  %v10262_v11 = vld [vmem:[#allocation37_spill] sm:$0xff]  ;;  %v1143_v34 = vld [vmem:[#allocation2 + $0xef] sm:$0xff]  ;;  %v6744_v60 = vpack.c.bf16 %v2448_v18, %v2448_v18  ;;  %3021 = vst [vmem:[#allocation3 + $0x2cc] sm:$0xf] %v6805_v10 }
 0x178   : > { %v1587_v31 = vmul.f32 %v10262_v11, %v1555_v51  ;;  %v1558_v33 = vld [vmem:[#allocation2 + $0xe9] sm:$0xff]  ;;  %v6713_v5 = vpack.c.bf16 %v2225_v8, %v2225_v8  ;;  %v7625_v37 = vld [vmem:[#allocation3 + $0x1b0] ss:$36 sps:$4 sm:$0xff]   ;;  %v6807_v14 = vpack.c.bf16 %v2863_v59, %v2863_v59  ;;  %v10264_v23 = vld [vmem:[#allocation40_spill] sm:$0xff]  ;;  %1970 = vst [vmem:[#allocation3 + $0x36c] sm:$0xf] %v6650_v46  ;;  %v2451_v24 = vmul.f32 %v10249_v58, %v1143_v34 }
 0x179   : > { %v6804_v62 = vpack.c.bf16 %v2860_v44, %v2860_v44  ;;  %v6556_v39 = vpack.c.bf16 %v1172_v47, %v1172_v47  ;;  %v9215_v12 = vld [vmem:[#allocation2 + $0xdf] sm:$0xff]  ;;  %v7628_v52 = vld [vmem:[#allocation3 + $0x1fc] ss:$36 sps:$4 sm:$0xff]   ;;  %v1590_v19 = vmul.f32 %v10264_v23, %v1558_v33  ;;  %v9224_v44 = vmul.f32 %v8572_v20, %v9162_v63  ;;  %2608 = vst [vmem:[#allocation3 + $0x330] sm:$0xf] %v6744_v60 }
 0x17a   : > { %v6619_v27 = vpack.c.bf16 %v1587_v31, %v1587_v31  ;;  %v7626_v41 = vld [vmem:[#allocation3 + $0x170] ss:$36 sps:$4 sm:$0xff]   ;;  %v10265_v30 = vld [vmem:[#allocation39_spill] sm:$0xff]  ;;  %2385 = vst [vmem:[#allocation3 + $0x350] sm:$0xf] %v6713_v5  ;;  %v10267_v47 = vld [vmem:[#allocation38_spill] sm:$0xff]  ;;  %v2866_v8 = vmul.f32 %v10250_v50, %v1558_v33  ;;  %4588 = vmatmul.mubr.bf16.gmra.mxu1 %v7625_v37  ;;  %v6747_v46 = vpack.c.bf16 %v2451_v24, %v2451_v24 }
 0x17b   : > { %3020 = vst [vmem:[#allocation3 + $0x2a8] sm:$0xf] %v6804_v62  ;;  %1332 = vst [vmem:[#allocation3 + $0x3a8] sm:$0xf] %v6556_v39  ;;  %v10263_v53 = vld [vmem:[#allocation41_spill] sm:$0xff]  ;;  %v1813_v51 = vmul.f32 %v10265_v30, %v1143_v34  ;;  %v2228_v31 = vmul.f32 %v10267_v47, %v1558_v33  ;;  %v6622_v62 = vpack.c.bf16 %v1590_v19, %v1590_v19  ;;  %v1144_v59 = vld [vmem:[#allocation2 + $0xf7] sm:$0xff]  ;;  %4741 = vmatmul.mubr.bf16.gmra.mxu0 %v7626_v41 }
 0x17c   : > { %v1175_v57 = vmul.f32 %v10263_v53, %v1143_v34  ;;  %v9220_v7 = vld [vmem:[#allocation2 + $0xe7] sm:$0xff]  ;;  %10266 = vst [vmem:[#allocation17_spill] sm:$0xff] %v9224_v44  ;;  %1747 = vst [vmem:[#allocation3 + $0x38c] sm:$0xf] %v6619_v27  ;;  %v9231_v39 = vmul.f32 %v10265_v30, %v9215_v12  ;;  %v1556_v20 = vld [vmem:[#allocation2 + $0xd9] sm:$0xff]  ;;  %v6810_v5 = vpack.c.bf16 %v2866_v8, %v2866_v8  ;;  %4595 = vmatprep.mubr.bf16.mxu1 %v7628_v52 }
 0x17d   : > { %v7630_v32 = vld [vmem:[#allocation3 + $0x1bc] ss:$36 sps:$4 sm:$0xff]   ;;  %3023 = vst [vmem:[#allocation3 + $0x314] sm:$0xf] %v6807_v14  ;;  %v6653_v10 = vpack.c.bf16 %v1813_v51, %v1813_v51  ;;  %v1557_v63 = vld [vmem:[#allocation2 + $0xe1] sm:$0xff]  ;;  %v6716_v27 = vpack.c.bf16 %v2228_v31, %v2228_v31  ;;  %v9238_v33 = vmul.f32 %v10267_v47, %v1556_v20  ;;  %v9245_v37 = vmul.f32 %v10249_v58, %v9215_v12 }
 0x17e   : > { %v6559_v18 = vpack.c.bf16 %v1175_v57, %v1175_v57  ;;  %v10268_v60 = vld [vmem:[#allocation42_spill] sm:$0xff]  ;;  %1750 = vst [vmem:[#allocation3 + $0x3f8] sm:$0xf] %v6622_v62  ;;  %v10269_v14 = vld [vmem:[#allocation43_spill] sm:$0xff]  ;;  %v9250_v51 = vsel %vm1048_vm13, 1.0, %v9145_v61  ;;  %4748 = vmatprep.mubr.bf16.mxu0 %v7630_v32  ;;  %v9254_v41 = vmul.f32 %v10260_v0, %v9220_v7  ;;  %v9257_v52 = vmul.f32 %v10250_v50, %v1556_v20 }
 0x17f   : > { %v9235_v34 = vmul.f32 %v10268_v60, %v9220_v7  ;;  %1973 = vst [vmem:[#allocation3 + $0x3d8] sm:$0xf] %v6653_v10  ;;  %v9241_v57 = vmul.f32 %v10269_v14, %v1557_v63  ;;  %v1559_v19 = vld [vmem:[#allocation2 + $0xf1] sm:$0xff]  ;;  %2388 = vst [vmem:[#allocation3 + $0x3bc] sm:$0xf] %v6716_v27  ;;  %v9260_v58 = vmul.f32 %v10262_v11, %v1557_v63  ;;  %v9265_v40 = vsel %vm1049_vm14, 1.0, %v9145_v61 }
 0x180   : > { %1335 = vst [vmem:[#allocation3 + $0x414] sm:$0xf] %v6559_v18  ;;  %2611 = vst [vmem:[#allocation3 + $0x39c] sm:$0xf] %v6747_v46  ;;  %v2864_v32 = vmul.f32 %v10252_v56, %v1556_v20  ;;  %v2865_v31 = vmul.f32 %v10256_v45, %v1557_v63  ;;  %v6688_v24 = vpack.c.bf16 %v9164_v48, %v9164_v48  ;;  %v10272_v18 = vld [vmem:[#allocation44_spill] sm:$0xff]  ;;  %v543_v46 = vpop.f32.mrf.mxu1  ;;  %vm953_vm15 = vcmp.ge.f32.partialorder %v10261_v3, 0.5 }
 0x181   : > { %3026 = vst [vmem:[#allocation3 + $0x380] sm:$0xf] %v6810_v5  ;;  %10270 = vst [vmem:[#allocation18_spill] sm:$0xff] %v9257_v52  ;;  %v1176_v8 = vmul.f32 %v9150_v9, %v1144_v59  ;;  %v6592_v50 = vpack.c.bf16 %v9166_v21, %v9166_v21  ;;  %v1591_v62 = vmul.f32 %v10272_v18, %v1559_v19  ;;  %v7632_v56 = vld [vmem:[#allocation3 + $0x1f8] ss:$36 sps:$4 sm:$0xff]  }
 0x182   : > { %10271 = vst [vmem:[#allocation20_spill] sm:$0xff] %v9260_v58  ;;  %v1814_v10 = vmul.f32 %v10268_v60, %v1144_v59  ;;  %v2229_v27 = vmul.f32 %v10269_v14, %v1559_v19  ;;  %v6808_v5 = vpack.c.bf16 %v2864_v32, %v2864_v32  ;;  %v6809_v58 = vpack.c.bf16 %v2865_v31, %v2865_v31  ;;  %v7633_v20 = vld [vmem:[#allocation3 + $0x1b8] ss:$36 sps:$4 sm:$0xff]   ;;  %v7634_v63 = vld [vmem:[#allocation3 + $0x244] ss:$36 sps:$4 sm:$0xff]  }
 0x183   : > { %2168 = vst [vmem:[#allocation3 + $0x448] sm:$0xf] %v6688_v24  ;;  %2806 = vst [vmem:[#allocation3 + $0x40c] sm:$0xf] %v6688_v24  ;;  %v6560_v45 = vpack.c.bf16 %v1176_v8, %v1176_v8  ;;  %v2452_v48 = vmul.f32 %v10260_v0, %v1144_v59  ;;  %v6623_v52 = vpack.c.bf16 %v1591_v62, %v1591_v62  ;;  %v7636_v31 = vld [vmem:[#allocation3 + $0x204] ss:$36 sps:$4 sm:$0xff]   ;;  %4596 = vmatmul.mubr.bf16.gmra.mxu1 %v7632_v56 }
 0x184   : > { %1528 = vst [vmem:[#allocation3 + $0x43c] sm:$0xf] %v6592_v50  ;;  %v6654_v21 = vpack.c.bf16 %v1814_v10, %v1814_v10  ;;  %2166 = vst [vmem:[#allocation3 + $0x400] sm:$0xf] %v6592_v50  ;;  %v6717_v44 = vpack.c.bf16 %v2229_v27, %v2229_v27  ;;  %v2867_v38 = vmul.f32 %v10262_v11, %v1559_v19  ;;  %v10273_v11 = vld [vmem:[#allocation56_spill] sm:$0xff]  ;;  %4749 = vmatmul.mubr.bf16.gmra.mxu0 %v7633_v20  ;;  %v10276_v56 = vld [vmem:[#allocation50_spill] sm:$0xff] }
 0x185   : > { %2804 = vst [vmem:[#allocation3 + $0x3c4] sm:$0xf] %v6592_v50  ;;  %v9282_v32 = vmul.f32 %v10251_v26, %v9215_v12  ;;  %3024 = vst [vmem:[#allocation3 + $0x338] sm:$0xf] %v6808_v5  ;;  %v6748_v0 = vpack.c.bf16 %v2452_v48, %v2452_v48  ;;  %v626_v59 = vadd.f32 %v8257_v54, %v9174_v15  ;;  %v10274_v26 = vld [vmem:[#allocation12_spill] sm:$0xff]  ;;  %4603 = vmatprep.mubr.bf16.mxu1 %v7634_v63  ;;  %v6859_v48 = vpop.f32.mrf.mxu1 }
 0x186   : > { %3025 = vst [vmem:[#allocation3 + $0x35c] sm:$0xf] %v6809_v58  ;;  %1336 = vst [vmem:[#allocation3 + $0x438] sm:$0xf] %v6560_v45  ;;  %v588_v24 = vmul.f32 %v8248_v49, %v543_v46  ;;  %v6811_v8 = vpack.c.bf16 %v2867_v38, %v2867_v38  ;;  %v6550_v19 = vpack.c.bf16 %v10273_v11, %v10273_v11  ;;  %v10275_v58 = vld [vmem:[#allocation13_spill] sm:$0xff]  ;;  %4756 = vmatprep.mubr.bf16.mxu0 %v7636_v31  ;;  %v10279_v63 = vld [vmem:[#allocation52_spill] sm:$0xff] }
 0x187   : > { %1751 = vst [vmem:[#allocation3 + $0x41c] sm:$0xf] %v6623_v52  ;;  %1974 = vst [vmem:[#allocation3 + $0x3fc] sm:$0xf] %v6654_v21  ;;  %v6612_v12 = vpack.c.bf16 %v10274_v26, %v10274_v26  ;;  %v6613_v50 = vpack.c.bf16 %v10275_v58, %v10275_v58  ;;  %v658_v15 = vmax.f32 %v626_v59, 0.0  ;;  %v6644_v38 = vpack.c.bf16 %v9034_v35, %v9034_v35  ;;  %v10277_v45 = vld [vmem:[#allocation49_spill] sm:$0xff] }
 0x188   : > { %2389 = vst [vmem:[#allocation3 + $0x3e0] sm:$0xf] %v6717_v44  ;;  %2612 = vst [vmem:[#allocation3 + $0x3c0] sm:$0xf] %v6748_v0  ;;  %v624_v49 = vadd.f32 %v8257_v54, %v588_v24  ;;  %v6553_v44 = vpack.c.bf16 %v9169_v28, %v9169_v28  ;;  %v6647_v52 = vpack.c.bf16 %v9191_v2, %v9191_v2  ;;  %v7642_v5 = vld [vmem:[#allocation3 + $0x200] ss:$36 sps:$4 sm:$0xff]  }
 0x189   : > { %3027 = vst [vmem:[#allocation3 + $0x3a4] sm:$0xf] %v6811_v8  ;;  %1326 = vst [vmem:[#allocation3 + $0x2d0] sm:$0xf] %v6550_v19  ;;  %v6554_v62 = vpack.c.bf16 %v9182_v55, %v9182_v55  ;;  %v6616_v54 = vpack.c.bf16 %v9185_v4, %v9185_v4  ;;  %v6617_v35 = vpack.c.bf16 %v9188_v22, %v9188_v22  ;;  %v10280_v31 = vld [vmem:[#allocation53_spill] sm:$0xff]  ;;  %v10281_v0 = vld [vmem:[#allocation54_spill] sm:$0xff] }
 0x18a   : > { %1740 = vst [vmem:[#allocation3 + $0x290] sm:$0xf] %v6612_v12  ;;  %1741 = vst [vmem:[#allocation3 + $0x2b4] sm:$0xf] %v6613_v50  ;;  %v6689_v10 = vpack.c.bf16 %v658_v15, %v658_v15  ;;  %v656_v28 = vmax.f32 %v624_v49, 0.0  ;;  %v6648_v27 = vpack.c.bf16 %v9195_v16, %v9195_v16  ;;  %v6557_v2 = vpack.c.bf16 %v9231_v39, %v9231_v39  ;;  %v10282_v8 = vld [vmem:[#allocation55_spill] sm:$0xff] }
 0x18b   : > { %693 = vst [vmem:[#allocation2 + $0x110] sm:$0xff] %v658_v15  ;;  %1964 = vst [vmem:[#allocation3 + $0x294] sm:$0xf] %v6644_v38  ;;  %v6651_v55 = vpack.c.bf16 %v9245_v37, %v9245_v37  ;;  %v6558_v4 = vpack.c.bf16 %v9235_v34, %v9235_v34  ;;  %v6620_v22 = vpack.c.bf16 %v9238_v33, %v9238_v33  ;;  %v7641_v16 = vld [vmem:[#allocation3 + $0x240] ss:$36 sps:$4 sm:$0xff]   ;;  %v10283_v19 = vld [vmem:[#allocation9_spill] sm:$0xff] }
 0x18c   : > { %1329 = vst [vmem:[#allocation3 + $0x33c] sm:$0xf] %v6553_v44  ;;  %1967 = vst [vmem:[#allocation3 + $0x300] sm:$0xf] %v6647_v52  ;;  %v6621_v46 = vpack.c.bf16 %v9241_v57, %v9241_v57  ;;  %v6593_v39 = vpack.c.bf16 %v656_v28, %v656_v28  ;;  %v6652_v37 = vpack.c.bf16 %v9254_v41, %v9254_v41  ;;  %v10278_v57 = vld [vmem:[#allocation51_spill] sm:$0xff]  ;;  %v10284_v12 = vld [vmem:[#allocation10_spill] sm:$0xff]  ;;  %4604 = vmatmul.mubr.bf16.gmra.mxu1 %v7641_v16 }
 0x18d   : > { %1330 = vst [vmem:[#allocation3 + $0x360] sm:$0xf] %v6554_v62  ;;  %1744 = vst [vmem:[#allocation3 + $0x320] sm:$0xf] %v6616_v54  ;;  %v6690_v34 = vpack.c.bf16 %v10276_v56, %v10276_v56  ;;  %v6691_v33 = vpack.c.bf16 %v10277_v45, %v10277_v45  ;;  %v6722_v20 = vpack.c.bf16 %v10278_v57, %v10278_v57  ;;  %v7644_v24 = vld [vmem:[#allocation3 + $0x28c] ss:$36 sps:$4 sm:$0xff]   ;;  %4757 = vmatmul.mubr.bf16.gmra.mxu0 %v7642_v5 }
 0x18e   : > { %1745 = vst [vmem:[#allocation3 + $0x344] sm:$0xf] %v6617_v35  ;;  %2169 = vst [vmem:[#allocation3 + $0x46c] sm:$0xf] %v6689_v10  ;;  %v6694_v21 = vpack.c.bf16 %v10279_v63, %v10279_v63  ;;  %v6695_v41 = vpack.c.bf16 %v10280_v31, %v10280_v31  ;;  %v6725_v59 = vpack.c.bf16 %v10281_v0, %v10281_v0  ;;  %v10285_v50 = vld [vmem:[#allocation11_spill] sm:$0xff]  ;;  %v10287_v52 = vld [vmem:[#allocation14_spill] sm:$0xff]  ;;  %4611 = vmatprep.mubr.bf16.mxu1 %v7644_v24 }
 0x18f   : > { %2807 = vst [vmem:[#allocation3 + $0x430] sm:$0xf] %v6689_v10  ;;  %691 = vst [vmem:[#allocation2 + $0x100] sm:$0xff] %v656_v28  ;;  %v6726_v11 = vpack.c.bf16 %v10282_v8, %v10282_v8  ;;  %v6698_v26 = vpack.c.bf16 %v10283_v19, %v10283_v19  ;;  %v6699_v58 = vpack.c.bf16 %v10284_v12, %v10284_v12  ;;  %v7646_v49 = vld [vmem:[#allocation3 + $0x24c] ss:$36 sps:$4 sm:$0xff]   ;;  %v10286_v38 = vld [vmem:[#allocation27_spill] sm:$0xff] }
 0x190   : > { %1968 = vst [vmem:[#allocation3 + $0x324] sm:$0xf] %v6648_v27  ;;  %1333 = vst [vmem:[#allocation3 + $0x3cc] sm:$0xf] %v6557_v2  ;;  %v6729_v15 = vpack.c.bf16 %v10285_v50, %v10285_v50  ;;  %v6730_v44 = vpack.c.bf16 %v10286_v38, %v10286_v38  ;;  %v6702_v62 = vpack.c.bf16 %v10287_v52, %v10287_v52  ;;  %v10288_v54 = vld [vmem:[#allocation16_spill] sm:$0xff]  ;;  %v9351_v28 = vsel %vm953_vm15, 1.0, %v9145_v61 }
 0x191   : > { %1971 = vst [vmem:[#allocation3 + $0x390] sm:$0xf] %v6651_v55  ;;  %1334 = vst [vmem:[#allocation3 + $0x3f0] sm:$0xf] %v6558_v4  ;;  %v6703_v35 = vpack.c.bf16 %v10288_v54, %v10288_v54  ;;  %v6733_v10 = vpack.c.bf16 %v9022_v1, %v9022_v1  ;;  %v6734_v27 = vpack.c.bf16 %v9026_v25, %v9026_v25  ;;  %v6860_v55 = vpop.f32.mrf.mxu1  ;;  %4764 = vmatprep.mubr.bf16.mxu0 %v7646_v49  ;;  %v7648_v24 = vld [vmem:[#allocation3 + $0x288] ss:$36 sps:$4 sm:$0xff]  }
 0x192   : > { %1748 = vst [vmem:[#allocation3 + $0x3b0] sm:$0xf] %v6620_v22  ;;  %1749 = vst [vmem:[#allocation3 + $0x3d4] sm:$0xf] %v6621_v46  ;;  %v6706_v2 = vpack.c.bf16 %v9040_v13, %v9040_v13  ;;  %v6707_v1 = vpack.c.bf16 %v9044_v6, %v9044_v6  ;;  %v9361_v4 = vmul.f32 %v10255_v29, %v9220_v7  ;;  %v1785_v3 = vld [vmem:[#allocation2 + $0x10f] sm:$0xff]  ;;  %v2424_v5 = vld [vmem:[#allocation2 + $0x117] sm:$0xff] }
 0x193   : > { %1529 = vst [vmem:[#allocation3 + $0x460] sm:$0xf] %v6593_v39  ;;  %2167 = vst [vmem:[#allocation3 + $0x424] sm:$0xf] %v6593_v39  ;;  %v2200_v22 = vld [vmem:[#allocation2 + $0x109] sm:$0xff]  ;;  %v2201_v46 = vld [vmem:[#allocation2 + $0x111] sm:$0xff]  ;;  %v6737_v25 = vpack.c.bf16 %v9134_v43, %v9134_v43  ;;  %v9365_v13 = vadd.f32 %v6860_v55, %v6859_v48  ;;  %v6738_v6 = vpack.c.bf16 %v9143_v17, %v9143_v17 }
 0x194   : > { %2805 = vst [vmem:[#allocation3 + $0x3e8] sm:$0xf] %v6593_v39  ;;  %1972 = vst [vmem:[#allocation3 + $0x3b4] sm:$0xf] %v6652_v37  ;;  %v1817_v16 = vmul.f32 %v9351_v28, %v1785_v3  ;;  %v2232_v29 = vmul.f32 %v9250_v51, %v2200_v22  ;;  %v2233_v7 = vmul.f32 %v9265_v40, %v2201_v46  ;;  %v7650_v12 = vld [vmem:[#allocation3 + $0x2d4] ss:$36 sps:$4 sm:$0xff]   ;;  %4612 = vmatmul.mubr.bf16.gmra.mxu1 %v7648_v24 }
 0x195   : > { %2362 = vst [vmem:[#allocation3 + $0x14] sm:$0xf] %v6690_v34  ;;  %2363 = vst [vmem:[#allocation3 + $0x38] sm:$0xf] %v6691_v33  ;;  %v2455_v39 = vmul.f32 %v10263_v53, %v1785_v3  ;;  %v2456_v37 = vmul.f32 %v9150_v9, %v2424_v5  ;;  %v2870_v43 = vmul.f32 %v10264_v23, %v2200_v22  ;;  %v7652_v38 = vld [vmem:[#allocation3 + $0x294] ss:$36 sps:$4 sm:$0xff]   ;;  %4619 = vmatprep.mubr.bf16.mxu1 %v7650_v12 }
 0x196   : > { %2586 = vst [vmem:[#allocation3 + $0x18] sm:$0xf] %v6722_v20  ;;  %2366 = vst [vmem:[#allocation3 + $0xa4] sm:$0xf] %v6694_v21  ;;  %v2871_v56 = vmul.f32 %v10272_v18, %v2201_v46  ;;  %v1145_v34 = vld [vmem:[#allocation2 + $0xff] sm:$0xff]  ;;  %v6710_v17 = vpack.c.bf16 %v9198_v36, %v9198_v36  ;;  %v6657_v45 = vpack.c.bf16 %v1817_v16, %v1817_v16  ;;  %v1784_v21 = vld [vmem:[#allocation2 + $0x107] sm:$0xff] }
 0x197   : > { %2367 = vst [vmem:[#allocation3 + $0xc8] sm:$0xf] %v6695_v41  ;;  %2589 = vst [vmem:[#allocation3 + $0x84] sm:$0xf] %v6725_v59  ;;  %v6720_v33 = vpack.c.bf16 %v2232_v29, %v2232_v29  ;;  %v6721_v48 = vpack.c.bf16 %v2233_v7, %v2233_v7  ;;  %v6751_v57 = vpack.c.bf16 %v2455_v39, %v2455_v39  ;;  %v1560_v20 = vld [vmem:[#allocation2 + $0xf9] sm:$0xff]  ;;  %v1561_v63 = vld [vmem:[#allocation2 + $0x101] sm:$0xff] }
 0x198   : > { %2590 = vst [vmem:[#allocation3 + $0xa8] sm:$0xf] %v6726_v11  ;;  %2370 = vst [vmem:[#allocation3 + $0x134] sm:$0xf] %v6698_v26  ;;  %v6752_v31 = vpack.c.bf16 %v2456_v37, %v2456_v37  ;;  %v6814_v41 = vpack.c.bf16 %v2870_v43, %v2870_v43  ;;  %v6815_v0 = vpack.c.bf16 %v2871_v56, %v2871_v56  ;;  %v7649_v26 = vld [vmem:[#allocation3 + $0x248] ss:$36 sps:$4 sm:$0xff]  }
 0x199   : > { %2371 = vst [vmem:[#allocation3 + $0x158] sm:$0xf] %v6699_v58  ;;  %2593 = vst [vmem:[#allocation3 + $0x114] sm:$0xf] %v6729_v15  ;;  %v1177_v59 = vmul.f32 %v9351_v28, %v1145_v34  ;;  %v1592_v36 = vmul.f32 %v9250_v51, %v1560_v20  ;;  %v1593_v8 = vmul.f32 %v9265_v40, %v1561_v63  ;;  %4765 = vmatmul.mubr.bf16.gmra.mxu0 %v7649_v26  ;;  %v10292_v55 = vld [vmem:[#allocation20_spill] sm:$0xff]  ;;  %v7723_v26 = vld [vmem:[%s10088_s2 + $0x230] sm:$0xff]  }
 0x19a   : > { %2594 = vst [vmem:[#allocation3 + $0x138] sm:$0xf] %v6730_v44  ;;  %2374 = vst [vmem:[#allocation3 + $0x1c4] sm:$0xf] %v6702_v62  ;;  %v1815_v11 = vmul.f32 %v10263_v53, %v1145_v34  ;;  %v1816_v19 = vmul.f32 %v9150_v9, %v1784_v21  ;;  %v2230_v58 = vmul.f32 %v10264_v23, %v1560_v20  ;;  %4772 = vmatprep.mubr.bf16.mxu0 %v7652_v38  ;;  %v7657_v16 = vld [vmem:[#allocation3 + $0x2d0] ss:$36 sps:$4 sm:$0xff]  }
 0x19b   : > { %2375 = vst [vmem:[#allocation3 + $0x1e8] sm:$0xf] %v6703_v35  ;;  %2597 = vst [vmem:[#allocation3 + $0x1a4] sm:$0xf] %v6733_v10  ;;  %v2231_v50 = vmul.f32 %v10272_v18, %v1561_v63  ;;  %v2453_v15 = vmul.f32 %v10265_v30, %v1145_v34  ;;  %v2454_v49 = vmul.f32 %v10268_v60, %v1784_v21  ;;  %v10289_v60 = vld [vmem:[#allocation15_spill] sm:$0xff] }
 0x19c   : > { %2598 = vst [vmem:[#allocation3 + $0x1c8] sm:$0xf] %v6734_v27  ;;  %2378 = vst [vmem:[#allocation3 + $0x254] sm:$0xf] %v6706_v2  ;;  %v2868_v44 = vmul.f32 %v10267_v47, %v1560_v20  ;;  %v2869_v53 = vmul.f32 %v10269_v14, %v1561_v63  ;;  %v6561_v9 = vpack.c.bf16 %v1177_v59, %v1177_v59  ;;  %v2425_v47 = vld [vmem:[#allocation2 + $0x11f] sm:$0xff]  ;;  %v10291_v2 = vld [vmem:[#allocation18_spill] sm:$0xff]  ;;  %4620 = vmatmul.mubr.bf16.gmra.mxu1 %v7657_v16 }
 0x19d   : > { %2379 = vst [vmem:[#allocation3 + $0x278] sm:$0xf] %v6707_v1  ;;  %2601 = vst [vmem:[#allocation3 + $0x234] sm:$0xf] %v6737_v25  ;;  %v6655_v52 = vpack.c.bf16 %v1815_v11, %v1815_v11  ;;  %v6624_v62 = vpack.c.bf16 %v1592_v36, %v1592_v36  ;;  %v6625_v54 = vpack.c.bf16 %v1593_v8, %v1593_v8  ;;  %v10290_v14 = vld [vmem:[#allocation17_spill] sm:$0xff] }
 0x19e   : > { %2602 = vst [vmem:[#allocation3 + $0x258] sm:$0xf] %v6738_v6  ;;  %2382 = vst [vmem:[#allocation3 + $0x2e4] sm:$0xf] %v6710_v17  ;;  %v6656_v23 = vpack.c.bf16 %v1816_v19, %v1816_v19  ;;  %v6812_v35 = vpack.c.bf16 %v2868_v44, %v2868_v44  ;;  %v6813_v18 = vpack.c.bf16 %v2869_v53, %v2869_v53  ;;  %v7658_v5 = vld [vmem:[#allocation3 + $0x290] ss:$36 sps:$4 sm:$0xff]  }
 0x19f   : > { %1977 = vst [vmem:[#allocation3 + $0x468] sm:$0xf] %v6657_v45  ;;  %2392 = vst [vmem:[#allocation3 + $0x44c] sm:$0xf] %v6720_v33  ;;  %v6711_v30 = vpack.c.bf16 %v9201_v42, %v9201_v42  ;;  %v6741_v10 = vpack.c.bf16 %v10289_v60, %v10289_v60  ;;  %v6742_v27 = vpack.c.bf16 %v10290_v14, %v10290_v14  ;;  %v7660_v39 = vld [vmem:[#allocation3 + $0x31c] ss:$36 sps:$4 sm:$0xff]  }
 0x1a0   : > { %2393 = vst [vmem:[#allocation3 + $0x470] sm:$0xf] %v6721_v48  ;;  %2615 = vst [vmem:[#allocation3 + $0x42c] sm:$0xf] %v6751_v57  ;;  %v6714_v1 = vpack.c.bf16 %v10291_v2, %v10291_v2  ;;  %v6715_v3 = vpack.c.bf16 %v10292_v55, %v10292_v55  ;;  %v6745_v42 = vpack.c.bf16 %v9282_v32, %v9282_v32  ;;  %4627 = vmatprep.mubr.bf16.mxu1 %v7660_v39  ;;  %v7665_v43 = vld [vmem:[#allocation3 + $0x2d8] ss:$36 sps:$4 sm:$0xff]  }
 0x1a1   : > { %2616 = vst [vmem:[#allocation3 + $0x450] sm:$0xf] %v6752_v31  ;;  %3030 = vst [vmem:[#allocation3 + $0x410] sm:$0xf] %v6814_v41  ;;  %v6746_v22 = vpack.c.bf16 %v9361_v4, %v9361_v4  ;;  %v6718_v46 = vpack.c.bf16 %v2230_v58, %v2230_v58  ;;  %v6719_v25 = vpack.c.bf16 %v2231_v50, %v2231_v50  ;;  %v7662_v4 = vld [vmem:[#allocation3 + $0x2dc] ss:$36 sps:$4 sm:$0xff]   ;;  %4773 = vmatmul.mubr.bf16.gmra.mxu0 %v7658_v5 }
 0x1a2   : > { %3031 = vst [vmem:[#allocation3 + $0x434] sm:$0xf] %v6815_v0  ;;  %1337 = vst [vmem:[#allocation3 + $0x45c] sm:$0xf] %v6561_v9  ;;  %v6749_v6 = vpack.c.bf16 %v2453_v15, %v2453_v15  ;;  %v6750_v29 = vpack.c.bf16 %v2454_v49, %v2454_v49  ;;  %v2457_v7 = vmul.f32 %v9351_v28, %v2425_v47  ;;  %4780 = vmatprep.mubr.bf16.mxu0 %v7662_v4  ;;  %v7664_v28 = vld [vmem:[#allocation3 + $0x318] ss:$36 sps:$4 sm:$0xff]  }
 0x1a3   : > { %1975 = vst [vmem:[#allocation3 + $0x420] sm:$0xf] %v6655_v52  ;;  %1752 = vst [vmem:[#allocation3 + $0x440] sm:$0xf] %v6624_v62  ;;  %v6784_v32 = vpack.c.bf16 %v9145_v61, %v9145_v61  ;;  %v7666_v56 = vld [vmem:[#allocation3 + $0x364] ss:$36 sps:$4 sm:$0xff]  }
 0x1a4   : > { %1753 = vst [vmem:[#allocation3 + $0x464] sm:$0xf] %v6625_v54  ;;  %1976 = vst [vmem:[#allocation3 + $0x444] sm:$0xf] %v6656_v23  ;;  %v6753_v37 = vpack.c.bf16 %v2457_v7, %v2457_v7  ;;  %4628 = vmatmul.mubr.bf16.gmra.mxu1 %v7664_v28  ;;  %v7668_v61 = vld [vmem:[#allocation3 + $0x324] ss:$36 sps:$4 sm:$0xff]  }
 0x1a5   : > { %3028 = vst [vmem:[#allocation3 + $0x3c8] sm:$0xf] %v6812_v35  ;;  %3029 = vst [vmem:[#allocation3 + $0x3ec] sm:$0xf] %v6813_v18  ;;  %4635 = vmatprep.mubr.bf16.mxu1 %v7666_v56  ;;  %v7673_v34 = vld [vmem:[#allocation3 + $0x360] ss:$36 sps:$4 sm:$0xff]  }
 0x1a6   : > { %2383 = vst [vmem:[#allocation3 + $0x308] sm:$0xf] %v6711_v30  ;;  %2605 = vst [vmem:[#allocation3 + $0x2c4] sm:$0xf] %v6741_v10  ;;  %v7674_v17 = vld [vmem:[#allocation3 + $0x320] ss:$36 sps:$4 sm:$0xff]  }
 0x1a7   : > { %2606 = vst [vmem:[#allocation3 + $0x2e8] sm:$0xf] %v6742_v27  ;;  %2386 = vst [vmem:[#allocation3 + $0x374] sm:$0xf] %v6714_v1  ;;  %v7676_v45 = vld [vmem:[#allocation3 + $0x3ac] ss:$36 sps:$4 sm:$0xff]  }
 0x1a8   : > { %2387 = vst [vmem:[#allocation3 + $0x398] sm:$0xf] %v6715_v3  ;;  %2609 = vst [vmem:[#allocation3 + $0x354] sm:$0xf] %v6745_v42  ;;  %v7678_v33 = vld [vmem:[#allocation3 + $0x36c] ss:$36 sps:$4 sm:$0xff]  }
 0x1a9   : > { %2610 = vst [vmem:[#allocation3 + $0x378] sm:$0xf] %v6746_v22  ;;  %2390 = vst [vmem:[#allocation3 + $0x404] sm:$0xf] %v6718_v46  ;;  %4781 = vmatmul.mubr.bf16.gmra.mxu0 %v7665_v43  ;;  %v7680_v48 = vld [vmem:[#allocation3 + $0x3a8] ss:$36 sps:$4 sm:$0xff]  }
 0x1aa   : > { %2391 = vst [vmem:[#allocation3 + $0x428] sm:$0xf] %v6719_v25  ;;  %2613 = vst [vmem:[#allocation3 + $0x3e4] sm:$0xf] %v6749_v6  ;;  %4788 = vmatprep.mubr.bf16.mxu0 %v7668_v61  ;;  %v7681_v57 = vld [vmem:[#allocation3 + $0x368] ss:$36 sps:$4 sm:$0xff]  }
 0x1ab   : > { %2614 = vst [vmem:[#allocation3 + $0x408] sm:$0xf] %v6750_v29  ;;  %2808 = vst [vmem:[#allocation3 + $0x454] sm:$0xf] %v6784_v32  ;;  %v7682_v20 = vld [vmem:[#allocation3 + $0x3f4] ss:$36 sps:$4 sm:$0xff]  }
 0x1ac   : > { %2809 = vst [vmem:[#allocation3 + $0x478] sm:$0xf] %v6784_v32  ;;  %2617 = vst [vmem:[#allocation3 + $0x474] sm:$0xf] %v6753_v37  ;;  %4636 = vmatmul.mubr.bf16.gmra.mxu1 %v7673_v34  ;;  %v7684_v63 = vld [vmem:[#allocation3 + $0x3b4] ss:$36 sps:$4 sm:$0xff]  }
 0x1ad   : > { %4643 = vmatprep.mubr.bf16.mxu1 %v7676_v45  ;;  %v7689_v21 = vld [vmem:[#allocation3 + $0x3f0] ss:$36 sps:$4 sm:$0xff]   ;;  %v7692_v41 = vld [vmem:[#allocation3 + $0x43c] ss:$36 sps:$4 sm:$0xff]   ;;  %v7699_v8 = vld [vmem:[#allocation3 + $0x444] ss:$36 sps:$4 sm:$0xff]   ;;  %v6862_v45 = vpop.f32.mrf.mxu1 }
 0x1ae   : > { %v7690_v31 = vld [vmem:[#allocation3 + $0x3b0] ss:$36 sps:$4 sm:$0xff]   ;;  %v7694_v0 = vld [vmem:[#allocation3 + $0x3fc] ss:$36 sps:$4 sm:$0xff]   ;;  %v7838_v50 = vld [vmem:[%s10088_s2 + $0x238] sm:$0xff]  }
 0x1af   : > { %v7696_v59 = vld [vmem:[#allocation3 + $0x438] ss:$36 sps:$4 sm:$0xff]   ;;  %v7701_v11 = vld [vmem:[#allocation3 + $0x10] ss:$36 sps:$4 sm:$0xff]   ;;  %v7708_v19 = vld [vmem:[#allocation3 + $0x440] ss:$36 sps:$4 sm:$0xff]  }
 0x1b0   : > { %v7697_v24 = vld [vmem:[#allocation3 + $0x3f8] ss:$36 sps:$4 sm:$0xff]   ;;  %v7719_v44 = vld [vmem:[#allocation3 + $0xa4] ss:$36 sps:$4 sm:$0xff]   ;;  %v7749_v53 = vld [vmem:[%s10088_s2 + $0x220] sm:$0xff]  }
 0x1b1   : > { %4789 = vmatmul.mubr.bf16.gmra.mxu0 %v7674_v17  ;;  %v7703_v36 = vld [vmem:[#allocation3 + $0x14] ss:$36 sps:$4 sm:$0xff]   ;;  %v7710_v12 = vld [vmem:[#allocation3 + $0x5c] ss:$36 sps:$4 sm:$0xff]   ;;  %v7721_v9 = vld [vmem:[#allocation3 + $0x64] ss:$36 sps:$4 sm:$0xff]  }
 0x1b2   : > { %4796 = vmatprep.mubr.bf16.mxu0 %v7678_v33  ;;  %v7715_v58 = vld [vmem:[#allocation3 + $0x1c] ss:$36 sps:$4 sm:$0xff]   ;;  %v7763_v52 = vld [vmem:[%s10088_s2 + $0x218] sm:$0xff]   ;;  %v7732_v47 = vld [vmem:[#allocation3 + $0x134] ss:$36 sps:$4 sm:$0xff]  }
 0x1b3   : > { %v7736_v15 = vld [vmem:[%s10088_s2 + $0x228] sm:$0xff]   ;;  %v7724_v62 = vld [vmem:[#allocation3 + $0xa0] ss:$36 sps:$4 sm:$0xff]   ;;  %v7726_v23 = vld [vmem:[#allocation3 + $0xec] ss:$36 sps:$4 sm:$0xff]  }
 0x1b4   : > { %4644 = vmatmul.mubr.bf16.gmra.mxu1 %v7680_v48  ;;  %v7718_v49 = vld [vmem:[#allocation3 + $0x58] ss:$36 sps:$4 sm:$0xff]   ;;  %v7725_v54 = vld [vmem:[#allocation3 + $0x60] ss:$36 sps:$4 sm:$0xff]   ;;  %v7728_v18 = vld [vmem:[#allocation3 + $0xac] ss:$36 sps:$4 sm:$0xff]  }
 0x1b5   : > { %4651 = vmatprep.mubr.bf16.mxu1 %v7682_v20  ;;  %v7713_v38 = vld [vmem:[#allocation3 + $0x18] ss:$36 sps:$4 sm:$0xff]   ;;  %v7777_v35 = vld [vmem:[%s10088_s2 + $0x210] sm:$0xff]   ;;  %v7730_v60 = vld [vmem:[#allocation3 + $0xe8] ss:$36 sps:$4 sm:$0xff]  }
 0x1b6   : > { %v7790_v30 = vld [vmem:[%s10088_s2 + $0x208] sm:$0xff]   ;;  %v7731_v10 = vld [vmem:[#allocation3 + $0xa8] ss:$36 sps:$4 sm:$0xff]   ;;  %v7803_v14 = vld [vmem:[%s10088_s2 + $0x200] sm:$0xff]  }
 0x1b7   : > { %v7734_v27 = vld [vmem:[#allocation3 + $0xf4] ss:$36 sps:$4 sm:$0xff]   ;;  %v7739_v55 = vld [vmem:[#allocation3 + $0x17c] ss:$36 sps:$4 sm:$0xff]   ;;  %v7745_v46 = vld [vmem:[#allocation3 + $0x1c4] ss:$36 sps:$4 sm:$0xff]  }
 0x1b8   : > { %v7737_v2 = vld [vmem:[#allocation3 + $0x130] ss:$36 sps:$4 sm:$0xff]   ;;  %v7741_v3 = vld [vmem:[#allocation3 + $0x13c] ss:$36 sps:$4 sm:$0xff]   ;;  %v7747_v25 = vld [vmem:[#allocation3 + $0x184] ss:$36 sps:$4 sm:$0xff]  }
 0x1b9   : > { %4797 = vmatmul.mubr.bf16.gmra.mxu0 %v7681_v57  ;;  %v7738_v1 = vld [vmem:[#allocation3 + $0xf0] ss:$36 sps:$4 sm:$0xff]   ;;  %v7743_v42 = vld [vmem:[#allocation3 + $0x178] ss:$36 sps:$4 sm:$0xff]   ;;  %v7750_v6 = vld [vmem:[#allocation3 + $0x1c0] ss:$36 sps:$4 sm:$0xff]  }
 0x1ba   : > { %4804 = vmatprep.mubr.bf16.mxu0 %v7684_v63  ;;  %v7744_v22 = vld [vmem:[#allocation3 + $0x138] ss:$36 sps:$4 sm:$0xff]   ;;  %v7751_v16 = vld [vmem:[#allocation3 + $0x180] ss:$36 sps:$4 sm:$0xff]   ;;  %v7752_v29 = vld [vmem:[#allocation3 + $0x20c] ss:$36 sps:$4 sm:$0xff]  }
 0x1bb   : > { %v7754_v7 = vld [vmem:[#allocation3 + $0x1cc] ss:$36 sps:$4 sm:$0xff]   ;;  %v7760_v43 = vld [vmem:[#allocation3 + $0x254] ss:$36 sps:$4 sm:$0xff]   ;;  %v7767_v48 = vld [vmem:[#allocation3 + $0x29c] ss:$36 sps:$4 sm:$0xff]  }
 0x1bc   : > { %4652 = vmatmul.mubr.bf16.gmra.mxu1 %v7689_v21  ;;  %v2840_v32 = vld [vmem:[#allocation2 + $0x119] sm:$0xff]  ;;  %v2841_v5 = vld [vmem:[#allocation2 + $0x121] sm:$0xff] }
 0x1bd   : > { %4659 = vmatprep.mubr.bf16.mxu1 %v7692_v41  ;;  %v2872_v39 = vmul.f32 %v9250_v51, %v2840_v32  ;;  %v2873_v4 = vmul.f32 %v9265_v40, %v2841_v5  ;;  %v7756_v37 = vld [vmem:[#allocation3 + $0x208] ss:$36 sps:$4 sm:$0xff]   ;;  %v7761_v56 = vld [vmem:[#allocation3 + $0x214] ss:$36 sps:$4 sm:$0xff]   ;;  %v7770_v51 = vld [vmem:[#allocation3 + $0x25c] ss:$36 sps:$4 sm:$0xff]   ;;  %v6863_v40 = vpop.f32.mrf.mxu1 }
 0x1be   : > { %v7757_v28 = vld [vmem:[#allocation3 + $0x1c8] ss:$36 sps:$4 sm:$0xff]   ;;  %v7758_v17 = vld [vmem:[#allocation3 + $0x250] ss:$36 sps:$4 sm:$0xff]   ;;  %v7765_v63 = vld [vmem:[#allocation3 + $0x298] ss:$36 sps:$4 sm:$0xff]  }
 0x1bf   : > { %v6816_v61 = vpack.c.bf16 %v2872_v39, %v2872_v39  ;;  %v6817_v34 = vpack.c.bf16 %v2873_v4, %v2873_v4  ;;  %v7764_v33 = vld [vmem:[#allocation3 + $0x210] ss:$36 sps:$4 sm:$0xff]   ;;  %v7773_v41 = vld [vmem:[#allocation3 + $0x2e4] ss:$36 sps:$4 sm:$0xff]  }
 0x1c1   : > { %4805 = vmatmul.mubr.bf16.gmra.mxu0 %v7690_v31  ;;  %3032 = vst [vmem:[#allocation3 + $0x458] sm:$0xf] %v6816_v61  ;;  %3033 = vst [vmem:[#allocation3 + $0x47c] sm:$0xf] %v6817_v34  ;;  %v7768_v31 = vld [vmem:[#allocation3 + $0x258] ss:$36 sps:$4 sm:$0xff]  }
 0x1c2   : > { %4812 = vmatprep.mubr.bf16.mxu0 %v7694_v0  ;;  %v7787_v34 = vld [vmem:[#allocation3 + $0x330] ss:$36 sps:$4 sm:$0xff]  }
 0x1c4   : > { %4660 = vmatmul.mubr.bf16.gmra.mxu1 %v7696_v59 }
 0x1c5   : > { %4861 = vmatprep.mubr.bf16.mxu1 %v7703_v36 }
 0x1c9   : > { %4813 = vmatmul.mubr.bf16.gmra.mxu0 %v7697_v24  ;;  %v7776_v24 = vld [vmem:[#allocation3 + $0x2a4] ss:$36 sps:$4 sm:$0xff]  }
 0x1ca   : > { %4820 = vmatprep.mubr.bf16.mxu0 %v7699_v8 }
 0x1cc   : > { %4862 = vmatmul.mubr.bf16.vlgmr.msra.gmra.mxu1 %v7701_v11 }
 0x1cd   : > { %7388 = vmatpush3.bf16.msra.mxu1 %v7838_v50  ;;  %4869 = vmatprep.mubr.bf16.mxu1 %v7710_v12  ;;  %v6864_v50 = vadd.f32 %v6863_v40, %v6862_v45 }
 0x1ce   : > { %7389 = vmatprep.subr.bf16.mxu1 %v7723_v26 }
 0x1d1   : > { %4821 = vmatmul.mubr.bf16.gmra.mxu0 %v7708_v19  ;;  %7390 = vmatpush3.bf16.msra.mxu1 %v7723_v26 }
 0x1d2   : > { %5022 = vmatprep.mubr.bf16.mxu0 %v7715_v58  ;;  %7391 = vmatprep.subr.bf16.mxu1 %v7736_v15 }
 0x1d4   : > { %4870 = vmatmul.mubr.bf16.gmra.mxu1 %v7718_v49 }
 0x1d5   : > { %4877 = vmatprep.mubr.bf16.mxu1 %v7719_v44  ;;  %7392 = vmatpush3.bf16.msra.mxu1 %v7736_v15  ;;  %v7771_v44 = vld [vmem:[#allocation3 + $0x2e0] ss:$36 sps:$4 sm:$0xff]  }
 0x1d6   : > { %7393 = vmatprep.subr.bf16.mxu1 %v7749_v53 }
 0x1d9   : > { %5023 = vmatmul.mubr.bf16.vlgmr.msra.gmra.mxu0 %v7713_v38  ;;  %7394 = vmatpush3.bf16.msra.mxu1 %v7749_v53 }
 0x1da   : > { %5030 = vmatprep.mubr.bf16.mxu0 %v7721_v9  ;;  %7395 = vmatprep.subr.bf16.mxu1 %v7763_v52 }
 0x1dc   : > { %4878 = vmatmul.mubr.bf16.gmra.mxu1 %v7724_v62  ;;  %v7780_v62 = vld [vmem:[#allocation3 + $0x32c] ss:$36 sps:$4 sm:$0xff]  }
 0x1dd   : > { %4885 = vmatprep.mubr.bf16.mxu1 %v7726_v23  ;;  %7396 = vmatpush3.bf16.msra.mxu1 %v7763_v52  ;;  %v7774_v52 = vld [vmem:[#allocation3 + $0x2a0] ss:$36 sps:$4 sm:$0xff]  }
 0x1de   : > { %7397 = vmatprep.subr.bf16.mxu1 %v7777_v35 }
 0x1e1   : > { %5031 = vmatmul.mubr.bf16.gmra.mxu0 %v7725_v54  ;;  %7398 = vmatpush3.bf16.msra.mxu1 %v7777_v35  ;;  %v7783_v35 = vld [vmem:[#allocation3 + $0x2ec] ss:$36 sps:$4 sm:$0xff]  }
 0x1e2   : > { %5038 = vmatprep.mubr.bf16.mxu0 %v7728_v18  ;;  %7399 = vmatprep.subr.bf16.mxu1 %v7790_v30 }
 0x1e4   : > { %4886 = vmatmul.mubr.bf16.gmra.mxu1 %v7730_v60  ;;  %v7829_v60 = vld [vmem:[%s10089_s3 + $0x38] sm:$0xff]  }
 0x1e5   : > { %4893 = vmatprep.mubr.bf16.mxu1 %v7732_v47  ;;  %7400 = vmatpush3.bf16.msra.mxu1 %v7790_v30 }
 0x1e6   : > { %7401 = vmatprep.subr.bf16.mxu1 %v7803_v14  ;;  %7435 = vmatprep.subr.bf16.mxu0 %v7829_v60 }
 0x1e7   : > { %7436 = vmatpush3.bf16.msra.mxu0 %v7829_v60  ;;  %v7806_v60 = vld [vmem:[#allocation3 + $0x44c] ss:$36 sps:$4 sm:$0xff]  }
 0x1e9   : > { %5039 = vmatmul.mubr.bf16.gmra.mxu0 %v7731_v10  ;;  %7402 = vmatpush3.bf16.msra.mxu1 %v7803_v14 }
 0x1ea   : > { %5046 = vmatprep.mubr.bf16.mxu0 %v7734_v27 }
 0x1ec   : > { %4894 = vmatmul.mubr.bf16.gmra.mxu1 %v7737_v2 }
 0x1ed   : > { %4901 = vmatprep.mubr.bf16.mxu1 %v7739_v55 }
 0x1f1   : > { %5047 = vmatmul.mubr.bf16.gmra.mxu0 %v7738_v1 }
 0x1f2   : > { %5054 = vmatprep.mubr.bf16.mxu0 %v7741_v3  ;;  %v7778_v3 = vld [vmem:[#allocation3 + $0x328] ss:$36 sps:$4 sm:$0xff]  }
 0x1f4   : > { %4902 = vmatmul.mubr.bf16.gmra.mxu1 %v7743_v42 }
 0x1f5   : > { %4909 = vmatprep.mubr.bf16.mxu1 %v7745_v46  ;;  %v7781_v46 = vld [vmem:[#allocation3 + $0x2e8] ss:$36 sps:$4 sm:$0xff]  }
 0x1f9   : > { %5055 = vmatmul.mubr.bf16.gmra.mxu0 %v7744_v22 }
 0x1fa   : > { %5062 = vmatprep.mubr.bf16.mxu0 %v7747_v25  ;;  %v7786_v25 = vld [vmem:[#allocation3 + $0x374] ss:$36 sps:$4 sm:$0xff]  }
 0x1fc   : > { %4910 = vmatmul.mubr.bf16.gmra.mxu1 %v7750_v6 }
 0x1fd   : > { %4917 = vmatprep.mubr.bf16.mxu1 %v7752_v29  ;;  %v7789_v29 = vld [vmem:[#allocation3 + $0x334] ss:$36 sps:$4 sm:$0xff]  }
 0x201   : > { %5063 = vmatmul.mubr.bf16.gmra.mxu0 %v7751_v16 }
 0x202   : > { %5070 = vmatprep.mubr.bf16.mxu0 %v7754_v7 }
 0x203   : > { %v6971_v20 = vpop.f32.mrf.mxu0 }
 0x204   : > { %4918 = vmatmul.mubr.bf16.gmra.mxu1 %v7756_v37 }
 0x205   : > { %4925 = vmatprep.mubr.bf16.mxu1 %v7760_v43  ;;  %v6865_v57 = vpop.f32.mrf.mxu1  ;;  %v6972_v59 = vpop.f32.mrf.mxu0 }
 0x206   : > { %v6973_v36 = vadd.f32 %v6972_v59, %v6971_v20 }
 0x207   : > { %v6866_v21 = vpop.f32.mrf.mxu1  ;;  %v6974_v11 = vpop.f32.mrf.mxu0 }
 0x208   : > { %v6867_v0 = vadd.f32 %v6866_v21, %v6865_v57  ;;  %v9433_v19 = vadd.f32 %v6973_v36, %v9365_v13 }
 0x209   : > { %5071 = vmatmul.mubr.bf16.gmra.mxu0 %v7757_v28  ;;  %v6868_v8 = vpop.f32.mrf.mxu1  ;;  %v6975_v58 = vpop.f32.mrf.mxu0 }
 0x20a   : > { %5078 = vmatprep.mubr.bf16.mxu0 %v7761_v56  ;;  %v6976_v15 = vadd.f32 %v6975_v58, %v6974_v11  ;;  %v7784_v56 = vld [vmem:[#allocation3 + $0x370] ss:$36 sps:$4 sm:$0xff]   ;;  %v7799_v11 = vld [vmem:[#allocation3 + $0x404] ss:$36 sps:$4 sm:$0xff]  }
 0x20b   : > { %v6869_v26 = vpop.f32.mrf.mxu1  ;;  %v7802_v58 = vld [vmem:[#allocation3 + $0x3c4] ss:$36 sps:$4 sm:$0xff]  }
 0x20c   : > { %4926 = vmatmul.mubr.bf16.gmra.mxu1 %v7758_v17  ;;  %v6870_v12 = vadd.f32 %v6869_v26, %v6868_v8  ;;  %v9435_v53 = vadd.f32 %v6976_v15, %v6864_v50  ;;  %v7793_v17 = vld [vmem:[#allocation3 + $0x3bc] ss:$36 sps:$4 sm:$0xff]  }
 0x20d   : > { %4933 = vmatprep.mubr.bf16.mxu1 %v7767_v48  ;;  %v6871_v49 = vpop.f32.mrf.mxu1 }
 0x20e   : > { %v6977_v38 = vpop.f32.mrf.mxu0 }
 0x20f   : > { %v6872_v9 = vpop.f32.mrf.mxu1 }
 0x210   : > { %v6873_v54 = vadd.f32 %v6872_v9, %v6871_v49  ;;  %v6978_v23 = vpop.f32.mrf.mxu0 }
 0x211   : > { %5079 = vmatmul.mubr.bf16.gmra.mxu0 %v7764_v33  ;;  %v6979_v18 = vadd.f32 %v6978_v23, %v6977_v38  ;;  %v6874_v13 = vpop.f32.mrf.mxu1  ;;  %v7796_v33 = vld [vmem:[#allocation3 + $0x37c] ss:$36 sps:$4 sm:$0xff]  }
 0x212   : > { %5086 = vmatprep.mubr.bf16.mxu0 %v7770_v51  ;;  %v6980_v30 = vpop.f32.mrf.mxu0  ;;  %v7830_v51 = vld [vmem:[%s10089_s3 + $0x30] sm:$0xff]  }
 0x213   : > { %v9440_v10 = vadd.f32 %v6979_v18, %v6867_v0  ;;  %v6875_v47 = vpop.f32.mrf.mxu1  ;;  %7437 = vmatprep.subr.bf16.mxu0 %v7830_v51  ;;  %v7800_v18 = vld [vmem:[#allocation3 + $0x3c0] ss:$36 sps:$4 sm:$0xff]  }
 0x214   : > { %4934 = vmatmul.mubr.bf16.gmra.mxu1 %v7765_v63  ;;  %v6876_v14 = vadd.f32 %v6875_v47, %v6874_v13  ;;  %v6981_v27 = vpop.f32.mrf.mxu0  ;;  %7438 = vmatpush3.bf16.msra.mxu0 %v7830_v51 }
 0x215   : > { %4941 = vmatprep.mubr.bf16.mxu1 %v7773_v41  ;;  %v6982_v2 = vadd.f32 %v6981_v27, %v6980_v30  ;;  %v6877_v1 = vpop.f32.mrf.mxu1  ;;  %v7791_v41 = vld [vmem:[#allocation3 + $0x3b8] ss:$36 sps:$4 sm:$0xff]   ;;  %v7809_v27 = vld [vmem:[#allocation3 + $0x40c] ss:$36 sps:$4 sm:$0xff]  }
 0x216   : > { %v6983_v55 = vpop.f32.mrf.mxu0 }
 0x217   : > { %v9442_v42 = vadd.f32 %v6982_v2, %v6870_v12  ;;  %v6878_v22 = vpop.f32.mrf.mxu1 }
 0x218   : > { %v6879_v6 = vadd.f32 %v6878_v22, %v6877_v1  ;;  %v6984_v16 = vpop.f32.mrf.mxu0  ;;  %v7831_v1 = vld [vmem:[%s10089_s3 + $0x28] sm:$0xff]  }
 0x219   : > { %5087 = vmatmul.mubr.bf16.gmra.mxu0 %v7768_v31  ;;  %v6985_v7 = vadd.f32 %v6984_v16, %v6983_v55  ;;  %v6880_v32 = vpop.f32.mrf.mxu1  ;;  %7439 = vmatprep.subr.bf16.mxu0 %v7831_v1 }
 0x21a   : > { %5094 = vmatprep.mubr.bf16.mxu0 %v7776_v24  ;;  %v6986_v5 = vpop.f32.mrf.mxu0  ;;  %v7794_v24 = vld [vmem:[#allocation3 + $0x378] ss:$36 sps:$4 sm:$0xff]   ;;  %7440 = vmatpush3.bf16.msra.mxu0 %v7831_v1 }
 0x21b   : > { %v9444_v39 = vadd.f32 %v6985_v7, %v6873_v54  ;;  %v6881_v4 = vpop.f32.mrf.mxu1  ;;  %v7797_v54 = vld [vmem:[#allocation3 + $0x400] ss:$36 sps:$4 sm:$0xff]  }
 0x21c   : > { %4942 = vmatmul.mubr.bf16.gmra.mxu1 %v7771_v44  ;;  %v6882_v37 = vadd.f32 %v6881_v4, %v6880_v32  ;;  %v6987_v28 = vpop.f32.mrf.mxu0 }
 0x21d   : > { %4949 = vmatprep.mubr.bf16.mxu1 %v7780_v62  ;;  %v6988_v43 = vadd.f32 %v6987_v28, %v6986_v5  ;;  %v7807_v5 = vld [vmem:[#allocation3 + $0x408] ss:$36 sps:$4 sm:$0xff]   ;;  %v7813_v28 = vld [vmem:[#allocation3 + $0x20] ss:$36 sps:$4 sm:$0xff]  }
 0x21f   : > { %v9446_v61 = vadd.f32 %v6988_v43, %v6876_v14 }
 0x221   : > { %5095 = vmatmul.mubr.bf16.gmra.mxu0 %v7774_v52 }
 0x222   : > { %5102 = vmatprep.mubr.bf16.mxu0 %v7783_v35 }
 0x224   : > { %4950 = vmatmul.mubr.bf16.gmra.mxu1 %v7778_v3  ;;  %v6883_v45 = vpop.f32.mrf.mxu1 }
 0x225   : > { %4957 = vmatprep.mubr.bf16.mxu1 %v7786_v25 }
 0x226   : > { %v6989_v48 = vpop.f32.mrf.mxu0  ;;  %v6884_v40 = vpop.f32.mrf.mxu1 }
 0x227   : > { %v6885_v57 = vadd.f32 %v6884_v40, %v6883_v45 }
 0x228   : > { %v6990_v20 = vpop.f32.mrf.mxu0  ;;  %v6886_v21 = vpop.f32.mrf.mxu1 }
 0x229   : > { %5103 = vmatmul.mubr.bf16.gmra.mxu0 %v7781_v46  ;;  %v6991_v63 = vadd.f32 %v6990_v20, %v6989_v48 }
 0x22a   : > { %5110 = vmatprep.mubr.bf16.mxu0 %v7789_v29  ;;  %v6992_v31 = vpop.f32.mrf.mxu0  ;;  %v6887_v59 = vpop.f32.mrf.mxu1  ;;  %v7804_v29 = vld [vmem:[#allocation3 + $0x448] ss:$36 sps:$4 sm:$0xff]  }
 0x22b   : > { %v9451_v0 = vadd.f32 %v6991_v63, %v6879_v6  ;;  %v6888_v36 = vadd.f32 %v6887_v59, %v6886_v21 }
 0x22c   : > { %4958 = vmatmul.mubr.bf16.gmra.mxu1 %v7784_v56  ;;  %v6993_v8 = vpop.f32.mrf.mxu0 }
 0x22d   : > { %4965 = vmatprep.mubr.bf16.mxu1 %v7793_v17  ;;  %v6994_v26 = vadd.f32 %v6993_v8, %v6992_v31  ;;  %v7814_v31 = vld [vmem:[#allocation3 + $0x68] ss:$36 sps:$4 sm:$0xff]  }
 0x22f   : > { %v9453_v15 = vadd.f32 %v6994_v26, %v6882_v37 }
 0x230   : > { %v6889_v12 = vpop.f32.mrf.mxu1 }
 0x231   : > { %5111 = vmatmul.mubr.bf16.gmra.mxu0 %v7787_v34  ;;  %v7812_v34 = vld [vmem:[#allocation3 + $0x454] ss:$36 sps:$4 sm:$0xff]  }
 0x232   : > { %5118 = vmatprep.mubr.bf16.mxu0 %v7796_v33  ;;  %v6890_v49 = vpop.f32.mrf.mxu1 }
 0x233   : > { %v6995_v50 = vpop.f32.mrf.mxu0  ;;  %v6891_v38 = vadd.f32 %v6890_v49, %v6889_v12  ;;  %v7832_v12 = vld [vmem:[%s10089_s3 + $0x20] sm:$0xff]  }
 0x234   : > { %4966 = vmatmul.mubr.bf16.gmra.mxu1 %v7791_v41  ;;  %v6892_v52 = vpop.f32.mrf.mxu1  ;;  %v7810_v41 = vld [vmem:[#allocation3 + $0x450] ss:$36 sps:$4 sm:$0xff]   ;;  %7441 = vmatprep.subr.bf16.mxu0 %v7832_v12 }
 0x235   : > { %4973 = vmatprep.mubr.bf16.mxu1 %v7799_v11  ;;  %v6996_v44 = vpop.f32.mrf.mxu0  ;;  %7442 = vmatpush3.bf16.msra.mxu0 %v7832_v12 }
 0x236   : > { %v6997_v9 = vadd.f32 %v6996_v44, %v6995_v50  ;;  %v6893_v35 = vpop.f32.mrf.mxu1 }
 0x237   : > { %v6998_v62 = vpop.f32.mrf.mxu0  ;;  %v6894_v13 = vadd.f32 %v6893_v35, %v6892_v52  ;;  %v7816_v35 = vld [vmem:[#allocation3 + $0xf8] ss:$36 sps:$4 sm:$0xff]  }
 0x238   : > { %v9455_v23 = vadd.f32 %v6997_v9, %v6885_v57 }
 0x239   : > { %5119 = vmatmul.mubr.bf16.gmra.mxu0 %v7794_v24  ;;  %v6999_v30 = vpop.f32.mrf.mxu0 }
 0x23a   : > { %5126 = vmatprep.mubr.bf16.mxu0 %v7802_v58  ;;  %v7000_v47 = vadd.f32 %v6999_v30, %v6998_v62  ;;  %v6895_v14 = vpop.f32.mrf.mxu1  ;;  %v7817_v30 = vld [vmem:[#allocation3 + $0x140] ss:$36 sps:$4 sm:$0xff]  }
 0x23b   : > { %v7001_v2 = vpop.f32.mrf.mxu0 }
 0x23c   : > { %4974 = vmatmul.mubr.bf16.gmra.mxu1 %v7797_v54  ;;  %v9460_v55 = vadd.f32 %v7000_v47, %v6888_v36  ;;  %v6896_v3 = vpop.f32.mrf.mxu1  ;;  %v7815_v36 = vld [vmem:[#allocation3 + $0xb0] ss:$36 sps:$4 sm:$0xff]  }
 0x23d   : > { %4981 = vmatprep.mubr.bf16.mxu1 %v7806_v60  ;;  %v6897_v22 = vadd.f32 %v6896_v3, %v6895_v14  ;;  %v7002_v46 = vpop.f32.mrf.mxu0 }
 0x23e   : > { %v7003_v25 = vadd.f32 %v7002_v46, %v7001_v2  ;;  %v6898_v6 = vpop.f32.mrf.mxu1 }
 0x23f   : > { %v7004_v16 = vpop.f32.mrf.mxu0 }
 0x240   : > { %v9462_v7 = vadd.f32 %v7003_v25, %v6891_v38  ;;  %v6899_v32 = vpop.f32.mrf.mxu1 }
 0x241   : > { %5127 = vmatmul.mubr.bf16.gmra.mxu0 %v7800_v18  ;;  %v6900_v4 = vadd.f32 %v6899_v32, %v6898_v6  ;;  %v7005_v37 = vpop.f32.mrf.mxu0 }
 0x242   : > { %5134 = vmatprep.mubr.bf16.mxu0 %v7809_v27  ;;  %v7006_v43 = vadd.f32 %v7005_v37, %v7004_v16 }
 0x243   : > { %v6901_v56 = vpop.f32.mrf.mxu1 }
 0x244   : > { %4982 = vmatmul.mubr.bf16.gmra.mxu1 %v7804_v29  ;;  %v7007_v17 = vpop.f32.mrf.mxu0  ;;  %v9464_v45 = vadd.f32 %v7006_v43, %v6894_v13  ;;  %v7818_v29 = vld [vmem:[#allocation3 + $0x188] ss:$36 sps:$4 sm:$0xff]  }
 0x245   : > { %7403 = vmatprep.mubr.bf16.mxu1 %v7813_v28  ;;  %v6902_v33 = vpop.f32.mrf.mxu1 }
 0x246   : > { %v6903_v48 = vadd.f32 %v6902_v33, %v6901_v56  ;;  %v7008_v51 = vpop.f32.mrf.mxu0  ;;  %v7833_v56 = vld [vmem:[%s10089_s3 + $0x18] sm:$0xff]  }
 0x247   : > { %v7009_v40 = vadd.f32 %v7008_v51, %v7007_v17  ;;  %v6904_v57 = vpop.f32.mrf.mxu1  ;;  %7443 = vmatprep.subr.bf16.mxu0 %v7833_v56 }
 0x248   : > { %v7010_v20 = vpop.f32.mrf.mxu0  ;;  %7444 = vmatpush3.bf16.msra.mxu0 %v7833_v56 }
 0x249   : > { %5135 = vmatmul.mubr.bf16.gmra.mxu0 %v7807_v5  ;;  %v9466_v63 = vadd.f32 %v7009_v40, %v6897_v22  ;;  %v6905_v21 = vpop.f32.mrf.mxu1 }
 0x24a   : > { %5142 = vmatprep.mubr.bf16.mxu0 %v7812_v34  ;;  %v6906_v59 = vadd.f32 %v6905_v21, %v6904_v57  ;;  %v7011_v24 = vpop.f32.mrf.mxu0 }
 0x24b   : > { %v7012_v8 = vadd.f32 %v7011_v24, %v7010_v20  ;;  %v7821_v24 = vld [vmem:[#allocation3 + $0x260] ss:$36 sps:$4 sm:$0xff]  }
 0x24c   : > { %v6907_v11 = vpop.f32.mrf.mxu1  ;;  %7404 = vmatmul.mubr.bf16.vlgmr.msra.gmra.mxu1 %v7814_v31  ;;  %v7820_v31 = vld [vmem:[#allocation3 + $0x218] ss:$36 sps:$4 sm:$0xff]  }
 0x24d   : > { %v7013_v26 = vpop.f32.mrf.mxu0  ;;  %7407 = vmatprep.mubr.bf16.mxu1 %v7815_v36  ;;  %v9471_v58 = vadd.f32 %v7012_v8, %v6900_v4  ;;  %v7819_v4 = vld [vmem:[#allocation3 + $0x1d0] ss:$36 sps:$4 sm:$0xff]  }
 0x24e   : > { %v6908_v50 = vpop.f32.mrf.mxu1 }
 0x24f   : > { %v6909_v49 = vadd.f32 %v6908_v50, %v6907_v11  ;;  %v7014_v38 = vpop.f32.mrf.mxu0 }
 0x250   : > { %v7015_v44 = vadd.f32 %v7014_v38, %v7013_v26  ;;  %v6910_v9 = vpop.f32.mrf.mxu1 }
 0x251   : > { %5143 = vmatmul.mubr.bf16.gmra.mxu0 %v7810_v41  ;;  %v7016_v52 = vpop.f32.mrf.mxu0 }
 0x252   : > { %v9473_v62 = vadd.f32 %v7015_v44, %v6903_v48  ;;  %v6911_v54 = vpop.f32.mrf.mxu1 }
 0x253   : > { %v6912_v18 = vadd.f32 %v6911_v54, %v6910_v9  ;;  %v7017_v13 = vpop.f32.mrf.mxu0 }
 0x254   : > { %v7018_v60 = vadd.f32 %v7017_v13, %v7016_v52  ;;  %v6913_v47 = vpop.f32.mrf.mxu1  ;;  %7408 = vmatmul.mubr.bf16.gmra.mxu1 %v7816_v35  ;;  %v7822_v35 = vld [vmem:[#allocation3 + $0x2a8] ss:$36 sps:$4 sm:$0xff]  }
 0x255   : > { %7411 = vmatprep.mubr.bf16.mxu1 %v7817_v30  ;;  %v7823_v30 = vld [vmem:[#allocation3 + $0x2f0] ss:$36 sps:$4 sm:$0xff]  }
 0x256   : > { %v9475_v27 = vadd.f32 %v7018_v60, %v6906_v59  ;;  %v6914_v2 = vpop.f32.mrf.mxu1 }
 0x257   : > { %v6915_v1 = vadd.f32 %v6914_v2, %v6913_v47  ;;  %v7834_v2 = vld [vmem:[%s10089_s3 + $0x10] sm:$0xff]  }
 0x258   : > { %v6916_v46 = vpop.f32.mrf.mxu1  ;;  %7445 = vmatprep.subr.bf16.mxu0 %v7834_v2 }
 0x259   : > { %v7019_v14 = vpop.f32.mrf.mxu0  ;;  %7446 = vmatpush3.bf16.msra.mxu0 %v7834_v2 }
 0x25a   : > { %v6917_v16 = vpop.f32.mrf.mxu1 }
 0x25b   : > { %v7020_v3 = vpop.f32.mrf.mxu0  ;;  %v6918_v32 = vadd.f32 %v6917_v16, %v6916_v46 }
 0x25c   : > { %v7021_v22 = vadd.f32 %v7020_v3, %v7019_v14  ;;  %v6919_v28 = vpop.f32.mrf.mxu1  ;;  %7412 = vmatmul.mubr.bf16.gmra.mxu1 %v7818_v29 }
 0x25d   : > { %v7022_v25 = vpop.f32.mrf.mxu0  ;;  %7415 = vmatprep.mubr.bf16.mxu1 %v7819_v4  ;;  %v7824_v4 = vld [vmem:[#allocation3 + $0x338] ss:$36 sps:$4 sm:$0xff]  }
 0x25e   : > { %v9477_v6 = vadd.f32 %v7021_v22, %v6909_v49  ;;  %v6920_v17 = vpop.f32.mrf.mxu1 }
 0x25f   : > { %v7023_v5 = vpop.f32.mrf.mxu0  ;;  %v6921_v33 = vadd.f32 %v6920_v17, %v6919_v28 }
 0x260   : > { %v7024_v37 = vadd.f32 %v7023_v5, %v7022_v25  ;;  %v6922_v40 = vpop.f32.mrf.mxu1 }
 0x261   : > { %v7025_v43 = vpop.f32.mrf.mxu0 }
 0x262   : > { %v9482_v34 = vadd.f32 %v7024_v37, %v6912_v18  ;;  %v6923_v21 = vpop.f32.mrf.mxu1 }
 0x263   : > { %v7026_v48 = vpop.f32.mrf.mxu0  ;;  %v6924_v41 = vadd.f32 %v6923_v21, %v6922_v40 }
 0x264   : > { %v7027_v51 = vadd.f32 %v7026_v48, %v7025_v43  ;;  %v6925_v8 = vpop.f32.mrf.mxu1  ;;  %7416 = vmatmul.mubr.bf16.gmra.mxu1 %v7820_v31  ;;  %v7825_v43 = vld [vmem:[#allocation3 + $0x380] ss:$36 sps:$4 sm:$0xff]  }
 0x265   : > { %v7028_v57 = vpop.f32.mrf.mxu0  ;;  %7419 = vmatprep.mubr.bf16.mxu1 %v7821_v24 }
 0x266   : > { %v9484_v20 = vadd.f32 %v7027_v51, %v6915_v1  ;;  %v6926_v12 = vpop.f32.mrf.mxu1 }
 0x267   : > { %v7029_v59 = vpop.f32.mrf.mxu0  ;;  %v6927_v50 = vadd.f32 %v6926_v12, %v6925_v8  ;;  %v7827_v12 = vld [vmem:[#allocation3 + $0x410] ss:$36 sps:$4 sm:$0xff]  }
 0x268   : > { %v7030_v36 = vadd.f32 %v7029_v59, %v7028_v57  ;;  %v6928_v44 = vpop.f32.mrf.mxu1 }
 0x269   : > { %v7031_v11 = vpop.f32.mrf.mxu0 }
 0x26a   : > { %v9486_v26 = vadd.f32 %v7030_v36, %v6918_v32  ;;  %v6929_v54 = vpop.f32.mrf.mxu1  ;;  %v7826_v36 = vld [vmem:[#allocation3 + $0x3c8] ss:$36 sps:$4 sm:$0xff]  }
 0x26b   : > { %v7032_v49 = vpop.f32.mrf.mxu0  ;;  %v6930_v18 = vadd.f32 %v6929_v54, %v6928_v44  ;;  %v7835_v44 = vld [vmem:[%s10089_s3 + $0x8] sm:$0xff]  }
 0x26c   : > { %v7033_v38 = vadd.f32 %v7032_v49, %v7031_v11  ;;  %v6931_v47 = vpop.f32.mrf.mxu1  ;;  %7420 = vmatmul.mubr.bf16.gmra.mxu1 %v7822_v35  ;;  %7447 = vmatprep.subr.bf16.mxu0 %v7835_v44 }
 0x26d   : > { %v7034_v9 = vpop.f32.mrf.mxu0  ;;  %7423 = vmatprep.mubr.bf16.mxu1 %v7823_v30  ;;  %7448 = vmatpush3.bf16.msra.mxu0 %v7835_v44 }
 0x26e   : > { %v9488_v52 = vadd.f32 %v7033_v38, %v6921_v33  ;;  %v6932_v3 = vpop.f32.mrf.mxu1 }
 0x26f   : > { %v7035_v13 = vpop.f32.mrf.mxu0  ;;  %v6933_v22 = vadd.f32 %v6932_v3, %v6931_v47 }
 0x270   : > { %v7036_v60 = vadd.f32 %v7035_v13, %v7034_v9  ;;  %v6934_v16 = vpop.f32.mrf.mxu1 }
 0x271   : > { %v7037_v14 = vpop.f32.mrf.mxu0 }
 0x272   : > { %v9493_v1 = vadd.f32 %v7036_v60, %v6924_v41  ;;  %v6935_v5 = vpop.f32.mrf.mxu1  ;;  %v7828_v60 = vld [vmem:[#allocation3 + $0x458] ss:$36 sps:$4 sm:$0xff]  }
 0x273   : > { %v7038_v46 = vpop.f32.mrf.mxu0  ;;  %v6936_v37 = vadd.f32 %v6935_v5, %v6934_v16 }
 0x274   : > { %v7039_v25 = vadd.f32 %v7038_v46, %v7037_v14  ;;  %v6937_v17 = vpop.f32.mrf.mxu1  ;;  %7424 = vmatmul.mubr.bf16.gmra.mxu1 %v7824_v4 }
 0x275   : > { %v7040_v29 = vpop.f32.mrf.mxu0  ;;  %7427 = vmatprep.mubr.bf16.mxu1 %v7825_v43 }
 0x276   : > { %v9495_v32 = vadd.f32 %v7039_v25, %v6927_v50  ;;  %v6938_v51 = vpop.f32.mrf.mxu1 }
 0x277   : > { %v7041_v28 = vpop.f32.mrf.mxu0  ;;  %v6939_v40 = vadd.f32 %v6938_v51, %v6937_v17 }
 0x278   : > { %v7042_v56 = vadd.f32 %v7041_v28, %v7040_v29  ;;  %v6940_v31 = vpop.f32.mrf.mxu1 }
 0x279   : > { %v7043_v33 = vpop.f32.mrf.mxu0 }
 0x27a   : > { %v9497_v48 = vadd.f32 %v7042_v56, %v6930_v18  ;;  %v6941_v24 = vpop.f32.mrf.mxu1 }
 0x27b   : > { %v7044_v57 = vpop.f32.mrf.mxu0  ;;  %v6942_v8 = vadd.f32 %v6941_v24, %v6940_v31 }
 0x27c   : > { %v7045_v21 = vadd.f32 %v7044_v57, %v7043_v33  ;;  %v6943_v49 = vpop.f32.mrf.mxu1  ;;  %7428 = vmatmul.mubr.bf16.gmra.mxu1 %v7826_v36 }
 0x27d   : > { %v7046_v41 = vpop.f32.mrf.mxu0  ;;  %7431 = vmatprep.mubr.bf16.mxu1 %v7827_v12 }
 0x27e   : > { %v9499_v59 = vadd.f32 %v7045_v21, %v6933_v22  ;;  %v6944_v54 = vpop.f32.mrf.mxu1 }
 0x27f   : > { %v7047_v11 = vpop.f32.mrf.mxu0  ;;  %v6945_v35 = vadd.f32 %v6944_v54, %v6943_v49 }
 0x280   : > { %v7048_v50 = vadd.f32 %v7047_v11, %v7046_v41  ;;  %v6946_v30 = vpop.f32.mrf.mxu1 }
 0x281   : > { %v7049_v38 = vpop.f32.mrf.mxu0 }
 0x282   : > { %v9504_v9 = vadd.f32 %v7048_v50, %v6936_v37  ;;  %v6947_v2 = vpop.f32.mrf.mxu1 }
 0x283   : > { %v7050_v18 = vpop.f32.mrf.mxu0  ;;  %v6948_v3 = vadd.f32 %v6947_v2, %v6946_v30 }
 0x284   : > { %v7051_v13 = vadd.f32 %v7050_v18, %v7049_v38  ;;  %v6949_v25 = vpop.f32.mrf.mxu1  ;;  %7432 = vmatmul.mubr.bf16.gmra.mxu1 %v7828_v60  ;;  %v7836_v18 = vld [vmem:[%s10089_s3] sm:$0xff]  }
 0x285   : > { %v7052_v47 = vpop.f32.mrf.mxu0  ;;  %7449 = vmatprep.subr.bf16.mxu0 %v7836_v18 }
 0x286   : > { %v9506_v14 = vadd.f32 %v7051_v13, %v6939_v40  ;;  %v6950_v5 = vpop.f32.mrf.mxu1  ;;  %7450 = vmatpush3.bf16.msra.mxu0 %v7836_v18 }
 0x287   : > { %v7053_v22 = vpop.f32.mrf.mxu0  ;;  %v6951_v4 = vadd.f32 %v6950_v5, %v6949_v25 }
 0x288   : > { %v7054_v46 = vadd.f32 %v7053_v22, %v7052_v47  ;;  %v6952_v43 = vpop.f32.mrf.mxu1 }
 0x289   : > { %v7055_v16 = vpop.f32.mrf.mxu0 }
 0x28a   : > { %v9508_v29 = vadd.f32 %v7054_v46, %v6942_v8  ;;  %v6953_v33 = vpop.f32.mrf.mxu1 }
 0x28b   : > { %v7056_v37 = vpop.f32.mrf.mxu0  ;;  %v6954_v51 = vadd.f32 %v6953_v33, %v6952_v43 }
 0x28c   : > { %v7057_v28 = vadd.f32 %v7056_v37, %v7055_v16  ;;  %v7083_v21 = vpop.f32.mrf.mxu1 }
 0x28d   : > { %v7058_v56 = vpop.f32.mrf.mxu0 }
 0x28e   : > { %v9510_v17 = vadd.f32 %v7057_v28, %v6945_v35  ;;  %v7084_v24 = vpop.f32.mrf.mxu1 }
 0x28f   : > { %v7059_v40 = vpop.f32.mrf.mxu0  ;;  %v7085_v8 = vadd.f32 %v7084_v24, %v7083_v21 }
 0x290   : > { %v7060_v57 = vadd.f32 %v7059_v40, %v7058_v56  ;;  %v7086_v12 = vpop.f32.mrf.mxu1 }
 0x291   : > { %v7061_v31 = vpop.f32.mrf.mxu0  ;;  %v4864_v50 = vadd.f32 %v7085_v8, %v9433_v19 }
 0x292   : > { %v9512_v41 = vadd.f32 %v7060_v57, %v6948_v3  ;;  %v7087_v44 = vpop.f32.mrf.mxu1 }
 0x293   : > { %v7062_v36 = vpop.f32.mrf.mxu0  ;;  %v7088_v35 = vadd.f32 %v7087_v44, %v7086_v12 }
 0x294   : > { %v7063_v11 = vadd.f32 %v7062_v36, %v7061_v31  ;;  %v7089_v30 = vpop.f32.mrf.mxu1 }
 0x295   : > { %v7064_v49 = vpop.f32.mrf.mxu0  ;;  %v4867_v60 = vadd.f32 %v7088_v35, %v9435_v53 }
 0x296   : > { %v9515_v38 = vadd.f32 %v7063_v11, %v6951_v4  ;;  %v7090_v3 = vpop.f32.mrf.mxu1 }
 0x297   : > { %v7065_v54 = vpop.f32.mrf.mxu0  ;;  %v7091_v19 = vadd.f32 %v7090_v3, %v7089_v30 }
 0x298   : > { %v7066_v13 = vadd.f32 %v7065_v54, %v7064_v49  ;;  %v7092_v25 = vpop.f32.mrf.mxu1 }
 0x299   : > { %v7195_v47 = vpop.f32.mrf.mxu0  ;;  %v9524_v16 = vadd.f32 %v7091_v19, %v9440_v10 }
 0x29a   : > { %v9521_v2 = vadd.f32 %v7066_v13, %v6954_v51  ;;  %v7093_v4 = vpop.f32.mrf.mxu1 }
 0x29b   : > { %v7196_v22 = vpop.f32.mrf.mxu0  ;;  %v7094_v28 = vadd.f32 %v7093_v4, %v7092_v25 }
 0x29c   : > { %10293 = vst [vmem:[#allocation19_spill] sm:$0xff] %v9521_v2  ;;  %v7197_v46 = vadd.f32 %v7196_v22, %v7195_v47  ;;  %v7095_v56 = vpop.f32.mrf.mxu1 }
 0x29d   : > { %v7198_v5 = vpop.f32.mrf.mxu0  ;;  %v9529_v33 = vadd.f32 %v7094_v28, %v9442_v42 }
 0x29e   : > { %v9526_v37 = vadd.f32 %v7197_v46, %v4864_v50  ;;  %v7096_v40 = vpop.f32.mrf.mxu1 }
 0x29f   : > { %v7199_v43 = vpop.f32.mrf.mxu0  ;;  %v7097_v21 = vadd.f32 %v7096_v40, %v7095_v56 }
 0x2a0   : > { %v7200_v53 = vadd.f32 %v7199_v43, %v7198_v5  ;;  %v7098_v10 = vpop.f32.mrf.mxu1 }
 0x2a1   : > { %v9531_v51 = vpop.f32.mrf.mxu0  ;;  %v9538_v24 = vadd.f32 %v7097_v21, %v9444_v39 }
 0x2a2   : > { %v9533_v57 = vadd.f32 %v7200_v53, %v4867_v60  ;;  %v7099_v8 = vpop.f32.mrf.mxu1 }
 0x2a3   : > { %v9535_v31 = vpop.f32.mrf.mxu0  ;;  %v7100_v11 = vadd.f32 %v7099_v8, %v7098_v10 }
 0x2a4   : > { %v7101_v42 = vpop.f32.mrf.mxu1 }
 0x2a5   : > { %v9540_v36 = vpop.f32.mrf.mxu0  ;;  %v9545_v50 = vadd.f32 %v7100_v11, %v9446_v61 }
 0x2a6   : > { %v7102_v44 = vpop.f32.mrf.mxu1 }
 0x2a7   : > { %v9542_v12 = vpop.f32.mrf.mxu0  ;;  %v7103_v54 = vadd.f32 %v7102_v44, %v7101_v42 }
 0x2a8   : > { %v7104_v18 = vpop.f32.mrf.mxu1 }
 0x2a9   : > { %v9547_v49 = vpop.f32.mrf.mxu0  ;;  %v9552_v39 = vadd.f32 %v7103_v54, %v9451_v0 }
 0x2aa   : > { %v7105_v30 = vpop.f32.mrf.mxu1 }
 0x2ab   : > { %v9549_v35 = vpop.f32.mrf.mxu0  ;;  %v7106_v60 = vadd.f32 %v7105_v30, %v7104_v18 }
 0x2ac   : > { %v7107_v3 = vpop.f32.mrf.mxu1 }
 0x2ad   : > { %v9554_v13 = vpop.f32.mrf.mxu0  ;;  %v9559_v61 = vadd.f32 %v7106_v60, %v9453_v15 }
 0x2ae   : > { %v7108_v22 = vpop.f32.mrf.mxu1 }
 0x2af   : > { %v9556_v47 = vpop.f32.mrf.mxu0  ;;  %v7109_v46 = vadd.f32 %v7108_v22, %v7107_v3 }
 0x2b0   : > { %v7110_v5 = vpop.f32.mrf.mxu1 }
 0x2b1   : > { %v9561_v19 = vpop.f32.mrf.mxu0  ;;  %v9566_v0 = vadd.f32 %v7109_v46, %v9455_v23 }
 0x2b2   : > { %v7111_v28 = vpop.f32.mrf.mxu1 }
 0x2b3   : > { %v9563_v25 = vpop.f32.mrf.mxu0  ;;  %v7112_v43 = vadd.f32 %v7111_v28, %v7110_v5 }
 0x2b4   : > { %v7113_v56 = vpop.f32.mrf.mxu1 }
 0x2b5   : > { %v9568_v4 = vpop.f32.mrf.mxu0  ;;  %v9573_v15 = vadd.f32 %v7112_v43, %v9460_v55 }
 0x2b6   : > { %v7114_v21 = vpop.f32.mrf.mxu1 }
 0x2b7   : > { %v9570_v53 = vpop.f32.mrf.mxu0  ;;  %10294 = vst [vmem:[#allocation22_spill] sm:$0xff] %v9573_v15  ;;  %v7115_v10 = vadd.f32 %v7114_v21, %v7113_v56 }
 0x2b8   : > { %v7116_v11 = vpop.f32.mrf.mxu1 }
 0x2b9   : > { %v9575_v40 = vpop.f32.mrf.mxu0  ;;  %v9580_v23 = vadd.f32 %v7115_v10, %v9462_v7 }
 0x2ba   : > { %v7117_v44 = vpop.f32.mrf.mxu1 }
 0x2bb   : > { %v9577_v8 = vpop.f32.mrf.mxu0  ;;  %v7118_v54 = vadd.f32 %v7117_v44, %v7116_v11 }
 0x2bc   : > { %v7119_v30 = vpop.f32.mrf.mxu1 }
 0x2bd   : > { %v9582_v42 = vpop.f32.mrf.mxu0  ;;  %v9587_v55 = vadd.f32 %v7118_v54, %v9464_v45 }
 0x2be   : > { %v7120_v3 = vpop.f32.mrf.mxu1 }
 0x2bf   : > { %v9584_v18 = vpop.f32.mrf.mxu0  ;;  %v7121_v22 = vadd.f32 %v7120_v3, %v7119_v30 }
 0x2c0   : > { %v7122_v5 = vpop.f32.mrf.mxu1 }
 0x2c1   : > { %v9589_v60 = vpop.f32.mrf.mxu0  ;;  %v9594_v7 = vadd.f32 %v7121_v22, %v9466_v63 }
 0x2c2   : > { %v7123_v43 = vpop.f32.mrf.mxu1 }
 0x2c3   : > { %v9591_v46 = vpop.f32.mrf.mxu0  ;;  %10295 = vst [vmem:[#allocation21_spill] sm:$0xff] %v9594_v7  ;;  %v7124_v56 = vadd.f32 %v7123_v43, %v7122_v5 }
 0x2c4   : > { %v7125_v10 = vpop.f32.mrf.mxu1 }
 0x2c5   : > { %v9596_v28 = vpop.f32.mrf.mxu0  ;;  %v9601_v45 = vadd.f32 %v7124_v56, %v9471_v58 }
 0x2c6   : > { %v7126_v44 = vpop.f32.mrf.mxu1 }
 0x2c7   : > { %v9598_v21 = vpop.f32.mrf.mxu0  ;;  %10296 = vst [vmem:[#allocation28_spill] sm:$0xff] %v9601_v45  ;;  %v7127_v54 = vadd.f32 %v7126_v44, %v7125_v10 }
 0x2c8   : > { %v7128_v3 = vpop.f32.mrf.mxu1 }
 0x2c9   : > { %v9603_v11 = vpop.f32.mrf.mxu0  ;;  %v9608_v63 = vadd.f32 %v7127_v54, %v9473_v62 }
 0x2ca   : > { %v7129_v2 = vpop.f32.mrf.mxu1 }
 0x2cb   : > { %v9605_v30 = vpop.f32.mrf.mxu0  ;;  %10297 = vst [vmem:[#allocation29_spill] sm:$0xff] %v9608_v63  ;;  %v7130_v5 = vadd.f32 %v7129_v2, %v7128_v3 }
 0x2cc   : > { %v7131_v7 = vpop.f32.mrf.mxu1 }
 0x2cd   : > { %v9610_v22 = vpop.f32.mrf.mxu0  ;;  %v9615_v58 = vadd.f32 %v7130_v5, %v9475_v27 }
 0x2ce   : > { %10298 = vst [vmem:[#allocation45_spill] sm:$0xff] %v9610_v22  ;;  %v7132_v45 = vpop.f32.mrf.mxu1 }
 0x2cf   : > { %v9612_v43 = vpop.f32.mrf.mxu0  ;;  %10300 = vst [vmem:[#allocation48_spill] sm:$0xff] %v9615_v58  ;;  %v7133_v10 = vadd.f32 %v7132_v45, %v7131_v7 }
 0x2d0   : > { %10299 = vst [vmem:[#allocation47_spill] sm:$0xff] %v9612_v43  ;;  %v7134_v15 = vpop.f32.mrf.mxu1 }
 0x2d1   : > { %v9617_v56 = vpop.f32.mrf.mxu0  ;;  %v9622_v62 = vadd.f32 %v7133_v10, %v9477_v6 }
 0x2d2   : > { %v7135_v22 = vpop.f32.mrf.mxu1 }
 0x2d3   : > { %v9619_v44 = vpop.f32.mrf.mxu0  ;;  %10301 = vst [vmem:[#allocation32_spill] sm:$0xff] %v9622_v62  ;;  %v7136_v2 = vadd.f32 %v7135_v22, %v7134_v15 }
 0x2d4   : > { %v7137_v43 = vpop.f32.mrf.mxu1 }
 0x2d5   : > { %v9624_v54 = vpop.f32.mrf.mxu0  ;;  %v9629_v27 = vadd.f32 %v7136_v2, %v9482_v34 }
 0x2d6   : > { %v7138_v58 = vpop.f32.mrf.mxu1 }
 0x2d7   : > { %v9626_v3 = vpop.f32.mrf.mxu0  ;;  %10303 = vst [vmem:[#allocation31_spill] sm:$0xff] %v9629_v27  ;;  %v7139_v7 = vadd.f32 %v7138_v58, %v7137_v43 }
 0x2d8   : > { %10302 = vst [vmem:[#allocation33_spill] sm:$0xff] %v9626_v3  ;;  %v7140_v63 = vpop.f32.mrf.mxu1 }
 0x2d9   : > { %v9631_v5 = vpop.f32.mrf.mxu0  ;;  %v9636_v6 = vadd.f32 %v7139_v7, %v9484_v20 }
 0x2da   : > { %v7141_v62 = vpop.f32.mrf.mxu1 }
 0x2db   : > { %v9633_v45 = vpop.f32.mrf.mxu0  ;;  %10305 = vst [vmem:[#allocation26_spill] sm:$0xff] %v9636_v6  ;;  %v7142_v15 = vadd.f32 %v7141_v62, %v7140_v63 }
 0x2dc   : > { %10304 = vst [vmem:[#allocation30_spill] sm:$0xff] %v9633_v45  ;;  %v7143_v3 = vpop.f32.mrf.mxu1 }
 0x2dd   : > { %v9638_v10 = vpop.f32.mrf.mxu0  ;;  %v9643_v34 = vadd.f32 %v7142_v15, %v9486_v26 }
 0x2de   : > { %10306 = vst [vmem:[#allocation25_spill] sm:$0xff] %v9638_v10  ;;  %v7144_v27 = vpop.f32.mrf.mxu1 }
 0x2df   : > { %v9640_v22 = vpop.f32.mrf.mxu0  ;;  %10308 = vst [vmem:[#allocation35_spill] sm:$0xff] %v9643_v34  ;;  %v7145_v43 = vadd.f32 %v7144_v27, %v7143_v3 }
 0x2e0   : > { %10307 = vst [vmem:[#allocation34_spill] sm:$0xff] %v9640_v22  ;;  %v7146_v45 = vpop.f32.mrf.mxu1 }
 0x2e1   : > { %v9645_v2 = vpop.f32.mrf.mxu0  ;;  %v9650_v20 = vadd.f32 %v7145_v43, %v9488_v52 }
 0x2e2   : > { %v7147_v10 = vpop.f32.mrf.mxu1 }
 0x2e3   : > { %v9647_v58 = vpop.f32.mrf.mxu0  ;;  %10309 = vst [vmem:[#allocation24_spill] sm:$0xff] %v9650_v20  ;;  %v7148_v63 = vadd.f32 %v7147_v10, %v7146_v45 }
 0x2e4   : > { %v7149_v22 = vpop.f32.mrf.mxu1 }
 0x2e5   : > { %v9652_v7 = vpop.f32.mrf.mxu0  ;;  %v9657_v26 = vadd.f32 %v7148_v63, %v9493_v1 }
 0x2e6   : > { %10310 = vst [vmem:[#allocation23_spill] sm:$0xff] %v9652_v7  ;;  %v7150_v34 = vpop.f32.mrf.mxu1 }
 0x2e7   : > { %v9654_v62 = vpop.f32.mrf.mxu0  ;;  %10311 = vst [vmem:[#allocation36_spill] sm:$0xff] %v9657_v26  ;;  %v7151_v3 = vadd.f32 %v7150_v34, %v7149_v22 }
 0x2e8   : > { %v7152_v27 = vpop.f32.mrf.mxu1 }
 0x2e9   : > { %v9659_v15 = vpop.f32.mrf.mxu0  ;;  %v9662_v6 = vadd.f32 %v7151_v3, %v9495_v32 }
 0x2ea   : > { %10312 = vst [vmem:[#allocation46_spill] sm:$0xff] %v9659_v15  ;;  %v7153_v43 = vpop.f32.mrf.mxu1 }
 0x2eb   : > { %10313 = vst [vmem:[#allocation37_spill] sm:$0xff] %v9662_v6  ;;  %v9664_v52 = vpop.f32.mrf.mxu0  ;;  %v7154_v20 = vadd.f32 %v7153_v43, %v7152_v27 }
 0x2ec   : > { %v7155_v7 = vpop.f32.mrf.mxu1 }
 0x2ed   : > { %v9666_v45 = vpop.f32.mrf.mxu0  ;;  %v9669_v10 = vadd.f32 %v7154_v20, %v9497_v48 }
 0x2ee   : > { %10314 = vst [vmem:[#allocation41_spill] sm:$0xff] %v9666_v45  ;;  %v7156_v1 = vpop.f32.mrf.mxu1 }
 0x2ef   : > { %10315 = vst [vmem:[#allocation40_spill] sm:$0xff] %v9669_v10  ;;  %v7157_v63 = vadd.f32 %v7156_v1, %v7155_v7  ;;  %v9671_v15 = vpop.f32.mrf.mxu0 }
 0x2f0   : > { %v7158_v26 = vpop.f32.mrf.mxu1 }
 0x2f1   : > { %v9674_v22 = vadd.f32 %v7157_v63, %v9499_v59  ;;  %v9676_v6 = vpop.f32.mrf.mxu0 }
 0x2f2   : > { %v7159_v32 = vpop.f32.mrf.mxu1 }
 0x2f3   : > { %10316 = vst [vmem:[#allocation39_spill] sm:$0xff] %v9674_v22  ;;  %v7160_v34 = vadd.f32 %v7159_v32, %v7158_v26  ;;  %v9681_v20 = vpop.f32.mrf.mxu0 }
 0x2f4   : > { %v7161_v3 = vpop.f32.mrf.mxu1 }
 0x2f5   : > { %v9679_v27 = vadd.f32 %v7160_v34, %v9504_v9  ;;  %v9686_v63 = vpop.f32.mrf.mxu0 }
 0x2f6   : > { %v7162_v43 = vpop.f32.mrf.mxu1 }
 0x2f7   : > { %10317 = vst [vmem:[#allocation38_spill] sm:$0xff] %v9679_v27  ;;  %v7163_v45 = vadd.f32 %v7162_v43, %v7161_v3  ;;  %v9691_v34 = vpop.f32.mrf.mxu0 }
 0x2f8   : > { %v7164_v48 = vpop.f32.mrf.mxu1 }
 0x2f9   : > { %v9684_v7 = vadd.f32 %v7163_v45, %v9506_v14  ;;  %v9696_v45 = vpop.f32.mrf.mxu0 }
 0x2fa   : > { %v7165_v1 = vpop.f32.mrf.mxu1 }
 0x2fb   : > { %v7166_v10 = vadd.f32 %v7165_v1, %v7164_v48 }
 0x2fc   : > { %v7167_v59 = vpop.f32.mrf.mxu1 }
 0x2fd   : > { %v9689_v26 = vadd.f32 %v7166_v10, %v9508_v29  ;;  %v7203_v29 = vadd.f32 %v9535_v31, %v9531_v51  ;;  %v10321_v51 = vld [vmem:[#allocation7_spill] sm:$0xff] }
 0x2fe   : > { %v7168_v32 = vpop.f32.mrf.mxu1 }
 0x2ff   : > { %v7169_v22 = vadd.f32 %v7168_v32, %v7167_v59 }
 0x300   : > { %v7170_v9 = vpop.f32.mrf.mxu1 }
 0x301   : > { %v9694_v3 = vadd.f32 %v7169_v22, %v9510_v17  ;;  %v3034_v17 = vld [vmem:[%s10091_s5] sm:$0x3]  ;;  %v9708_v22 = vpop.f32.mrf.mxu0 }
 0x302   : > { %v7171_v43 = vpop.f32.mrf.mxu1  ;;  %v9719_v31 = vrot.slane %v3034_v17, %v10321_v51 }
 0x303   : > { %10318 = vst [vmem:[#allocation42_spill] sm:$0xff] %v9694_v3  ;;  %v7172_v27 = vadd.f32 %v7171_v43, %v7170_v9 }
 0x304   : > { %v7173_v14 = vpop.f32.mrf.mxu1 }
 0x305   : > { %v9699_v48 = vadd.f32 %v7172_v27, %v9512_v41  ;;  %v7206_v41 = vadd.f32 %v9542_v12, %v9540_v36  ;;  %v5033_v27 = vadd.f32 %v7203_v29, %v9524_v16  ;;  %v7209_v12 = vadd.f32 %v9549_v35, %v9547_v49 }
 0x306   : > { %v7174_v1 = vpop.f32.mrf.mxu1  ;;  %v7218_v49 = vadd.f32 %v9570_v53, %v9568_v4 }
 0x307   : > { %10319 = vst [vmem:[#allocation43_spill] sm:$0xff] %v9699_v48  ;;  %v7175_v10 = vadd.f32 %v7174_v1, %v7173_v14  ;;  %v9721_v14 = vpop.f32.mrf.mxu0  ;;  %v10322_v48 = vld [vmem:[#allocation8_spill] sm:$0xff]  ;;  %v5036_v16 = vadd.f32 %v7206_v41, %v9529_v33  ;;  %v7212_v33 = vadd.f32 %v9556_v47, %v9554_v13 }
 0x308   : > { %v9703_v59 = vpop.f32.mrf.mxu1  ;;  %v9724_v3 = vrot.slane %v3034_v17, %v10322_v48 }
 0x309   : > { %10320 = vst [vmem:[#allocation44_spill] sm:$0xff] %v9703_v59  ;;  %v9711_v32 = vadd.f32 %v7175_v10, %v9515_v38  ;;  %v7215_v38 = vadd.f32 %v9563_v25, %v9561_v19  ;;  %v9733_v51 = vpop.f32.mrf.mxu0 }
 0x30a   : > { %v9713_v9 = vpop.f32.mrf.mxu1 }
 0x30b   : > { %v9745_v41 = vpop.f32.mrf.mxu0 }
 0x30c   : > { %v7405_v43 = vpop.f32.mrf.mxu1 }
 0x30d   : > { %v5194_v1 = vadd.f32 %v7405_v43, %v5033_v27 }
 0x30e   : > { %v5185_v59 = vpop.f32.mrf.mxu1 }
 0x30f   : > { %v5318_v10 = vmul.f32 %v9719_v31, %v5194_v1  ;;  %v5186_v36 = vadd.f32 %v5185_v59, %v9526_v37  ;;  %v5049_v37 = vadd.f32 %v7215_v38, %v9552_v39  ;;  %v5041_v59 = vadd.f32 %v7209_v12, %v9538_v24 }
 0x310   : > { %v7406_v29 = vpop.f32.mrf.mxu1  ;;  %v7227_v39 = vadd.f32 %v9591_v46, %v9589_v60 }
 0x311   : > { %v5316_v27 = vmul.f32 %v9719_v31, %v5186_v36  ;;  %v5197_v17 = vadd.f32 %v7406_v29, %v5036_v16  ;;  %v5354_v48 = vadd.f32 %v9724_v3, %v5318_v10  ;;  %v5052_v16 = vadd.f32 %v7218_v49, %v9559_v61 }
 0x312   : > { %v5188_v43 = vpop.f32.mrf.mxu1  ;;  %v5044_v29 = vadd.f32 %v7212_v33, %v9545_v50  ;;  %v5065_v61 = vadd.f32 %v7227_v39, %v9580_v23  ;;  %v7224_v33 = vadd.f32 %v9584_v18, %v9582_v42  ;;  %v7239_v39 = vadd.f32 %v9619_v44, %v9617_v56 }
 0x313   : > { %v5319_v19 = vmul.f32 %v9719_v31, %v5197_v17  ;;  %v5189_v25 = vadd.f32 %v5188_v43, %v9533_v57  ;;  %v5352_v1 = vadd.f32 %v9724_v3, %v5316_v27  ;;  %v5386_v13 = vmax.f32 %v5354_v48, 0.0  ;;  %v9758_v17 = vpop.f32.mrf.mxu0 }
 0x314   : > { %v7409_v35 = vpop.f32.mrf.mxu1  ;;  %v7221_v27 = vadd.f32 %v9577_v8, %v9575_v40  ;;  %v7230_v48 = vadd.f32 %v9598_v21, %v9596_v28 }
 0x315   : > { %v5355_v10 = vadd.f32 %v9724_v3, %v5319_v19  ;;  %v5317_v36 = vmul.f32 %v9719_v31, %v5189_v25  ;;  %v5210_v57 = vadd.f32 %v7409_v35, %v5049_v37  ;;  %v5384_v43 = vmax.f32 %v5352_v1, 0.0 }
 0x316   : > { %v5201_v38 = vpop.f32.mrf.mxu1  ;;  %v5057_v1 = vadd.f32 %v7221_v27, %v9566_v0 }
 0x317   : > { %v5387_v47 = vmax.f32 %v5355_v10, 0.0  ;;  %v5353_v4 = vadd.f32 %v9724_v3, %v5317_v36  ;;  %v5202_v53 = vadd.f32 %v5201_v38, %v5041_v59  ;;  %v5322_v24 = vmul.f32 %v9719_v31, %v5210_v57  ;;  %v9768_v59 = vpop.f32.mrf.mxu0 }
 0x318   : > { %v7410_v12 = vpop.f32.mrf.mxu1  ;;  %v5068_v57 = vadd.f32 %v7230_v48, %v9587_v55  ;;  %v10325_v48 = vld [vmem:[#allocation45_spill] sm:$0xff] }
 0x319   : > { %v5418_v60 = vpack.c.bf16 %v5387_v47, %v5386_v13  ;;  %v5385_v46 = vmax.f32 %v5353_v4, 0.0  ;;  %v5320_v19 = vmul.f32 %v9719_v31, %v5202_v53  ;;  %v5213_v25 = vadd.f32 %v7410_v12, %v5052_v16  ;;  %v9781_v53 = vpop.f32.mrf.mxu0  ;;  %v10323_v12 = vld [vmem:[#allocation22_spill] sm:$0xff] }
 0x31a   : > { %v5204_v37 = vpop.f32.mrf.mxu1  ;;  %v5358_v50 = vadd.f32 %v9724_v3, %v5322_v24  ;;  %v7233_v13 = vadd.f32 %v9605_v30, %v9603_v11  ;;  %v10324_v11 = vld [vmem:[#allocation29_spill] sm:$0xff] }
 0x31b   : > { %v5205_v35 = vadd.f32 %v5204_v37, %v5044_v29  ;;  %v5417_v49 = vpack.c.bf16 %v5385_v46, %v5384_v43  ;;  %v5323_v40 = vmul.f32 %v9719_v31, %v5213_v25  ;;  %v5356_v10 = vadd.f32 %v9724_v3, %v5320_v19  ;;  %v10326_v19 = vld [vmem:[#allocation47_spill] sm:$0xff]  ;;  %v10327_v37 = vld [vmem:[#allocation33_spill] sm:$0xff] }
 0x31c   : > { %v7413_v8 = vpop.f32.mrf.mxu1  ;;  %v5390_v0 = vmax.f32 %v5358_v50, 0.0  ;;  %v5060_v29 = vadd.f32 %v7224_v33, %v10323_v12  ;;  %v5081_v30 = vadd.f32 %v7239_v39, %v10324_v11  ;;  %v7236_v25 = vadd.f32 %v10326_v19, %v10325_v48  ;;  %v10328_v50 = vld [vmem:[#allocation21_spill] sm:$0xff]  ;;  %v10332_v12 = vld [vmem:[#allocation23_spill] sm:$0xff] }
 0x31d   : > { %v5321_v28 = vmul.f32 %v9719_v31, %v5205_v35  ;;  %v5226_v21 = vadd.f32 %v7413_v8, %v5065_v61  ;;  %7451 = vmatprep.mubr.bf16.mxu0 %v5417_v49  ;;  %v5359_v23 = vadd.f32 %v9724_v3, %v5323_v40  ;;  %v5388_v56 = vmax.f32 %v5356_v10, 0.0  ;;  %v9793_v8 = vpop.f32.mrf.mxu0  ;;  %v10334_v19 = vld [vmem:[#allocation25_spill] sm:$0xff] }
 0x31e   : > { %v5217_v36 = vpop.f32.mrf.mxu1  ;;  %7452 = vmatmul.mubr.bf16.vlgmr.msra.gmra.mxu0 %v5418_v60  ;;  %v7242_v35 = vadd.f32 %v10327_v37, %v9624_v54  ;;  %v5073_v40 = vadd.f32 %v7233_v13, %v10328_v50  ;;  %v7251_v10 = vadd.f32 %v9647_v58, %v9645_v2 }
 0x31f   : > { %v5357_v42 = vadd.f32 %v9724_v3, %v5321_v28  ;;  %v5326_v18 = vmul.f32 %v9719_v31, %v5226_v21  ;;  %v5218_v38 = vadd.f32 %v5217_v36, %v5057_v1  ;;  %v5391_v47 = vmax.f32 %v5359_v23, 0.0 }
 0x320   : > { %v7414_v4 = vpop.f32.mrf.mxu1 }
 0x321   : > { %v5389_v24 = vmax.f32 %v5357_v42, 0.0  ;;  %v5324_v16 = vmul.f32 %v9719_v31, %v5218_v38  ;;  %v5229_v55 = vadd.f32 %v7414_v4, %v5068_v57  ;;  %v5420_v44 = vpack.c.bf16 %v5391_v47, %v5390_v0  ;;  %v10330_v0 = vld [vmem:[#allocation28_spill] sm:$0xff]  ;;  %v10331_v4 = vld [vmem:[#allocation30_spill] sm:$0xff] }
 0x322   : > { %v5220_v27 = vpop.f32.mrf.mxu1  ;;  %v5362_v43 = vadd.f32 %v9724_v3, %v5326_v18  ;;  %v10329_v18 = vld [vmem:[#allocation48_spill] sm:$0xff]  ;;  %v5076_v47 = vadd.f32 %v7236_v25, %v10330_v0  ;;  %v10335_v25 = vld [vmem:[#allocation34_spill] sm:$0xff] }
 0x323   : > { %v5327_v60 = vmul.f32 %v9719_v31, %v5229_v55  ;;  %v5221_v46 = vadd.f32 %v5220_v27, %v5060_v29  ;;  %v5419_v49 = vpack.c.bf16 %v5389_v24, %v5388_v56  ;;  %v5360_v33 = vadd.f32 %v9724_v3, %v5324_v16  ;;  %v9806_v16 = vpop.f32.mrf.mxu0 }
 0x324   : > { %v7417_v61 = vpop.f32.mrf.mxu1  ;;  %v5394_v36 = vmax.f32 %v5362_v43, 0.0  ;;  %v5084_v38 = vadd.f32 %v7242_v35, %v10329_v18  ;;  %v7245_v24 = vadd.f32 %v10331_v4, %v9631_v5  ;;  %v7254_v29 = vadd.f32 %v9654_v62, %v10332_v12 }
 0x325   : > { %v5363_v28 = vadd.f32 %v9724_v3, %v5327_v60  ;;  %v5325_v21 = vmul.f32 %v9719_v31, %v5221_v46  ;;  %v5242_v1 = vadd.f32 %v7417_v61, %v5081_v30  ;;  %7455 = vmatprep.mubr.bf16.mxu0 %v5419_v49  ;;  %v5392_v2 = vmax.f32 %v5360_v33, 0.0  ;;  %v10333_v60 = vld [vmem:[#allocation26_spill] sm:$0xff]  ;;  %v9816_v35 = vpop.f32.mrf.mxu0  ;;  %v10336_v49 = vld [vmem:[#allocation32_spill] sm:$0xff] }
 0x326   : > { %v5233_v23 = vpop.f32.mrf.mxu1  ;;  %7456 = vmatmul.mubr.bf16.gmra.mxu0 %v5420_v44  ;;  %v5097_v46 = vadd.f32 %v7251_v10, %v10333_v60  ;;  %v7248_v37 = vadd.f32 %v10335_v25, %v10334_v19  ;;  %v5089_v50 = vadd.f32 %v7245_v24, %v10336_v49  ;;  %v7263_v10 = vadd.f32 %v9681_v20, %v9676_v6  ;;  %v10339_v24 = vld [vmem:[#allocation31_spill] sm:$0xff] }
 0x327   : > { %v5395_v54 = vmax.f32 %v5363_v28, 0.0  ;;  %v5361_v57 = vadd.f32 %v9724_v3, %v5325_v21  ;;  %v5234_v39 = vadd.f32 %v5233_v23, %v5073_v40  ;;  %v5330_v42 = vmul.f32 %v9719_v31, %v5242_v1  ;;  %v10337_v21 = vld [vmem:[#allocation35_spill] sm:$0xff] }
 0x328   : > { %v7418_v13 = vpop.f32.mrf.mxu1  ;;  %v5100_v1 = vadd.f32 %v7254_v29, %v10337_v21  ;;  %v5092_v6 = vadd.f32 %v7248_v37, %v10339_v24  ;;  %v10344_v21 = vld [vmem:[#allocation36_spill] sm:$0xff] }
 0x329   : > { %v5422_v58 = vpack.c.bf16 %v5395_v54, %v5394_v36  ;;  %v5393_v55 = vmax.f32 %v5361_v57, 0.0  ;;  %v5328_v56 = vmul.f32 %v9719_v31, %v5234_v39  ;;  %v5245_v44 = vadd.f32 %v7418_v13, %v5084_v38  ;;  %v10338_v57 = vld [vmem:[#allocation46_spill] sm:$0xff]  ;;  %v9829_v13 = vpop.f32.mrf.mxu0 }
 0x32a   : > { %v5236_v27 = vpop.f32.mrf.mxu1  ;;  %v5366_v30 = vadd.f32 %v9724_v3, %v5330_v42  ;;  %v7257_v39 = vadd.f32 %v9664_v52, %v10338_v57  ;;  %v10340_v52 = vld [vmem:[#allocation37_spill] sm:$0xff] }
 0x32b   : > { %v5237_v43 = vadd.f32 %v5236_v27, %v5076_v47  ;;  %v5421_v11 = vpack.c.bf16 %v5393_v55, %v5392_v2  ;;  %v5331_v5 = vmul.f32 %v9719_v31, %v5245_v44  ;;  %v5364_v40 = vadd.f32 %v9724_v3, %v5328_v56  ;;  %v10341_v44 = vld [vmem:[#allocation41_spill] sm:$0xff] }
 0x32c   : > { %v7421_v48 = vpop.f32.mrf.mxu1  ;;  %v5398_v42 = vmax.f32 %v5366_v30, 0.0  ;;  %v5113_v56 = vadd.f32 %v7263_v10, %v10340_v52  ;;  %v7260_v27 = vadd.f32 %v9671_v15, %v10341_v44  ;;  %v7269_v10 = vadd.f32 %v9708_v22, %v9696_v45 }
 0x32d   : > { %v5329_v62 = vmul.f32 %v9719_v31, %v5237_v43  ;;  %v5258_v61 = vadd.f32 %v7421_v48, %v5097_v46  ;;  %7459 = vmatprep.mubr.bf16.mxu0 %v5421_v11  ;;  %v5367_v33 = vadd.f32 %v9724_v3, %v5331_v5  ;;  %v5396_v20 = vmax.f32 %v5364_v40, 0.0  ;;  %v10342_v11 = vld [vmem:[#allocation24_spill] sm:$0xff]  ;;  %v7285_v5 = vpop.f32.mrf.mxu0 }
 0x32e   : > { %v5249_v28 = vpop.f32.mrf.mxu1  ;;  %7460 = vmatmul.mubr.bf16.gmra.mxu0 %v5422_v58  ;;  %v7266_v43 = vadd.f32 %v9691_v34, %v9686_v63  ;;  %v5105_v30 = vadd.f32 %v7257_v39, %v10342_v11  ;;  %v10343_v40 = vld [vmem:[#allocation40_spill] sm:$0xff]  ;;  %v7272_v22 = vadd.f32 %v9733_v51, %v9721_v14  ;;  %v7281_v14 = vadd.f32 %v9806_v16, %v9793_v8 }
 0x32f   : > { %v5365_v23 = vadd.f32 %v9724_v3, %v5329_v62  ;;  %v5334_v36 = vmul.f32 %v9719_v31, %v5258_v61  ;;  %v5250_v54 = vadd.f32 %v5249_v28, %v5089_v50  ;;  %v5399_v18 = vmax.f32 %v5367_v33, 0.0 }
 0x330   : > { %v7422_v38 = vpop.f32.mrf.mxu1  ;;  %v7275_v62 = vadd.f32 %v9758_v17, %v9745_v41  ;;  %v5116_v33 = vadd.f32 %v7266_v43, %v10343_v40 }
 0x331   : > { %v5397_v0 = vmax.f32 %v5365_v23, 0.0  ;;  %v5332_v47 = vmul.f32 %v9719_v31, %v5250_v54  ;;  %v5261_v4 = vadd.f32 %v7422_v38, %v5100_v1  ;;  %v5424_v2 = vpack.c.bf16 %v5399_v18, %v5398_v42  ;;  %v7286_v23 = vpop.f32.mrf.mxu0 }
 0x332   : > { %v5252_v55 = vpop.f32.mrf.mxu1  ;;  %v5370_v12 = vadd.f32 %v9724_v3, %v5334_v36  ;;  %v5108_v1 = vadd.f32 %v7260_v27, %v10344_v21  ;;  %v7278_v54 = vadd.f32 %v9781_v53, %v9768_v59  ;;  %v5129_v38 = vadd.f32 %v7275_v62, %v9684_v7  ;;  %v10345_v53 = vld [vmem:[#allocation39_spill] sm:$0xff] }
 0x333   : > { %v5335_v58 = vmul.f32 %v9719_v31, %v5261_v4  ;;  %v5253_v29 = vadd.f32 %v5252_v55, %v5092_v6  ;;  %v5423_v46 = vpack.c.bf16 %v5397_v0, %v5396_v20  ;;  %v5368_v48 = vadd.f32 %v9724_v3, %v5332_v47  ;;  %v7288_v24 = vpop.f32.mrf.mxu0 }
 0x334   : > { %v7425_v60 = vpop.f32.mrf.mxu1  ;;  %v5402_v61 = vmax.f32 %v5370_v12, 0.0  ;;  %v5121_v20 = vadd.f32 %v7269_v10, %v10345_v53  ;;  %v5132_v12 = vadd.f32 %v7278_v54, %v9689_v26 }
 0x335   : > { %v5371_v19 = vadd.f32 %v9724_v3, %v5335_v58  ;;  %v5333_v25 = vmul.f32 %v9719_v31, %v5253_v29  ;;  %v5274_v37 = vadd.f32 %v7425_v60, %v5113_v56  ;;  %7463 = vmatprep.mubr.bf16.mxu0 %v5423_v46  ;;  %v5400_v41 = vmax.f32 %v5368_v48, 0.0  ;;  %v7289_v43 = vpop.f32.mrf.mxu0 }
 0x336   : > { %v5265_v15 = vpop.f32.mrf.mxu1  ;;  %7464 = vmatmul.mubr.bf16.gmra.mxu0 %v5424_v2  ;;  %v7287_v58 = vadd.f32 %v7286_v23, %v7285_v5  ;;  %v10347_v5 = vld [vmem:[#allocation44_spill] sm:$0xff] }
 0x337   : > { %v5403_v49 = vmax.f32 %v5371_v19, 0.0  ;;  %v5369_v63 = vadd.f32 %v9724_v3, %v5333_v25  ;;  %v5266_v34 = vadd.f32 %v5265_v15, %v5105_v30  ;;  %v5338_v50 = vmul.f32 %v9719_v31, %v5274_v37  ;;  %v10346_v30 = vld [vmem:[#allocation38_spill] sm:$0xff] }
 0x338   : > { %v7426_v28 = vpop.f32.mrf.mxu1  ;;  %v5124_v26 = vadd.f32 %v7272_v22, %v10346_v30  ;;  %v7178_v48 = vadd.f32 %v9713_v9, %v10347_v5  ;;  %v5145_v15 = vadd.f32 %v7287_v58, %v9711_v32  ;;  %v5730_v30 = vld [vmem:[%s8007_s23] sm:$0xff] }
 0x339   : > { %v5426_v17 = vpack.c.bf16 %v5403_v49, %v5402_v61  ;;  %v5401_v36 = vmax.f32 %v5369_v63, 0.0  ;;  %v5336_v57 = vmul.f32 %v9719_v31, %v5266_v34  ;;  %v5277_v39 = vadd.f32 %v7426_v28, %v5116_v33 }
 0x33a   : > { %v5268_v42 = vpop.f32.mrf.mxu1  ;;  %v5374_v47 = vadd.f32 %v9724_v3, %v5338_v50  ;;  %v7284_v61 = vadd.f32 %v9829_v13, %v9816_v35  ;;  %v7290_v49 = vadd.f32 %v7289_v43, %v7288_v24  ;;  %v10348_v50 = vld [vmem:[#allocation42_spill] sm:$0xff]  ;;  %v5732_v43 = vld [vmem:[%s8007_s23 + $0x10] sm:$0xff] }
 0x33b   : > { %v5269_v18 = vadd.f32 %v5268_v42, %v5108_v1  ;;  %v5425_v0 = vpack.c.bf16 %v5401_v36, %v5400_v41  ;;  %v5339_v4 = vmul.f32 %v9719_v31, %v5277_v39  ;;  %v5372_v2 = vadd.f32 %v9724_v3, %v5336_v57  ;;  %v10349_v1 = vld [vmem:[#allocation19_spill] sm:$0xff] }
 0x33c   : > { %v7429_v45 = vpop.f32.mrf.mxu1  ;;  %v5406_v56 = vmax.f32 %v5374_v47, 0.0  ;;  %v5137_v40 = vadd.f32 %v7281_v14, %v10348_v50  ;;  %v4987_v10 = vadd.f32 %v7178_v48, %v10349_v1  ;;  %v10350_v57 = vld [vmem:[#allocation43_spill] sm:$0xff] }
 0x33d   : > { %v5337_v6 = vmul.f32 %v9719_v31, %v5269_v18  ;;  %v5290_v59 = vadd.f32 %v7429_v45, %v5129_v38  ;;  %7467 = vmatprep.mubr.bf16.mxu0 %v5425_v0  ;;  %v5375_v7 = vadd.f32 %v9724_v3, %v5339_v4  ;;  %v5404_v19 = vmax.f32 %v5372_v2, 0.0 }
 0x33e   : > { %v5281_v55 = vpop.f32.mrf.mxu1  ;;  %7468 = vmatmul.mubr.bf16.gmra.mxu0 %v5426_v17  ;;  %v5148_v36 = vadd.f32 %v7290_v49, %v4987_v10  ;;  %v5140_v39 = vadd.f32 %v7284_v61, %v10350_v57  ;;  %v5731_v61 = vld [vmem:[%s8007_s23 + $0x8] sm:$0xff] }
 0x33f   : > { %v5373_v29 = vadd.f32 %v9724_v3, %v5337_v6  ;;  %v5342_v52 = vmul.f32 %v9719_v31, %v5290_v59  ;;  %v5282_v51 = vadd.f32 %v5281_v55, %v5121_v20  ;;  %v5407_v44 = vmax.f32 %v5375_v7, 0.0 }
 0x340   : > { %v7430_v27 = vpop.f32.mrf.mxu1 }
 0x341   : > { %v5405_v60 = vmax.f32 %v5373_v29, 0.0  ;;  %v5340_v46 = vmul.f32 %v9719_v31, %v5282_v51  ;;  %v5293_v11 = vadd.f32 %v7430_v27, %v5132_v12  ;;  %v5428_v25 = vpack.c.bf16 %v5407_v44, %v5406_v56  ;;  %v10351_v51 = vld [vmem:[#allocation7_spill] sm:$0xff] }
 0x342   : > { %v5284_v37 = vpop.f32.mrf.mxu1  ;;  %v5378_v62 = vadd.f32 %v9724_v3, %v5342_v52 }
 0x343   : > { %v5343_v8 = vmul.f32 %v9719_v31, %v5293_v11  ;;  %v5285_v16 = vadd.f32 %v5284_v37, %v5124_v26  ;;  %v5427_v34 = vpack.c.bf16 %v5405_v60, %v5404_v19  ;;  %v5376_v9 = vadd.f32 %v9724_v3, %v5340_v46 }
 0x344   : > { %v7433_v63 = vpop.f32.mrf.mxu1  ;;  %v5410_v32 = vmax.f32 %v5378_v62, 0.0 }
 0x345   : > { %v5379_v33 = vadd.f32 %v9724_v3, %v5343_v8  ;;  %v5341_v28 = vmul.f32 %v9719_v31, %v5285_v16  ;;  %v5306_v21 = vadd.f32 %v7433_v63, %v5145_v15  ;;  %7471 = vmatprep.mubr.bf16.mxu0 %v5427_v34  ;;  %v5408_v42 = vmax.f32 %v5376_v9, 0.0 }
 0x346   : > { %v5297_v23 = vpop.f32.mrf.mxu1  ;;  %7472 = vmatmul.mubr.bf16.gmra.mxu0 %v5428_v25  ;;  %v5733_v25 = vld [vmem:[%s8007_s23 + $0x18] sm:$0xff] }
 0x347   : > { %v5411_v41 = vmax.f32 %v5379_v33, 0.0  ;;  %v5377_v35 = vadd.f32 %v9724_v3, %v5341_v28  ;;  %v5298_v13 = vadd.f32 %v5297_v23, %v5137_v40  ;;  %v5346_v17 = vmul.f32 %v9719_v31, %v5306_v21  ;;  %v5736_v28 = vld [vmem:[%s8007_s23 + $0x30] sm:$0xff] }
 0x348   : > { %v7434_v54 = vpop.f32.mrf.mxu1 }
 0x349   : > { %v5430_v18 = vpack.c.bf16 %v5411_v41, %v5410_v32  ;;  %v5409_v38 = vmax.f32 %v5377_v35, 0.0  ;;  %v5344_v0 = vmul.f32 %v9719_v31, %v5298_v13  ;;  %v5309_v47 = vadd.f32 %v7434_v54, %v5148_v36  ;;  %v5734_v32 = vld [vmem:[%s8007_s23 + $0x20] sm:$0xff]  ;;  %v5737_v36 = vld [vmem:[%s8007_s23 + $0x38] sm:$0xff] }
 0x34a   : > { %v5300_v4 = vpop.f32.mrf.mxu1  ;;  %v5382_v24 = vadd.f32 %v9724_v3, %v5346_v17 }
 0x34b   : > { %v5301_v45 = vadd.f32 %v5300_v4, %v5140_v39  ;;  %v5429_v22 = vpack.c.bf16 %v5409_v38, %v5408_v42  ;;  %v5347_v6 = vmul.f32 %v9719_v31, %v5309_v47  ;;  %v5380_v59 = vadd.f32 %v9724_v3, %v5344_v0  ;;  %v5735_v38 = vld [vmem:[%s8007_s23 + $0x28] sm:$0xff] }
 0x34c   : > { %v5414_v7 = vmax.f32 %v5382_v24, 0.0  ;;  %v5740_v24 = vld [vmem:[%s8007_s23 + $0x50] sm:$0xff] }
 0x34d   : > { %v5345_v53 = vmul.f32 %v9719_v31, %v5301_v45  ;;  %7475 = vmatprep.mubr.bf16.mxu0 %v5429_v22  ;;  %v5383_v20 = vadd.f32 %v9724_v3, %v5347_v6  ;;  %v5412_v12 = vmax.f32 %v5380_v59, 0.0  ;;  %v5416_v31 = vld [vmem:[%s10092_s6] sm:$0x3] }
 0x34e   : > { %7476 = vmatmul.mubr.bf16.gmra.mxu0 %v5430_v18  ;;  %v9897_v14 = vrot.slane %v5416_v31, %v10351_v51 }
 0x34f   : > { %v5381_v2 = vadd.f32 %v9724_v3, %v5345_v53  ;;  %v5415_v55 = vmax.f32 %v5383_v20, 0.0  ;;  %v10352_v3 = vld [vmem:[#allocation8_spill] sm:$0xff] }
 0x350   : > { %v9900_v56 = vrot.slane %v5416_v31, %v10352_v3  ;;  %v5741_v31 = vld [vmem:[%s8007_s23 + $0x58] sm:$0xff] }
 0x351   : > { %v5413_v58 = vmax.f32 %v5381_v2, 0.0  ;;  %v5432_v29 = vpack.c.bf16 %v5415_v55, %v5414_v7  ;;  %v5738_v7 = vld [vmem:[%s8007_s23 + $0x40] sm:$0xff] }
 0x353   : > { %v5431_v52 = vpack.c.bf16 %v5413_v58, %v5412_v12 }
 0x355   : > { %7479 = vmatprep.mubr.bf16.mxu0 %v5431_v52 }
 0x356   : > { %7480 = vmatmul.mubr.bf16.gmra.mxu0 %v5432_v29 }
 0x3de   : > { %v7453_v44 = vpop.f32.mrf.mxu0 }
 0x3df   : > { %v5664_v27 = vmul.f32 %v7453_v44, %v9897_v14 }
 0x3e0   : > { %v5531_v60 = vpop.f32.mrf.mxu0 }
 0x3e1   : > { %v5700_v46 = vadd.f32 %v9900_v56, %v5664_v27  ;;  %v5662_v11 = vmul.f32 %v9897_v14, %v5531_v60  ;;  %v5739_v60 = vld [vmem:[%s8007_s23 + $0x48] sm:$0xff] }
 0x3e2   : > { %v7454_v26 = vpop.f32.mrf.mxu0 }
 0x3e3   : > { %v5764_v5 = vadd.f32 %v5732_v43, %v5700_v46  ;;  %v5698_v48 = vadd.f32 %v9900_v56, %v5662_v11  ;;  %v5665_v19 = vmul.f32 %v7454_v26, %v9897_v14 }
 0x3e4   : > { %v5534_v37 = vpop.f32.mrf.mxu0 }
 0x3e5   : > { %v5796_v62 = vmax.f32 %v5764_v5, 0.0  ;;  %v5762_v8 = vadd.f32 %v5730_v30, %v5698_v48  ;;  %v5701_v16 = vadd.f32 %v9900_v56, %v5665_v19  ;;  %v5663_v15 = vmul.f32 %v9897_v14, %v5534_v37  ;;  %v5744_v48 = vld [vmem:[%s8007_s23 + $0x70] sm:$0xff] }
 0x3e6   : > { %v7457_v50 = vpop.f32.mrf.mxu0 }
 0x3e7   : > { %5828 = vst [vmem:[%s9916_s21 + $0x10] sm:$0xff] %v5796_v62  ;;  %v5794_v49 = vmax.f32 %v5762_v8, 0.0  ;;  %v5765_v63 = vadd.f32 %v5733_v25, %v5701_v16  ;;  %v5699_v34 = vadd.f32 %v9900_v56, %v5663_v15  ;;  %v5668_v40 = vmul.f32 %v7457_v50, %v9897_v14  ;;  %v5742_v16 = vld [vmem:[%s8007_s23 + $0x60] sm:$0xff]  ;;  %v5745_v50 = vld [vmem:[%s8007_s23 + $0x78] sm:$0xff] }
 0x3e8   : > { %v5547_v21 = vpop.f32.mrf.mxu0 }
 0x3e9   : > { %5826 = vst [vmem:[%s9916_s21] sm:$0xff] %v5794_v49  ;;  %v5797_v9 = vmax.f32 %v5765_v63, 0.0  ;;  %v5763_v33 = vadd.f32 %v5731_v61, %v5699_v34  ;;  %v5704_v1 = vadd.f32 %v9900_v56, %v5668_v40  ;;  %v5666_v10 = vmul.f32 %v9897_v14, %v5547_v21 }
 0x3ea   : > { %v7458_v41 = vpop.f32.mrf.mxu0 }
 0x3eb   : > { %5829 = vst [vmem:[%s9916_s21 + $0x18] sm:$0xff] %v5797_v9  ;;  %v5795_v23 = vmax.f32 %v5763_v33, 0.0  ;;  %v5768_v35 = vadd.f32 %v5736_v28, %v5704_v1  ;;  %v5702_v13 = vadd.f32 %v9900_v56, %v5666_v10  ;;  %v5669_v17 = vmul.f32 %v7458_v41, %v9897_v14  ;;  %v5743_v1 = vld [vmem:[%s8007_s23 + $0x68] sm:$0xff] }
 0x3ec   : > { %v5550_v54 = vpop.f32.mrf.mxu0 }
 0x3ed   : > { %5827 = vst [vmem:[%s9916_s21 + $0x8] sm:$0xff] %v5795_v23  ;;  %v5800_v57 = vmax.f32 %v5768_v35, 0.0  ;;  %v5766_v39 = vadd.f32 %v5734_v32, %v5702_v13  ;;  %v5705_v42 = vadd.f32 %v9900_v56, %v5669_v17  ;;  %v5667_v18 = vmul.f32 %v9897_v14, %v5550_v54  ;;  %v5748_v13 = vld [vmem:[%s8007_s23 + $0x90] sm:$0xff] }
 0x3ee   : > { %v7461_v0 = vpop.f32.mrf.mxu0 }
 0x3ef   : > { %5832 = vst [vmem:[%s9916_s21 + $0x30] sm:$0xff] %v5800_v57  ;;  %v5798_v47 = vmax.f32 %v5766_v39, 0.0  ;;  %v5769_v4 = vadd.f32 %v5737_v36, %v5705_v42  ;;  %v5703_v45 = vadd.f32 %v9900_v56, %v5667_v18  ;;  %v5672_v22 = vmul.f32 %v7461_v0, %v9897_v14  ;;  %v5746_v42 = vld [vmem:[%s8007_s23 + $0x80] sm:$0xff] }
 0x3f0   : > { %v5563_v6 = vpop.f32.mrf.mxu0 }
 0x3f1   : > { %5830 = vst [vmem:[%s9916_s21 + $0x20] sm:$0xff] %v5798_v47  ;;  %v5801_v59 = vmax.f32 %v5769_v4, 0.0  ;;  %v5767_v53 = vadd.f32 %v5735_v38, %v5703_v45  ;;  %v5708_v20 = vadd.f32 %v9900_v56, %v5672_v22  ;;  %v5670_v2 = vmul.f32 %v9897_v14, %v5563_v6  ;;  %v5749_v45 = vld [vmem:[%s8007_s23 + $0x98] sm:$0xff] }
 0x3f2   : > { %v7462_v55 = vpop.f32.mrf.mxu0 }
 0x3f3   : > { %5833 = vst [vmem:[%s9916_s21 + $0x38] sm:$0xff] %v5801_v59  ;;  %v5799_v12 = vmax.f32 %v5767_v53, 0.0  ;;  %v5772_v58 = vadd.f32 %v5740_v24, %v5708_v20  ;;  %v5706_v29 = vadd.f32 %v9900_v56, %v5670_v2  ;;  %v5673_v52 = vmul.f32 %v7462_v55, %v9897_v14  ;;  %v5747_v20 = vld [vmem:[%s8007_s23 + $0x88] sm:$0xff] }
 0x3f4   : > { %v5566_v51 = vpop.f32.mrf.mxu0 }
 0x3f5   : > { %5831 = vst [vmem:[%s9916_s21 + $0x28] sm:$0xff] %v5799_v12  ;;  %v5804_v3 = vmax.f32 %v5772_v58, 0.0  ;;  %v5770_v44 = vadd.f32 %v5738_v7, %v5706_v29  ;;  %v5709_v27 = vadd.f32 %v9900_v56, %v5673_v52  ;;  %v5671_v43 = vmul.f32 %v9897_v14, %v5566_v51  ;;  %v5752_v29 = vld [vmem:[%s8007_s23 + $0xb0] sm:$0xff] }
 0x3f6   : > { %v7465_v46 = vpop.f32.mrf.mxu0 }
 0x3f7   : > { %5836 = vst [vmem:[%s9916_s21 + $0x50] sm:$0xff] %v5804_v3  ;;  %v5802_v11 = vmax.f32 %v5770_v44, 0.0  ;;  %v5773_v30 = vadd.f32 %v5741_v31, %v5709_v27  ;;  %v5707_v26 = vadd.f32 %v9900_v56, %v5671_v43  ;;  %v5676_v5 = vmul.f32 %v7465_v46, %v9897_v14  ;;  %v5750_v27 = vld [vmem:[%s8007_s23 + $0xa0] sm:$0xff] }
 0x3f8   : > { %v5579_v19 = vpop.f32.mrf.mxu0 }
 0x3f9   : > { %5834 = vst [vmem:[%s9916_s21 + $0x40] sm:$0xff] %v5802_v11  ;;  %v5805_v25 = vmax.f32 %v5773_v30, 0.0  ;;  %v5771_v37 = vadd.f32 %v5739_v60, %v5707_v26  ;;  %v5712_v62 = vadd.f32 %v9900_v56, %v5676_v5  ;;  %v5674_v8 = vmul.f32 %v9897_v14, %v5579_v19  ;;  %v5753_v26 = vld [vmem:[%s8007_s23 + $0xb8] sm:$0xff] }
 0x3fa   : > { %v7466_v15 = vpop.f32.mrf.mxu0 }
 0x3fb   : > { %5837 = vst [vmem:[%s9916_s21 + $0x58] sm:$0xff] %v5805_v25  ;;  %v5803_v61 = vmax.f32 %v5771_v37, 0.0  ;;  %v5776_v49 = vadd.f32 %v5744_v48, %v5712_v62  ;;  %v5710_v63 = vadd.f32 %v9900_v56, %v5674_v8  ;;  %v5677_v34 = vmul.f32 %v7466_v15, %v9897_v14  ;;  %v5751_v62 = vld [vmem:[%s8007_s23 + $0xa8] sm:$0xff] }
 0x3fc   : > { %v5582_v40 = vpop.f32.mrf.mxu0 }
 0x3fd   : > { %5835 = vst [vmem:[%s9916_s21 + $0x48] sm:$0xff] %v5803_v61  ;;  %v5808_v9 = vmax.f32 %v5776_v49, 0.0  ;;  %v5774_v33 = vadd.f32 %v5742_v16, %v5710_v63  ;;  %v5713_v28 = vadd.f32 %v9900_v56, %v5677_v34  ;;  %v5675_v21 = vmul.f32 %v9897_v14, %v5582_v40  ;;  %v5756_v63 = vld [vmem:[%s8007_s23 + $0xd0] sm:$0xff] }
 0x3fe   : > { %v7469_v10 = vpop.f32.mrf.mxu0 }
 0x3ff   : > { %5840 = vst [vmem:[%s9916_s21 + $0x70] sm:$0xff] %v5808_v9  ;;  %v5806_v23 = vmax.f32 %v5774_v33, 0.0  ;;  %v5777_v32 = vadd.f32 %v5745_v50, %v5713_v28  ;;  %v5711_v41 = vadd.f32 %v9900_v56, %v5675_v21  ;;  %v5680_v35 = vmul.f32 %v7469_v10, %v9897_v14  ;;  %v5754_v28 = vld [vmem:[%s8007_s23 + $0xc0] sm:$0xff] }
 0x400   : > { %v5595_v17 = vpop.f32.mrf.mxu0 }
 0x401   : > { %5838 = vst [vmem:[%s9916_s21 + $0x60] sm:$0xff] %v5806_v23  ;;  %v5809_v36 = vmax.f32 %v5777_v32, 0.0  ;;  %v5775_v54 = vadd.f32 %v5743_v1, %v5711_v41  ;;  %v5716_v57 = vadd.f32 %v9900_v56, %v5680_v35  ;;  %v5678_v39 = vmul.f32 %v9897_v14, %v5595_v17  ;;  %v5757_v41 = vld [vmem:[%s8007_s23 + $0xd8] sm:$0xff] }
 0x402   : > { %v7470_v18 = vpop.f32.mrf.mxu0 }
 0x403   : > { %5841 = vst [vmem:[%s9916_s21 + $0x78] sm:$0xff] %v5809_v36  ;;  %v5807_v38 = vmax.f32 %v5775_v54, 0.0  ;;  %v5780_v0 = vadd.f32 %v5748_v13, %v5716_v57  ;;  %v5714_v47 = vadd.f32 %v9900_v56, %v5678_v39  ;;  %v5681_v4 = vmul.f32 %v7470_v18, %v9897_v14  ;;  %v5755_v57 = vld [vmem:[%s8007_s23 + $0xc8] sm:$0xff] }
 0x404   : > { %v5598_v22 = vpop.f32.mrf.mxu0 }
 0x405   : > { %5839 = vst [vmem:[%s9916_s21 + $0x68] sm:$0xff] %v5807_v38  ;;  %v5812_v24 = vmax.f32 %v5780_v0, 0.0  ;;  %v5778_v6 = vadd.f32 %v5746_v42, %v5714_v47  ;;  %v5717_v59 = vadd.f32 %v9900_v56, %v5681_v4  ;;  %v5679_v53 = vmul.f32 %v9897_v14, %v5598_v22  ;;  %v5760_v47 = vld [vmem:[%s8007_s23 + $0xf0] sm:$0xff] }
 0x406   : > { %v7473_v2 = vpop.f32.mrf.mxu0 }
 0x407   : > { %5844 = vst [vmem:[%s9916_s21 + $0x90] sm:$0xff] %v5812_v24  ;;  %v5810_v7 = vmax.f32 %v5778_v6, 0.0  ;;  %v5781_v55 = vadd.f32 %v5749_v45, %v5717_v59  ;;  %v5715_v12 = vadd.f32 %v9900_v56, %v5679_v53  ;;  %v5684_v58 = vmul.f32 %v7473_v2, %v9897_v14  ;;  %v5758_v59 = vld [vmem:[%s8007_s23 + $0xe0] sm:$0xff] }
 0x408   : > { %v5611_v52 = vpop.f32.mrf.mxu0 }
 0x409   : > { %5842 = vst [vmem:[%s9916_s21 + $0x80] sm:$0xff] %v5810_v7  ;;  %v5813_v31 = vmax.f32 %v5781_v55, 0.0  ;;  %v5779_v51 = vadd.f32 %v5747_v20, %v5715_v12  ;;  %v5720_v3 = vadd.f32 %v9900_v56, %v5684_v58  ;;  %v5682_v44 = vmul.f32 %v9897_v14, %v5611_v52  ;;  %v5761_v12 = vld [vmem:[%s8007_s23 + $0xf8] sm:$0xff] }
 0x40a   : > { %v7474_v43 = vpop.f32.mrf.mxu0 }
 0x40b   : > { %5845 = vst [vmem:[%s9916_s21 + $0x98] sm:$0xff] %v5813_v31  ;;  %v5811_v60 = vmax.f32 %v5779_v51, 0.0  ;;  %v5784_v46 = vadd.f32 %v5752_v29, %v5720_v3  ;;  %v5718_v11 = vadd.f32 %v9900_v56, %v5682_v44  ;;  %v5685_v30 = vmul.f32 %v7474_v43, %v9897_v14  ;;  %v5759_v3 = vld [vmem:[%s8007_s23 + $0xe8] sm:$0xff]  ;;  %s10046_s23 = scalar_lea.sflag [#allocation5], %s270_s19 }
 0x40c   : > { %v5614_v5 = vpop.f32.mrf.mxu0 }
 0x40d   : > { %5843 = vst [vmem:[%s9916_s21 + $0x88] sm:$0xff] %v5811_v60  ;;  %v5816_v48 = vmax.f32 %v5784_v46, 0.0  ;;  %v5782_v19 = vadd.f32 %v5750_v27, %v5718_v11  ;;  %v5721_v25 = vadd.f32 %v9900_v56, %v5685_v30  ;;  %v5683_v37 = vmul.f32 %v9897_v14, %v5614_v5 }
 0x40e   : > { %v7477_v8 = vpop.f32.mrf.mxu0 }
 0x40f   : > { %5848 = vst [vmem:[%s9916_s21 + $0xb0] sm:$0xff] %v5816_v48  ;;  %v5814_v16 = vmax.f32 %v5782_v19, 0.0  ;;  %v5785_v15 = vadd.f32 %v5753_v26, %v5721_v25  ;;  %v5719_v61 = vadd.f32 %v9900_v56, %v5683_v37  ;;  %v5688_v49 = vmul.f32 %v7477_v8, %v9897_v14 }
 0x410   : > { %v5627_v34 = vpop.f32.mrf.mxu0 }
 0x411   : > { %5846 = vst [vmem:[%s9916_s21 + $0xa0] sm:$0xff] %v5814_v16  ;;  %v5817_v50 = vmax.f32 %v5785_v15, 0.0  ;;  %v5783_v40 = vadd.f32 %v5751_v62, %v5719_v61  ;;  %v5724_v9 = vadd.f32 %v9900_v56, %v5688_v49  ;;  %v5686_v33 = vmul.f32 %v9897_v14, %v5627_v34 }
 0x412   : > { %v7478_v21 = vpop.f32.mrf.mxu0 }
 0x413   : > { %5849 = vst [vmem:[%s9916_s21 + $0xb8] sm:$0xff] %v5817_v50  ;;  %v5815_v1 = vmax.f32 %v5783_v40, 0.0  ;;  %v5788_v10 = vadd.f32 %v5756_v63, %v5724_v9  ;;  %v5722_v23 = vadd.f32 %v9900_v56, %v5686_v33  ;;  %v5689_v32 = vmul.f32 %v7478_v21, %v9897_v14 }
 0x414   : > { %v5630_v35 = vpop.f32.mrf.mxu0 }
 0x415   : > { %5847 = vst [vmem:[%s9916_s21 + $0xa8] sm:$0xff] %v5815_v1  ;;  %v5820_v13 = vmax.f32 %v5788_v10, 0.0  ;;  %v5786_v17 = vadd.f32 %v5754_v28, %v5722_v23  ;;  %v5725_v36 = vadd.f32 %v9900_v56, %v5689_v32  ;;  %v5687_v54 = vmul.f32 %v9897_v14, %v5630_v35 }
 0x416   : > { %v7481_v39 = vpop.f32.mrf.mxu0 }
 0x417   : > { %5852 = vst [vmem:[%s9916_s21 + $0xd0] sm:$0xff] %v5820_v13  ;;  %v5818_v42 = vmax.f32 %v5786_v17, 0.0  ;;  %v5789_v18 = vadd.f32 %v5757_v41, %v5725_v36  ;;  %v5723_v38 = vadd.f32 %v9900_v56, %v5687_v54  ;;  %v5692_v0 = vmul.f32 %v7481_v39, %v9897_v14 }
 0x418   : > { %v5643_v4 = vpop.f32.mrf.mxu0 }
 0x419   : > { %5850 = vst [vmem:[%s9916_s21 + $0xc0] sm:$0xff] %v5818_v42  ;;  %v5821_v45 = vmax.f32 %v5789_v18, 0.0  ;;  %v5787_v22 = vadd.f32 %v5755_v57, %v5723_v38  ;;  %v5728_v24 = vadd.f32 %v9900_v56, %v5692_v0  ;;  %v5690_v6 = vmul.f32 %v9897_v14, %v5643_v4 }
 0x41a   : > { %v7482_v53 = vpop.f32.mrf.mxu0 }
 0x41b   : > { %5853 = vst [vmem:[%s9916_s21 + $0xd8] sm:$0xff] %v5821_v45  ;;  %v5819_v20 = vmax.f32 %v5787_v22, 0.0  ;;  %v5792_v2 = vadd.f32 %v5760_v47, %v5728_v24  ;;  %v5726_v7 = vadd.f32 %v9900_v56, %v5690_v6  ;;  %v5693_v55 = vmul.f32 %v7482_v53, %v9897_v14 }
 0x41c   : > { %v5646_v58 = vpop.f32.mrf.mxu0 }
 0x41d   : > { %5851 = vst [vmem:[%s9916_s21 + $0xc8] sm:$0xff] %v5819_v20  ;;  %v5824_v29 = vmax.f32 %v5792_v2, 0.0  ;;  %v5790_v52 = vadd.f32 %v5758_v59, %v5726_v7  ;;  %v5729_v31 = vadd.f32 %v9900_v56, %v5693_v55  ;;  %v5691_v51 = vmul.f32 %v9897_v14, %v5646_v58 }
 0x41f   : > { %5856 = vst [vmem:[%s9916_s21 + $0xf0] sm:$0xff] %v5824_v29  ;;  %v5822_v44 = vmax.f32 %v5790_v52, 0.0  ;;  %v5793_v27 = vadd.f32 %v5761_v12, %v5729_v31  ;;  %v5727_v43 = vadd.f32 %v9900_v56, %v5691_v51 }
 0x421   : > { %5854 = vst [vmem:[%s9916_s21 + $0xe0] sm:$0xff] %v5822_v44  ;;  %v5825_v60 = vmax.f32 %v5793_v27, 0.0  ;;  %v5791_v46 = vadd.f32 %v5759_v3, %v5727_v43 }
 0x423   : > { %5857 = vst [vmem:[%s9916_s21 + $0xf8] sm:$0xff] %v5825_v60  ;;  %v5823_v14 = vmax.f32 %v5791_v46, 0.0 }
 0x425   : > { %5855 = vst [vmem:[%s9916_s21 + $0xe8] sm:$0xff] %v5823_v14 }
 0x426   : > { %7852 = shalt.err (!%p7849_p3)
}
 0x427   : > { %s7853_s17 = scalar_lea.hbm %s10038_s13, 4096  ;;  %s7857_s20 = scalar_lea.hbm %s10093_s7, 8192 }
 0x428   : > { %p7854_p4 = scmp.ne.s32.totalorder %s10038_s13, %s7853_s17  ;;  %p7858_p9 = scmp.lt.s32.totalorder %s10038_s13, %s10093_s7 }
 0x429   : > { %p7859_p10 = scmp.lt.s32.totalorder %s7857_s20, %s7853_s17 }
 0x42a   : > { %p7855_p7 = pnand %p7854_p4, %p7984_p5 }
 0x42b   : > { %p7860_p11 = por %p7859_p10, %p7858_p9 }
 0x42c   : > { %p7856_p8 = pneg %p7855_p7 }
 0x42e   : > { %p7861_p12 = pnand %p7860_p11, %p7856_p8 }
 0x430   : > { %7864 = shalt.err (!%p7861_p12)
}
 0x431   : > { %s7904_s8 = smov 128   ;;  %s7905_s9 = smov 8  }
 0x432   : > { %7499 = dma.vmem_to_hbm [thread:$0]  (%p7984_p5), %s10040_s29, 4096, %s10038_s13, %s10046_s23, %s7904_s8, %s7904_s8, %s7905_s9  }
 0x433 PF: > { %p7505_p13 = scmp.ge.s32.totalorder %s7899_s27, 2  ;;  %s5887_s28 = sand.u32 1, %s7887_s24  }
 0x434   : > { %s5888_s14 = scalar_lea.sflag [#allocation5], %s5887_s28 }
 0x435   : > { %p7502_p0 = pnand %p7505_p13, %p7988_p6 }
 0x437   : > { %p7503_p1 = pneg %p7502_p0 }
 0x439   : > { %7882 = dma.done.wait (%p7503_p1), %s5888_s14, 4096  }
 0x43a   : > { %7884 = vsyncadd (%p7503_p1), %s5888_s14, 4294963200  ;;  %p17_p2 = scmp.ge.s32.totalorder %s7971_s30, 4   ;;  %s10353_s24 = smov %s7891_s25 }
 0x43b   : > { %s10354_s25 = smov %s7895_s26  ;;  %s10355_s26 = smov %s7982_s10 }
 0x43c   : > { %s10356_s27 = smov %s7971_s30  ;;  %19 = sbr.rel (!%p17_p2) target bundleno = 3 (0x3), region = 83 }
 0x441   :  { %5893 = vsyncpa [#allocation5], 1 }
 0x442   :  { %5895 = vsyncpa [#allocation5 + $0x1], 1 }

</bundles_post_ra>
